<compile_context>
chip_gen: v7x
topology: tpu7x:2x2x1
jax: 0.10.0
libtpu: 0.0.40
codegen_flags: <defaults>
</compile_context>

<pallas_src>
import functools

import jax
import jax.numpy as jnp
from jax import lax
from jax.experimental import pallas as pl
from jax.experimental.pallas import tpu as pltpu


_VMEM = pl.BlockSpec(memory_space=pltpu.MemorySpace.VMEM)

# torch gate order (i, f, g, o) -> kernel gate order (i, f, o, g)
_GATE_ORDER = (0, 1, 3, 2)


def _round_up(x, m):
    return ((x + m - 1) // m) * m


# ---------------------------------------------------------------------------
# Fused forward kernel: L stacked LSTM layers -> Linear + ReLU
# (clean + noisy branches are fused along the padded batch axis by the wrapper)
# ---------------------------------------------------------------------------
def _fused_forward_kernel(*args, n_layers, n_seq, T, TC, Hp):
    x_ref = args[0]
    w_refs = args[1:1 + 3 * n_layers]
    w_out_ref = args[1 + 3 * n_layers]
    b_out_ref = args[2 + 3 * n_layers]
    out_ref = args[3 + 3 * n_layers]
    scratch = args[4 + 3 * n_layers:]
    pre_ref = scratch[0]                      # (TC, Bp, 4Hp) f32
    seq_refs = scratch[1:1 + n_seq]           # each (T, Bp, Hp) bf16

    Bp = x_ref.shape[1]

    def run_lstm_layer(in_ref, in_dim, w_ih_ref, w_hh_ref, b_ref, out_seq_ref):
        w_ih = w_ih_ref[...]                  # (in_dim, 4Hp) bf16, VMEM resident
        w_hh = w_hh_ref[...]                  # (Hp, 4Hp)    bf16, VMEM resident
        bias = b_ref[...]                     # (1, 4Hp)     f32
        # TODO(synk): pin W_hh in MXU weight registers across the T-step loop via
        # pltpu.matmul_push_rhs / matmul_acc_lhs; omitted here for portability.

        h = jnp.zeros((Bp, Hp), jnp.float32)
        c = jnp.zeros((Bp, Hp), jnp.float32)

        for start in range(0, T, TC):
            n = min(TC, T - start)
            # Hoisted, time-chunked input projection: one (n*Bp, in_dim) matmul per
            # chunk (bias folded in); only h @ W_hh stays on the recurrent chain.
            chunk = in_ref[pl.ds(start, n)].astype(jnp.bfloat16)
            pre = jnp.dot(chunk.reshape(n * Bp, in_dim), w_ih,
                          preferred_element_type=jnp.float32) + bias
            pre_ref[pl.ds(0, n)] = pre.reshape(n, Bp, 4 * Hp)

            def step(t, carry, _start=start):
                h_t, c_t = carry
                gates = pre_ref[t] + jnp.dot(h_t.astype(jnp.bfloat16), w_hh,
                                             preferred_element_type=jnp.float32)
                # gate order (i, f, o, g): one contiguous sigmoid + one tanh
                ifo = jax.nn.sigmoid(gates[:, 0:3 * Hp])
                i_g = ifo[:, 0 * Hp:1 * Hp]
                f_g = ifo[:, 1 * Hp:2 * Hp]
                o_g = ifo[:, 2 * Hp:3 * Hp]
                g_g = jnp.tanh(gates[:, 3 * Hp:4 * Hp])
                c_new = f_g * c_t + i_g * g_g
                h_new = o_g * jnp.tanh(c_new)
                if out_seq_ref is not None:
                    out_seq_ref[_start + t] = h_new.astype(out_seq_ref.dtype)
                return (h_new, c_new)

            # partial unroll: enough to hide one step's MXU/EUP latency without
            # blowing up code size / vreg live ranges for large T
            h, c = lax.fori_loop(0, n, step, (h, c), unroll=min(n, 8))
        return h

    in_ref, in_dim = x_ref, x_ref.shape[2]
    h_last = None
    for l in range(n_layers):
        w_ih_ref, w_hh_ref, b_ref = w_refs[3 * l:3 * l + 3]
        out_seq_ref = seq_refs[l % n_seq] if l < n_layers - 1 else None
        h_last = run_lstm_layer(in_ref, in_dim, w_ih_ref, w_hh_ref, b_ref,
                                out_seq_ref)
        if out_seq_ref is not None:
            in_ref, in_dim = out_seq_ref, Hp

    # --- epilogue: Linear + ReLU on the last time step (both branches) -------
    y = jnp.dot(h_last, w_out_ref[...],
                preferred_element_type=jnp.float32) + b_out_ref[...]
    out_ref[...] = jnp.maximum(y, 0.0)


# ---------------------------------------------------------------------------
# Parameter init (deterministic, mirrors torch.nn.LSTM / Linear shapes)
# ---------------------------------------------------------------------------
def init_params(key, n_variable, node_list, n_output):
    params = {"lstm": [], "linear": None}
    in_dim = n_variable
    for hidden in node_list:
        bound = hidden ** -0.5
        key, k1, k2, k3, k4 = jax.random.split(key, 5)
        w_ih = jax.random.uniform(k1, (in_dim, 4 * hidden), jnp.float32, -bound, bound)
        w_hh = jax.random.uniform(k2, (hidden, 4 * hidden), jnp.float32, -bound, bound)
        b_ih = jax.random.uniform(k3, (4 * hidden,), jnp.float32, -bound, bound)
        b_hh = jax.random.uniform(k4, (4 * hidden,), jnp.float32, -bound, bound)
        params["lstm"].append((w_ih, w_hh, (b_ih + b_hh)[None, :], hidden))
        in_dim = hidden
    bound = node_list[-1] ** -0.5
    key, k1, k2 = jax.random.split(key, 3)
    w_out = jax.random.uniform(k1, (node_list[-1], n_output), jnp.float32, -bound, bound)
    b_out = jax.random.uniform(k2, (n_output,), jnp.float32, -bound, bound)[None, :]
    params["linear"] = (w_out, b_out)
    return params


def _pad_gate_matrix(w, rows_p, h, hp, dtype):
    """Embed a (rows, 4h) torch-order gate matrix/bias into (rows_p, 4hp),
    re-ordering gate blocks to (i, f, o, g)."""
    rows = w.shape[0]
    out = jnp.zeros((rows_p, 4 * hp), jnp.float32)
    for dst, src in enumerate(_GATE_ORDER):
        out = out.at[:rows, dst * hp:dst * hp + h].set(w[:, src * h:(src + 1) * h])
    return out.astype(dtype)


def pad_params(params, n_variable, node_list, n_output):
    Hp = max(_round_up(h, 128) for h in node_list)
    Dp = _round_up(n_variable, 128)
    Np = _round_up(n_output, 128)
    padded_lstm = []
    in_dim_p = Dp
    for (w_ih, w_hh, b, h) in params["lstm"]:
        padded_lstm.append((
            _pad_gate_matrix(w_ih, in_dim_p, h, Hp, jnp.bfloat16),  # MXU operand
            _pad_gate_matrix(w_hh, Hp, h, Hp, jnp.bfloat16),        # MXU operand
            _pad_gate_matrix(b, 1, h, Hp, jnp.float32),             # f32 bias
        ))
        in_dim_p = Hp
    w_out, b_out = params["linear"]
    w_out_p = jnp.zeros((Hp, Np), jnp.float32).at[:w_out.shape[0], :n_output].set(w_out)
    b_out_p = jnp.zeros((1, Np), jnp.float32).at[:, :n_output].set(b_out)
    return {"lstm": padded_lstm, "linear": (w_out_p, b_out_p), "dims": (Dp, Hp, Np)}


# ---------------------------------------------------------------------------
# Forward pass matching Nosiy_NN.forward (noise_type='norm')
# returns (output, noisy_output), each (B, n_output)   ((n_output,) if B == 1)
# ---------------------------------------------------------------------------
def nosiy_nn_forward(padded_params, traindata, noise, noise_scale, n_output):
    B, T, D = traindata.shape
    Dp, Hp, Np = padded_params["dims"]
    Bp = _round_up(2 * B, 8)                    # clean + noisy fused, 8-sublane pad
    n_layers = len(padded_params["lstm"])
    n_seq = min(2, n_layers - 1)                # ping-pong only when actually needed
    TC = min(T, 32)                             # pre-gate time-chunk size

    # --- build the fused branch slab in the wrapper (no in-kernel noise work) -
    # rows [0:B)  : clean input (NOT clipped)
    # rows [B:2B) : clean + scale*noise, clipped to [0, 1]
    x_tm = jnp.transpose(traindata.astype(jnp.float32), (1, 0, 2))      # (T,B,D)
    n_tm = jnp.transpose(noise.astype(jnp.float32), (1, 0, 2))
    noisy_tm = jnp.clip(x_tm + noise_scale * n_tm, 0.0, 1.0)
    x_pad = jnp.zeros((T, Bp, Dp), jnp.float32)
    x_pad = x_pad.at[:, :B, :D].set(x_tm)
    x_pad = x_pad.at[:, B:2 * B, :D].set(noisy_tm)

    flat_w = []
    for (w_ih, w_hh, b) in padded_params["lstm"]:
        flat_w += [w_ih, w_hh, b]
    w_out, b_out = padded_params["linear"]

    # --- VMEM budget: actual footprint + headroom, capped below v7x's 64 MiB ---
    footprint = (T * Bp * Dp) * 4                       # fused input slab (f32)
    for w in flat_w + [w_out, b_out]:
        footprint += int(w.size) * w.dtype.itemsize     # weights (bf16/f32)
    footprint += (TC * Bp * 4 * Hp) * 4                 # chunked pre-gates (f32)
    footprint += n_seq * (T * Bp * Hp) * 2              # hidden-seq scratch (bf16)
    footprint += (Bp * Np) * 4                          # output slab (f32)
    vmem_limit = min(max(int(footprint * 1.5) + (4 << 20), 16 << 20), 56 << 20)

    kernel = functools.partial(_fused_forward_kernel, n_layers=n_layers,
                               n_seq=n_seq, T=T, TC=TC, Hp=Hp)
    n_inputs = 1 + len(flat_w) + 2
    y = pl.pallas_call(
        kernel,
        out_shape=jax.ShapeDtypeStruct((Bp, Np), jnp.float32),
        in_specs=[_VMEM] * n_inputs,
        out_specs=_VMEM,
        scratch_shapes=[pltpu.VMEM((TC, Bp, 4 * Hp), jnp.float32)]       # pre-gates
                      + [pltpu.VMEM((T, Bp, Hp), jnp.bfloat16)] * n_seq,  # hidden seqs
        compiler_params=pltpu.CompilerParams(vmem_limit_bytes=vmem_limit),
    )(x_pad, *flat_w, w_out, b_out)

    output = y[:B, :n_output]
    noisy_output = y[B:2 * B, :n_output]
    if B == 1:
        # mimic PyTorch's .squeeze() on the last time step when batch == 1
        output, noisy_output = output[0], noisy_output[0]
    return output, noisy_output


# ---------------------------------------------------------------------------
# Pure-JAX reference (unpadded, f32) for correctness checking
# ---------------------------------------------------------------------------
def _reference_forward(params, traindata, noise, noise_scale):
    x = traindata.astype(jnp.float32)
    noisy = jnp.clip(x + noise_scale * noise.astype(jnp.float32), 0.0, 1.0)

    def lstm(seq, w_ih, w_hh, b, h):
        bsz = seq.shape[0]

        def step(carry, x_t):
            hh, cc = carry
            gates = x_t @ w_ih + hh @ w_hh + b[0]
            i, f, g, o = jnp.split(gates, 4, axis=-1)
            cc = jax.nn.sigmoid(f) * cc + jax.nn.sigmoid(i) * jnp.tanh(g)
            hh = jax.nn.sigmoid(o) * jnp.tanh(cc)
            return (hh, cc), hh

        init = (jnp.zeros((bsz, h), jnp.float32), jnp.zeros((bsz, h), jnp.float32))
        _, hs = lax.scan(step, init, jnp.transpose(seq, (1, 0, 2)))
        return jnp.transpose(hs, (1, 0, 2))

    clean, noz = x, noisy
    for (w_ih, w_hh, b, h) in params["lstm"]:
        clean = lstm(clean, w_ih, w_hh, b, h)
        noz = lstm(noz, w_ih, w_hh, b, h)
    w_out, b_out = params["linear"]
    out = jnp.maximum(clean[:, -1, :] @ w_out + b_out[0], 0.0)
    nout = jnp.maximum(noz[:, -1, :] @ w_out + b_out[0], 0.0)
    return out, nout


if __name__ == "__main__":
    key = jax.random.PRNGKey(0)
    B, T, n_variable = 2, 8, 4
    node_list = [32, 32]
    n_output = 3
    noise_scale = 0.1

    key, k_param, k_x, k_n = jax.random.split(key, 4)
    params = init_params(k_param, n_variable, node_list, n_output)
    padded = pad_params(params, n_variable, node_list, n_output)
    traindata = jax.random.uniform(k_x, (B, T, n_variable), jnp.float32)
    # torch code draws np.random.normal at runtime; here a deterministic JAX draw
    noise = jax.random.normal(k_n, (B, T, n_variable), jnp.float32)

    output, noisy_output = nosiy_nn_forward(padded, traindata, noise,
                                            noise_scale, n_output)
    jax.block_until_ready((output, noisy_output))

    assert output.shape == (B, n_output)
    assert noisy_output.shape == (B, n_output)
    assert bool(jnp.all(output >= 0.0)) and bool(jnp.all(noisy_output >= 0.0))

    ref_out, ref_nout = _reference_forward(params, traindata, noise, noise_scale)
    # bf16 MXU operands, f32 accumulation / elementwise -> ~1e-3 level error
    assert bool(jnp.allclose(output, ref_out, atol=2e-2, rtol=2e-2))
    assert bool(jnp.allclose(noisy_output, ref_nout, atol=2e-2, rtol=2e-2))

    print("KERNEL_OK")
</pallas_src>

<mosaic_0001>
module attributes {stable_mosaic.version = 11 : i64} {
  func.func @_fused_forward_kernel(%arg0: memref<8x8x128xf32, #tpu.memory_space<vmem>>, %arg1: memref<128x512xbf16, #tpu.memory_space<vmem>>, %arg2: memref<128x512xbf16, #tpu.memory_space<vmem>>, %arg3: memref<1x512xf32, #tpu.memory_space<vmem>>, %arg4: memref<128x512xbf16, #tpu.memory_space<vmem>>, %arg5: memref<128x512xbf16, #tpu.memory_space<vmem>>, %arg6: memref<1x512xf32, #tpu.memory_space<vmem>>, %arg7: memref<128x128xf32, #tpu.memory_space<vmem>>, %arg8: memref<1x128xf32, #tpu.memory_space<vmem>>, %arg9: memref<8x128xf32, #tpu.memory_space<vmem>>, %arg10: memref<8x8x512xf32, #tpu.memory_space<vmem>>, %arg11: memref<8x8x128xbf16, #tpu.memory_space<vmem>>) attributes {dimension_semantics = [], scalar_prefetch = 0 : i64, scratch_operands = 2 : i64, tpu.core_type = #tpu.core_type<tc>} {
    %c0 = arith.constant 0 : index
    %c0_0 = arith.constant 0 : index
    %0 = vector.load %arg1[%c0, %c0_0] : memref<128x512xbf16, #tpu.memory_space<vmem>>, vector<128x512xbf16>
    %c0_1 = arith.constant 0 : index
    %c0_2 = arith.constant 0 : index
    %1 = vector.load %arg2[%c0_1, %c0_2] : memref<128x512xbf16, #tpu.memory_space<vmem>>, vector<128x512xbf16>
    %c0_3 = arith.constant 0 : index
    %c0_4 = arith.constant 0 : index
    %2 = vector.load %arg3[%c0_3, %c0_4] : memref<1x512xf32, #tpu.memory_space<vmem>>, vector<1x512xf32>
    %cst = arith.constant 0.000000e+00 : f32
    %3 = vector.broadcast %cst : f32 to vector<8x128xf32>
    %cst_5 = arith.constant 0.000000e+00 : f32
    %4 = vector.broadcast %cst_5 : f32 to vector<8x128xf32>
    %c0_6 = arith.constant 0 : index
    %c0_7 = arith.constant 0 : index
    %c0_8 = arith.constant 0 : index
    %5 = vector.load %arg0[%c0_6, %c0_7, %c0_8] : memref<8x8x128xf32, #tpu.memory_space<vmem>>, vector<8x8x128xf32>
    %6 = arith.truncf %5 : vector<8x8x128xf32> to vector<8x8x128xbf16>
    %7 = vector.shape_cast %6 : vector<8x8x128xbf16> to vector<64x128xbf16>
    %cst_9 = arith.constant dense<0.000000e+00> : vector<64x512xf32>
    %8 = tpu.matmul %7, %0, %cst_9 {dimension_numbers = #tpu.dot_dimension_numbers<[1], [0], [0], [1], [0, 0, 1, 1], [], []>} : vector<64x128xbf16>, vector<128x512xbf16>, vector<64x512xf32> -> vector<64x512xf32>
    %9 = vector.broadcast %2 : vector<1x512xf32> to vector<64x512xf32>
    %10 = arith.addf %8, %9 : vector<64x512xf32>
    %11 = vector.shape_cast %10 : vector<64x512xf32> to vector<8x8x512xf32>
    %c0_10 = arith.constant 0 : index
    %c0_11 = arith.constant 0 : index
    %c0_12 = arith.constant 0 : index
    %12 = vector.load %arg10[%c0_10, %c0_11, %c0_12] : memref<8x8x512xf32, #tpu.memory_space<vmem>>, vector<8x8x512xf32>
    tpu.vector_store %arg10[%c0_10, %c0_11, %c0_12], %11 {strides = array<i32>} : memref<8x8x512xf32, #tpu.memory_space<vmem>>, vector<8x8x512xf32>,
    %c0_i32 = arith.constant 0 : i32
    %13 = arith.index_cast %c0_i32 : i32 to index
    %c0_13 = arith.constant 0 : index
    %c0_14 = arith.constant 0 : index
    %14 = vector.load %arg10[%13, %c0_13, %c0_14] : memref<8x8x512xf32, #tpu.memory_space<vmem>>, vector<1x8x512xf32>
    %15 = vector.shape_cast %14 : vector<1x8x512xf32> to vector<8x512xf32>
    %16 = arith.truncf %3 : vector<8x128xf32> to vector<8x128xbf16>
    %cst_15 = arith.constant dense<0.000000e+00> : vector<8x512xf32>
    %17 = tpu.matmul %16, %1, %cst_15 {dimension_numbers = #tpu.dot_dimension_numbers<[1], [0], [0], [1], [0, 0, 1, 1], [], []>} : vector<8x128xbf16>, vector<128x512xbf16>, vector<8x512xf32> -> vector<8x512xf32>
    %18 = arith.addf %15, %17 : vector<8x512xf32>
    %19 = vector.extract_strided_slice %18 {offsets = [0, 0], sizes = [8, 384], strides = [1, 1]} : vector<8x512xf32> to vector<8x384xf32>
    %20 = arith.negf %19 : vector<8x384xf32>
    %21 = math.exp %20 : vector<8x384xf32>
    %cst_16 = arith.constant 1.000000e+00 : f32
    %22 = vector.broadcast %cst_16 : f32 to vector<8x384xf32>
    %23 = arith.addf %22, %21 : vector<8x384xf32>
    %24 = arith.divf %22, %23 : vector<8x384xf32>
    %25 = vector.extract_strided_slice %24 {offsets = [0, 0], sizes = [8, 128], strides = [1, 1]} : vector<8x384xf32> to vector<8x128xf32>
    %26 = vector.extract_strided_slice %24 {offsets = [0, 128], sizes = [8, 128], strides = [1, 1]} : vector<8x384xf32> to vector<8x128xf32>
    %27 = vector.extract_strided_slice %24 {offsets = [0, 256], sizes = [8, 128], strides = [1, 1]} : vector<8x384xf32> to vector<8x128xf32>
    %28 = vector.extract_strided_slice %18 {offsets = [0, 384], sizes = [8, 128], strides = [1, 1]} : vector<8x512xf32> to vector<8x128xf32>
    %29 = math.tanh %28 : vector<8x128xf32>
    %30 = arith.mulf %26, %4 : vector<8x128xf32>
    %31 = arith.mulf %25, %29 : vector<8x128xf32>
    %32 = arith.addf %30, %31 : vector<8x128xf32>
    %33 = math.tanh %32 : vector<8x128xf32>
    %34 = arith.mulf %27, %33 : vector<8x128xf32>
    %35 = arith.truncf %34 : vector<8x128xf32> to vector<8x128xbf16>
    %c0_i32_17 = arith.constant 0 : i32
    %36 = arith.addi %c0_i32_17, %c0_i32 : i32
    %37 = arith.index_cast %36 : i32 to index
    %c0_18 = arith.constant 0 : index
    %c0_19 = arith.constant 0 : index
    %38 = vector.load %arg11[%37, %c0_18, %c0_19] : memref<8x8x128xbf16, #tpu.memory_space<vmem>>, vector<1x8x128xbf16>
    %39 = vector.shape_cast %38 : vector<1x8x128xbf16> to vector<8x128xbf16>
    %40 = vector.shape_cast %35 : vector<8x128xbf16> to vector<1x8x128xbf16>
    tpu.vector_store %arg11[%37, %c0_18, %c0_19], %40 {strides = array<i32>} : memref<8x8x128xbf16, #tpu.memory_space<vmem>>, vector<1x8x128xbf16>,
    %c1_i32 = arith.constant 1 : i32
    %41 = arith.index_cast %c1_i32 : i32 to index
    %c0_20 = arith.constant 0 : index
    %c0_21 = arith.constant 0 : index
    %42 = vector.load %arg10[%41, %c0_20, %c0_21] : memref<8x8x512xf32, #tpu.memory_space<vmem>>, vector<1x8x512xf32>
    %43 = vector.shape_cast %42 : vector<1x8x512xf32> to vector<8x512xf32>
    %44 = arith.truncf %34 : vector<8x128xf32> to vector<8x128xbf16>
    %cst_22 = arith.constant dense<0.000000e+00> : vector<8x512xf32>
    %45 = tpu.matmul %44, %1, %cst_22 {dimension_numbers = #tpu.dot_dimension_numbers<[1], [0], [0], [1], [0, 0, 1, 1], [], []>} : vector<8x128xbf16>, vector<128x512xbf16>, vector<8x512xf32> -> vector<8x512xf32>
    %46 = arith.addf %43, %45 : vector<8x512xf32>
    %47 = vector.extract_strided_slice %46 {offsets = [0, 0], sizes = [8, 384], strides = [1, 1]} : vector<8x512xf32> to vector<8x384xf32>
    %48 = arith.negf %47 : vector<8x384xf32>
    %49 = math.exp %48 : vector<8x384xf32>
    %cst_23 = arith.constant 1.000000e+00 : f32
    %50 = vector.broadcast %cst_23 : f32 to vector<8x384xf32>
    %51 = arith.addf %50, %49 : vector<8x384xf32>
    %52 = arith.divf %50, %51 : vector<8x384xf32>
    %53 = vector.extract_strided_slice %52 {offsets = [0, 0], sizes = [8, 128], strides = [1, 1]} : vector<8x384xf32> to vector<8x128xf32>
    %54 = vector.extract_strided_slice %52 {offsets = [0, 128], sizes = [8, 128], strides = [1, 1]} : vector<8x384xf32> to vector<8x128xf32>
    %55 = vector.extract_strided_slice %52 {offsets = [0, 256], sizes = [8, 128], strides = [1, 1]} : vector<8x384xf32> to vector<8x128xf32>
    %56 = vector.extract_strided_slice %46 {offsets = [0, 384], sizes = [8, 128], strides = [1, 1]} : vector<8x512xf32> to vector<8x128xf32>
    %57 = math.tanh %56 : vector<8x128xf32>
    %58 = arith.mulf %54, %32 : vector<8x128xf32>
    %59 = arith.mulf %53, %57 : vector<8x128xf32>
    %60 = arith.addf %58, %59 : vector<8x128xf32>
    %61 = math.tanh %60 : vector<8x128xf32>
    %62 = arith.mulf %55, %61 : vector<8x128xf32>
    %63 = arith.truncf %62 : vector<8x128xf32> to vector<8x128xbf16>
    %c0_i32_24 = arith.constant 0 : i32
    %64 = arith.addi %c0_i32_24, %c1_i32 : i32
    %65 = arith.index_cast %64 : i32 to index
    %c0_25 = arith.constant 0 : index
    %c0_26 = arith.constant 0 : index
    %66 = vector.load %arg11[%65, %c0_25, %c0_26] : memref<8x8x128xbf16, #tpu.memory_space<vmem>>, vector<1x8x128xbf16>
    %67 = vector.shape_cast %66 : vector<1x8x128xbf16> to vector<8x128xbf16>
    %68 = vector.shape_cast %63 : vector<8x128xbf16> to vector<1x8x128xbf16>
    tpu.vector_store %arg11[%65, %c0_25, %c0_26], %68 {strides = array<i32>} : memref<8x8x128xbf16, #tpu.memory_space<vmem>>, vector<1x8x128xbf16>,
    %c2_i32 = arith.constant 2 : i32
    %69 = arith.index_cast %c2_i32 : i32 to index
    %c0_27 = arith.constant 0 : index
    %c0_28 = arith.constant 0 : index
    %70 = vector.load %arg10[%69, %c0_27, %c0_28] : memref<8x8x512xf32, #tpu.memory_space<vmem>>, vector<1x8x512xf32>
    %71 = vector.shape_cast %70 : vector<1x8x512xf32> to vector<8x512xf32>
    %72 = arith.truncf %62 : vector<8x128xf32> to vector<8x128xbf16>
    %cst_29 = arith.constant dense<0.000000e+00> : vector<8x512xf32>
    %73 = tpu.matmul %72, %1, %cst_29 {dimension_numbers = #tpu.dot_dimension_numbers<[1], [0], [0], [1], [0, 0, 1, 1], [], []>} : vector<8x128xbf16>, vector<128x512xbf16>, vector<8x512xf32> -> vector<8x512xf32>
    %74 = arith.addf %71, %73 : vector<8x512xf32>
    %75 = vector.extract_strided_slice %74 {offsets = [0, 0], sizes = [8, 384], strides = [1, 1]} : vector<8x512xf32> to vector<8x384xf32>
    %76 = arith.negf %75 : vector<8x384xf32>
    %77 = math.exp %76 : vector<8x384xf32>
    %cst_30 = arith.constant 1.000000e+00 : f32
    %78 = vector.broadcast %cst_30 : f32 to vector<8x384xf32>
    %79 = arith.addf %78, %77 : vector<8x384xf32>
    %80 = arith.divf %78, %79 : vector<8x384xf32>
    %81 = vector.extract_strided_slice %80 {offsets = [0, 0], sizes = [8, 128], strides = [1, 1]} : vector<8x384xf32> to vector<8x128xf32>
    %82 = vector.extract_strided_slice %80 {offsets = [0, 128], sizes = [8, 128], strides = [1, 1]} : vector<8x384xf32> to vector<8x128xf32>
    %83 = vector.extract_strided_slice %80 {offsets = [0, 256], sizes = [8, 128], strides = [1, 1]} : vector<8x384xf32> to vector<8x128xf32>
    %84 = vector.extract_strided_slice %74 {offsets = [0, 384], sizes = [8, 128], strides = [1, 1]} : vector<8x512xf32> to vector<8x128xf32>
    %85 = math.tanh %84 : vector<8x128xf32>
    %86 = arith.mulf %82, %60 : vector<8x128xf32>
    %87 = arith.mulf %81, %85 : vector<8x128xf32>
    %88 = arith.addf %86, %87 : vector<8x128xf32>
    %89 = math.tanh %88 : vector<8x128xf32>
    %90 = arith.mulf %83, %89 : vector<8x128xf32>
    %91 = arith.truncf %90 : vector<8x128xf32> to vector<8x128xbf16>
    %c0_i32_31 = arith.constant 0 : i32
    %92 = arith.addi %c0_i32_31, %c2_i32 : i32
    %93 = arith.index_cast %92 : i32 to index
    %c0_32 = arith.constant 0 : index
    %c0_33 = arith.constant 0 : index
    %94 = vector.load %arg11[%93, %c0_32, %c0_33] : memref<8x8x128xbf16, #tpu.memory_space<vmem>>, vector<1x8x128xbf16>
    %95 = vector.shape_cast %94 : vector<1x8x128xbf16> to vector<8x128xbf16>
    %96 = vector.shape_cast %91 : vector<8x128xbf16> to vector<1x8x128xbf16>
    tpu.vector_store %arg11[%93, %c0_32, %c0_33], %96 {strides = array<i32>} : memref<8x8x128xbf16, #tpu.memory_space<vmem>>, vector<1x8x128xbf16>,
    %c3_i32 = arith.constant 3 : i32
    %97 = arith.index_cast %c3_i32 : i32 to index
    %c0_34 = arith.constant 0 : index
    %c0_35 = arith.constant 0 : index
    %98 = vector.load %arg10[%97, %c0_34, %c0_35] : memref<8x8x512xf32, #tpu.memory_space<vmem>>, vector<1x8x512xf32>
    %99 = vector.shape_cast %98 : vector<1x8x512xf32> to vector<8x512xf32>
    %100 = arith.truncf %90 : vector<8x128xf32> to vector<8x128xbf16>
    %cst_36 = arith.constant dense<0.000000e+00> : vector<8x512xf32>
    %101 = tpu.matmul %100, %1, %cst_36 {dimension_numbers = #tpu.dot_dimension_numbers<[1], [0], [0], [1], [0, 0, 1, 1], [], []>} : vector<8x128xbf16>, vector<128x512xbf16>, vector<8x512xf32> -> vector<8x512xf32>
    %102 = arith.addf %99, %101 : vector<8x512xf32>
    %103 = vector.extract_strided_slice %102 {offsets = [0, 0], sizes = [8, 384], strides = [1, 1]} : vector<8x512xf32> to vector<8x384xf32>
    %104 = arith.negf %103 : vector<8x384xf32>
    %105 = math.exp %104 : vector<8x384xf32>
    %cst_37 = arith.constant 1.000000e+00 : f32
    %106 = vector.broadcast %cst_37 : f32 to vector<8x384xf32>
    %107 = arith.addf %106, %105 : vector<8x384xf32>
    %108 = arith.divf %106, %107 : vector<8x384xf32>
    %109 = vector.extract_strided_slice %108 {offsets = [0, 0], sizes = [8, 128], strides = [1, 1]} : vector<8x384xf32> to vector<8x128xf32>
    %110 = vector.extract_strided_slice %108 {offsets = [0, 128], sizes = [8, 128], strides = [1, 1]} : vector<8x384xf32> to vector<8x128xf32>
    %111 = vector.extract_strided_slice %108 {offsets = [0, 256], sizes = [8, 128], strides = [1, 1]} : vector<8x384xf32> to vector<8x128xf32>
    %112 = vector.extract_strided_slice %102 {offsets = [0, 384], sizes = [8, 128], strides = [1, 1]} : vector<8x512xf32> to vector<8x128xf32>
    %113 = math.tanh %112 : vector<8x128xf32>
    %114 = arith.mulf %110, %88 : vector<8x128xf32>
    %115 = arith.mulf %109, %113 : vector<8x128xf32>
    %116 = arith.addf %114, %115 : vector<8x128xf32>
    %117 = math.tanh %116 : vector<8x128xf32>
    %118 = arith.mulf %111, %117 : vector<8x128xf32>
    %119 = arith.truncf %118 : vector<8x128xf32> to vector<8x128xbf16>
    %c0_i32_38 = arith.constant 0 : i32
    %120 = arith.addi %c0_i32_38, %c3_i32 : i32
    %121 = arith.index_cast %120 : i32 to index
    %c0_39 = arith.constant 0 : index
    %c0_40 = arith.constant 0 : index
    %122 = vector.load %arg11[%121, %c0_39, %c0_40] : memref<8x8x128xbf16, #tpu.memory_space<vmem>>, vector<1x8x128xbf16>
    %123 = vector.shape_cast %122 : vector<1x8x128xbf16> to vector<8x128xbf16>
    %124 = vector.shape_cast %119 : vector<8x128xbf16> to vector<1x8x128xbf16>
    tpu.vector_store %arg11[%121, %c0_39, %c0_40], %124 {strides = array<i32>} : memref<8x8x128xbf16, #tpu.memory_space<vmem>>, vector<1x8x128xbf16>,
    %c4_i32 = arith.constant 4 : i32
    %125 = arith.index_cast %c4_i32 : i32 to index
    %c0_41 = arith.constant 0 : index
    %c0_42 = arith.constant 0 : index
    %126 = vector.load %arg10[%125, %c0_41, %c0_42] : memref<8x8x512xf32, #tpu.memory_space<vmem>>, vector<1x8x512xf32>
    %127 = vector.shape_cast %126 : vector<1x8x512xf32> to vector<8x512xf32>
    %128 = arith.truncf %118 : vector<8x128xf32> to vector<8x128xbf16>
    %cst_43 = arith.constant dense<0.000000e+00> : vector<8x512xf32>
    %129 = tpu.matmul %128, %1, %cst_43 {dimension_numbers = #tpu.dot_dimension_numbers<[1], [0], [0], [1], [0, 0, 1, 1], [], []>} : vector<8x128xbf16>, vector<128x512xbf16>, vector<8x512xf32> -> vector<8x512xf32>
    %130 = arith.addf %127, %129 : vector<8x512xf32>
    %131 = vector.extract_strided_slice %130 {offsets = [0, 0], sizes = [8, 384], strides = [1, 1]} : vector<8x512xf32> to vector<8x384xf32>
    %132 = arith.negf %131 : vector<8x384xf32>
    %133 = math.exp %132 : vector<8x384xf32>
    %cst_44 = arith.constant 1.000000e+00 : f32
    %134 = vector.broadcast %cst_44 : f32 to vector<8x384xf32>
    %135 = arith.addf %134, %133 : vector<8x384xf32>
    %136 = arith.divf %134, %135 : vector<8x384xf32>
    %137 = vector.extract_strided_slice %136 {offsets = [0, 0], sizes = [8, 128], strides = [1, 1]} : vector<8x384xf32> to vector<8x128xf32>
    %138 = vector.extract_strided_slice %136 {offsets = [0, 128], sizes = [8, 128], strides = [1, 1]} : vector<8x384xf32> to vector<8x128xf32>
    %139 = vector.extract_strided_slice %136 {offsets = [0, 256], sizes = [8, 128], strides = [1, 1]} : vector<8x384xf32> to vector<8x128xf32>
    %140 = vector.extract_strided_slice %130 {offsets = [0, 384], sizes = [8, 128], strides = [1, 1]} : vector<8x512xf32> to vector<8x128xf32>
    %141 = math.tanh %140 : vector<8x128xf32>
    %142 = arith.mulf %138, %116 : vector<8x128xf32>
    %143 = arith.mulf %137, %141 : vector<8x128xf32>
    %144 = arith.addf %142, %143 : vector<8x128xf32>
    %145 = math.tanh %144 : vector<8x128xf32>
    %146 = arith.mulf %139, %145 : vector<8x128xf32>
    %147 = arith.truncf %146 : vector<8x128xf32> to vector<8x128xbf16>
    %c0_i32_45 = arith.constant 0 : i32
    %148 = arith.addi %c0_i32_45, %c4_i32 : i32
    %149 = arith.index_cast %148 : i32 to index
    %c0_46 = arith.constant 0 : index
    %c0_47 = arith.constant 0 : index
    %150 = vector.load %arg11[%149, %c0_46, %c0_47] : memref<8x8x128xbf16, #tpu.memory_space<vmem>>, vector<1x8x128xbf16>
    %151 = vector.shape_cast %150 : vector<1x8x128xbf16> to vector<8x128xbf16>
    %152 = vector.shape_cast %147 : vector<8x128xbf16> to vector<1x8x128xbf16>
    tpu.vector_store %arg11[%149, %c0_46, %c0_47], %152 {strides = array<i32>} : memref<8x8x128xbf16, #tpu.memory_space<vmem>>, vector<1x8x128xbf16>,
    %c5_i32 = arith.constant 5 : i32
    %153 = arith.index_cast %c5_i32 : i32 to index
    %c0_48 = arith.constant 0 : index
    %c0_49 = arith.constant 0 : index
    %154 = vector.load %arg10[%153, %c0_48, %c0_49] : memref<8x8x512xf32, #tpu.memory_space<vmem>>, vector<1x8x512xf32>
    %155 = vector.shape_cast %154 : vector<1x8x512xf32> to vector<8x512xf32>
    %156 = arith.truncf %146 : vector<8x128xf32> to vector<8x128xbf16>
    %cst_50 = arith.constant dense<0.000000e+00> : vector<8x512xf32>
    %157 = tpu.matmul %156, %1, %cst_50 {dimension_numbers = #tpu.dot_dimension_numbers<[1], [0], [0], [1], [0, 0, 1, 1], [], []>} : vector<8x128xbf16>, vector<128x512xbf16>, vector<8x512xf32> -> vector<8x512xf32>
    %158 = arith.addf %155, %157 : vector<8x512xf32>
    %159 = vector.extract_strided_slice %158 {offsets = [0, 0], sizes = [8, 384], strides = [1, 1]} : vector<8x512xf32> to vector<8x384xf32>
    %160 = arith.negf %159 : vector<8x384xf32>
    %161 = math.exp %160 : vector<8x384xf32>
    %cst_51 = arith.constant 1.000000e+00 : f32
    %162 = vector.broadcast %cst_51 : f32 to vector<8x384xf32>
    %163 = arith.addf %162, %161 : vector<8x384xf32>
    %164 = arith.divf %162, %163 : vector<8x384xf32>
    %165 = vector.extract_strided_slice %164 {offsets = [0, 0], sizes = [8, 128], strides = [1, 1]} : vector<8x384xf32> to vector<8x128xf32>
    %166 = vector.extract_strided_slice %164 {offsets = [0, 128], sizes = [8, 128], strides = [1, 1]} : vector<8x384xf32> to vector<8x128xf32>
    %167 = vector.extract_strided_slice %164 {offsets = [0, 256], sizes = [8, 128], strides = [1, 1]} : vector<8x384xf32> to vector<8x128xf32>
    %168 = vector.extract_strided_slice %158 {offsets = [0, 384], sizes = [8, 128], strides = [1, 1]} : vector<8x512xf32> to vector<8x128xf32>
    %169 = math.tanh %168 : vector<8x128xf32>
    %170 = arith.mulf %166, %144 : vector<8x128xf32>
    %171 = arith.mulf %165, %169 : vector<8x128xf32>
    %172 = arith.addf %170, %171 : vector<8x128xf32>
    %173 = math.tanh %172 : vector<8x128xf32>
    %174 = arith.mulf %167, %173 : vector<8x128xf32>
    %175 = arith.truncf %174 : vector<8x128xf32> to vector<8x128xbf16>
    %c0_i32_52 = arith.constant 0 : i32
    %176 = arith.addi %c0_i32_52, %c5_i32 : i32
    %177 = arith.index_cast %176 : i32 to index
    %c0_53 = arith.constant 0 : index
    %c0_54 = arith.constant 0 : index
    %178 = vector.load %arg11[%177, %c0_53, %c0_54] : memref<8x8x128xbf16, #tpu.memory_space<vmem>>, vector<1x8x128xbf16>
    %179 = vector.shape_cast %178 : vector<1x8x128xbf16> to vector<8x128xbf16>
    %180 = vector.shape_cast %175 : vector<8x128xbf16> to vector<1x8x128xbf16>
    tpu.vector_store %arg11[%177, %c0_53, %c0_54], %180 {strides = array<i32>} : memref<8x8x128xbf16, #tpu.memory_space<vmem>>, vector<1x8x128xbf16>,
    %c6_i32 = arith.constant 6 : i32
    %181 = arith.index_cast %c6_i32 : i32 to index
    %c0_55 = arith.constant 0 : index
    %c0_56 = arith.constant 0 : index
    %182 = vector.load %arg10[%181, %c0_55, %c0_56] : memref<8x8x512xf32, #tpu.memory_space<vmem>>, vector<1x8x512xf32>
    %183 = vector.shape_cast %182 : vector<1x8x512xf32> to vector<8x512xf32>
    %184 = arith.truncf %174 : vector<8x128xf32> to vector<8x128xbf16>
    %cst_57 = arith.constant dense<0.000000e+00> : vector<8x512xf32>
    %185 = tpu.matmul %184, %1, %cst_57 {dimension_numbers = #tpu.dot_dimension_numbers<[1], [0], [0], [1], [0, 0, 1, 1], [], []>} : vector<8x128xbf16>, vector<128x512xbf16>, vector<8x512xf32> -> vector<8x512xf32>
    %186 = arith.addf %183, %185 : vector<8x512xf32>
    %187 = vector.extract_strided_slice %186 {offsets = [0, 0], sizes = [8, 384], strides = [1, 1]} : vector<8x512xf32> to vector<8x384xf32>
    %188 = arith.negf %187 : vector<8x384xf32>
    %189 = math.exp %188 : vector<8x384xf32>
    %cst_58 = arith.constant 1.000000e+00 : f32
    %190 = vector.broadcast %cst_58 : f32 to vector<8x384xf32>
    %191 = arith.addf %190, %189 : vector<8x384xf32>
    %192 = arith.divf %190, %191 : vector<8x384xf32>
    %193 = vector.extract_strided_slice %192 {offsets = [0, 0], sizes = [8, 128], strides = [1, 1]} : vector<8x384xf32> to vector<8x128xf32>
    %194 = vector.extract_strided_slice %192 {offsets = [0, 128], sizes = [8, 128], strides = [1, 1]} : vector<8x384xf32> to vector<8x128xf32>
    %195 = vector.extract_strided_slice %192 {offsets = [0, 256], sizes = [8, 128], strides = [1, 1]} : vector<8x384xf32> to vector<8x128xf32>
    %196 = vector.extract_strided_slice %186 {offsets = [0, 384], sizes = [8, 128], strides = [1, 1]} : vector<8x512xf32> to vector<8x128xf32>
    %197 = math.tanh %196 : vector<8x128xf32>
    %198 = arith.mulf %194, %172 : vector<8x128xf32>
    %199 = arith.mulf %193, %197 : vector<8x128xf32>
    %200 = arith.addf %198, %199 : vector<8x128xf32>
    %201 = math.tanh %200 : vector<8x128xf32>
    %202 = arith.mulf %195, %201 : vector<8x128xf32>
    %203 = arith.truncf %202 : vector<8x128xf32> to vector<8x128xbf16>
    %c0_i32_59 = arith.constant 0 : i32
    %204 = arith.addi %c0_i32_59, %c6_i32 : i32
    %205 = arith.index_cast %204 : i32 to index
    %c0_60 = arith.constant 0 : index
    %c0_61 = arith.constant 0 : index
    %206 = vector.load %arg11[%205, %c0_60, %c0_61] : memref<8x8x128xbf16, #tpu.memory_space<vmem>>, vector<1x8x128xbf16>
    %207 = vector.shape_cast %206 : vector<1x8x128xbf16> to vector<8x128xbf16>
    %208 = vector.shape_cast %203 : vector<8x128xbf16> to vector<1x8x128xbf16>
    tpu.vector_store %arg11[%205, %c0_60, %c0_61], %208 {strides = array<i32>} : memref<8x8x128xbf16, #tpu.memory_space<vmem>>, vector<1x8x128xbf16>,
    %c7_i32 = arith.constant 7 : i32
    %209 = arith.index_cast %c7_i32 : i32 to index
    %c0_62 = arith.constant 0 : index
    %c0_63 = arith.constant 0 : index
    %210 = vector.load %arg10[%209, %c0_62, %c0_63] : memref<8x8x512xf32, #tpu.memory_space<vmem>>, vector<1x8x512xf32>
    %211 = vector.shape_cast %210 : vector<1x8x512xf32> to vector<8x512xf32>
    %212 = arith.truncf %202 : vector<8x128xf32> to vector<8x128xbf16>
    %cst_64 = arith.constant dense<0.000000e+00> : vector<8x512xf32>
    %213 = tpu.matmul %212, %1, %cst_64 {dimension_numbers = #tpu.dot_dimension_numbers<[1], [0], [0], [1], [0, 0, 1, 1], [], []>} : vector<8x128xbf16>, vector<128x512xbf16>, vector<8x512xf32> -> vector<8x512xf32>
    %214 = arith.addf %211, %213 : vector<8x512xf32>
    %215 = vector.extract_strided_slice %214 {offsets = [0, 0], sizes = [8, 384], strides = [1, 1]} : vector<8x512xf32> to vector<8x384xf32>
    %216 = arith.negf %215 : vector<8x384xf32>
    %217 = math.exp %216 : vector<8x384xf32>
    %cst_65 = arith.constant 1.000000e+00 : f32
    %218 = vector.broadcast %cst_65 : f32 to vector<8x384xf32>
    %219 = arith.addf %218, %217 : vector<8x384xf32>
    %220 = arith.divf %218, %219 : vector<8x384xf32>
    %221 = vector.extract_strided_slice %220 {offsets = [0, 0], sizes = [8, 128], strides = [1, 1]} : vector<8x384xf32> to vector<8x128xf32>
    %222 = vector.extract_strided_slice %220 {offsets = [0, 128], sizes = [8, 128], strides = [1, 1]} : vector<8x384xf32> to vector<8x128xf32>
    %223 = vector.extract_strided_slice %220 {offsets = [0, 256], sizes = [8, 128], strides = [1, 1]} : vector<8x384xf32> to vector<8x128xf32>
    %224 = vector.extract_strided_slice %214 {offsets = [0, 384], sizes = [8, 128], strides = [1, 1]} : vector<8x512xf32> to vector<8x128xf32>
    %225 = math.tanh %224 : vector<8x128xf32>
    %226 = arith.mulf %222, %200 : vector<8x128xf32>
    %227 = arith.mulf %221, %225 : vector<8x128xf32>
    %228 = arith.addf %226, %227 : vector<8x128xf32>
    %229 = math.tanh %228 : vector<8x128xf32>
    %230 = arith.mulf %223, %229 : vector<8x128xf32>
    %231 = arith.truncf %230 : vector<8x128xf32> to vector<8x128xbf16>
    %c0_i32_66 = arith.constant 0 : i32
    %232 = arith.addi %c0_i32_66, %c7_i32 : i32
    %233 = arith.index_cast %232 : i32 to index
    %c0_67 = arith.constant 0 : index
    %c0_68 = arith.constant 0 : index
    %234 = vector.load %arg11[%233, %c0_67, %c0_68] : memref<8x8x128xbf16, #tpu.memory_space<vmem>>, vector<1x8x128xbf16>
    %235 = vector.shape_cast %234 : vector<1x8x128xbf16> to vector<8x128xbf16>
    %236 = vector.shape_cast %231 : vector<8x128xbf16> to vector<1x8x128xbf16>
    tpu.vector_store %arg11[%233, %c0_67, %c0_68], %236 {strides = array<i32>} : memref<8x8x128xbf16, #tpu.memory_space<vmem>>, vector<1x8x128xbf16>,
    %c8_i32 = arith.constant 8 : i32
    %c0_69 = arith.constant 0 : index
    %c0_70 = arith.constant 0 : index
    %237 = vector.load %arg4[%c0_69, %c0_70] : memref<128x512xbf16, #tpu.memory_space<vmem>>, vector<128x512xbf16>
    %c0_71 = arith.constant 0 : index
    %c0_72 = arith.constant 0 : index
    %238 = vector.load %arg5[%c0_71, %c0_72] : memref<128x512xbf16, #tpu.memory_space<vmem>>, vector<128x512xbf16>
    %c0_73 = arith.constant 0 : index
    %c0_74 = arith.constant 0 : index
    %239 = vector.load %arg6[%c0_73, %c0_74] : memref<1x512xf32, #tpu.memory_space<vmem>>, vector<1x512xf32>
    %cst_75 = arith.constant 0.000000e+00 : f32
    %240 = vector.broadcast %cst_75 : f32 to vector<8x128xf32>
    %cst_76 = arith.constant 0.000000e+00 : f32
    %241 = vector.broadcast %cst_76 : f32 to vector<8x128xf32>
    %c0_77 = arith.constant 0 : index
    %c0_78 = arith.constant 0 : index
    %c0_79 = arith.constant 0 : index
    %242 = vector.load %arg11[%c0_77, %c0_78, %c0_79] : memref<8x8x128xbf16, #tpu.memory_space<vmem>>, vector<8x8x128xbf16>
    %243 = vector.shape_cast %242 : vector<8x8x128xbf16> to vector<64x128xbf16>
    %cst_80 = arith.constant dense<0.000000e+00> : vector<64x512xf32>
    %244 = tpu.matmul %243, %237, %cst_80 {dimension_numbers = #tpu.dot_dimension_numbers<[1], [0], [0], [1], [0, 0, 1, 1], [], []>} : vector<64x128xbf16>, vector<128x512xbf16>, vector<64x512xf32> -> vector<64x512xf32>
    %245 = vector.broadcast %239 : vector<1x512xf32> to vector<64x512xf32>
    %246 = arith.addf %244, %245 : vector<64x512xf32>
    %247 = vector.shape_cast %246 : vector<64x512xf32> to vector<8x8x512xf32>
    %c0_81 = arith.constant 0 : index
    %c0_82 = arith.constant 0 : index
    %c0_83 = arith.constant 0 : index
    %248 = vector.load %arg10[%c0_81, %c0_82, %c0_83] : memref<8x8x512xf32, #tpu.memory_space<vmem>>, vector<8x8x512xf32>
    tpu.vector_store %arg10[%c0_81, %c0_82, %c0_83], %247 {strides = array<i32>} : memref<8x8x512xf32, #tpu.memory_space<vmem>>, vector<8x8x512xf32>,
    %c0_i32_84 = arith.constant 0 : i32
    %249 = arith.index_cast %c0_i32_84 : i32 to index
    %c0_85 = arith.constant 0 : index
    %c0_86 = arith.constant 0 : index
    %250 = vector.load %arg10[%249, %c0_85, %c0_86] : memref<8x8x512xf32, #tpu.memory_space<vmem>>, vector<1x8x512xf32>
    %251 = vector.shape_cast %250 : vector<1x8x512xf32> to vector<8x512xf32>
    %252 = arith.truncf %240 : vector<8x128xf32> to vector<8x128xbf16>
    %cst_87 = arith.constant dense<0.000000e+00> : vector<8x512xf32>
    %253 = tpu.matmul %252, %238, %cst_87 {dimension_numbers = #tpu.dot_dimension_numbers<[1], [0], [0], [1], [0, 0, 1, 1], [], []>} : vector<8x128xbf16>, vector<128x512xbf16>, vector<8x512xf32> -> vector<8x512xf32>
    %254 = arith.addf %251, %253 : vector<8x512xf32>
    %255 = vector.extract_strided_slice %254 {offsets = [0, 0], sizes = [8, 384], strides = [1, 1]} : vector<8x512xf32> to vector<8x384xf32>
    %256 = arith.negf %255 : vector<8x384xf32>
    %257 = math.exp %256 : vector<8x384xf32>
    %cst_88 = arith.constant 1.000000e+00 : f32
    %258 = vector.broadcast %cst_88 : f32 to vector<8x384xf32>
    %259 = arith.addf %258, %257 : vector<8x384xf32>
    %260 = arith.divf %258, %259 : vector<8x384xf32>
    %261 = vector.extract_strided_slice %260 {offsets = [0, 0], sizes = [8, 128], strides = [1, 1]} : vector<8x384xf32> to vector<8x128xf32>
    %262 = vector.extract_strided_slice %260 {offsets = [0, 128], sizes = [8, 128], strides = [1, 1]} : vector<8x384xf32> to vector<8x128xf32>
    %263 = vector.extract_strided_slice %260 {offsets = [0, 256], sizes = [8, 128], strides = [1, 1]} : vector<8x384xf32> to vector<8x128xf32>
    %264 = vector.extract_strided_slice %254 {offsets = [0, 384], sizes = [8, 128], strides = [1, 1]} : vector<8x512xf32> to vector<8x128xf32>
    %265 = math.tanh %264 : vector<8x128xf32>
    %266 = arith.mulf %262, %241 : vector<8x128xf32>
    %267 = arith.mulf %261, %265 : vector<8x128xf32>
    %268 = arith.addf %266, %267 : vector<8x128xf32>
    %269 = math.tanh %268 : vector<8x128xf32>
    %270 = arith.mulf %263, %269 : vector<8x128xf32>
    %c1_i32_89 = arith.constant 1 : i32
    %271 = arith.index_cast %c1_i32_89 : i32 to index
    %c0_90 = arith.constant 0 : index
    %c0_91 = arith.constant 0 : index
    %272 = vector.load %arg10[%271, %c0_90, %c0_91] : memref<8x8x512xf32, #tpu.memory_space<vmem>>, vector<1x8x512xf32>
    %273 = vector.shape_cast %272 : vector<1x8x512xf32> to vector<8x512xf32>
    %274 = arith.truncf %270 : vector<8x128xf32> to vector<8x128xbf16>
    %cst_92 = arith.constant dense<0.000000e+00> : vector<8x512xf32>
    %275 = tpu.matmul %274, %238, %cst_92 {dimension_numbers = #tpu.dot_dimension_numbers<[1], [0], [0], [1], [0, 0, 1, 1], [], []>} : vector<8x128xbf16>, vector<128x512xbf16>, vector<8x512xf32> -> vector<8x512xf32>
    %276 = arith.addf %273, %275 : vector<8x512xf32>
    %277 = vector.extract_strided_slice %276 {offsets = [0, 0], sizes = [8, 384], strides = [1, 1]} : vector<8x512xf32> to vector<8x384xf32>
    %278 = arith.negf %277 : vector<8x384xf32>
    %279 = math.exp %278 : vector<8x384xf32>
    %cst_93 = arith.constant 1.000000e+00 : f32
    %280 = vector.broadcast %cst_93 : f32 to vector<8x384xf32>
    %281 = arith.addf %280, %279 : vector<8x384xf32>
    %282 = arith.divf %280, %281 : vector<8x384xf32>
    %283 = vector.extract_strided_slice %282 {offsets = [0, 0], sizes = [8, 128], strides = [1, 1]} : vector<8x384xf32> to vector<8x128xf32>
    %284 = vector.extract_strided_slice %282 {offsets = [0, 128], sizes = [8, 128], strides = [1, 1]} : vector<8x384xf32> to vector<8x128xf32>
    %285 = vector.extract_strided_slice %282 {offsets = [0, 256], sizes = [8, 128], strides = [1, 1]} : vector<8x384xf32> to vector<8x128xf32>
    %286 = vector.extract_strided_slice %276 {offsets = [0, 384], sizes = [8, 128], strides = [1, 1]} : vector<8x512xf32> to vector<8x128xf32>
    %287 = math.tanh %286 : vector<8x128xf32>
    %288 = arith.mulf %284, %268 : vector<8x128xf32>
    %289 = arith.mulf %283, %287 : vector<8x128xf32>
    %290 = arith.addf %288, %289 : vector<8x128xf32>
    %291 = math.tanh %290 : vector<8x128xf32>
    %292 = arith.mulf %285, %291 : vector<8x128xf32>
    %c2_i32_94 = arith.constant 2 : i32
    %293 = arith.index_cast %c2_i32_94 : i32 to index
    %c0_95 = arith.constant 0 : index
    %c0_96 = arith.constant 0 : index
    %294 = vector.load %arg10[%293, %c0_95, %c0_96] : memref<8x8x512xf32, #tpu.memory_space<vmem>>, vector<1x8x512xf32>
    %295 = vector.shape_cast %294 : vector<1x8x512xf32> to vector<8x512xf32>
    %296 = arith.truncf %292 : vector<8x128xf32> to vector<8x128xbf16>
    %cst_97 = arith.constant dense<0.000000e+00> : vector<8x512xf32>
    %297 = tpu.matmul %296, %238, %cst_97 {dimension_numbers = #tpu.dot_dimension_numbers<[1], [0], [0], [1], [0, 0, 1, 1], [], []>} : vector<8x128xbf16>, vector<128x512xbf16>, vector<8x512xf32> -> vector<8x512xf32>
    %298 = arith.addf %295, %297 : vector<8x512xf32>
    %299 = vector.extract_strided_slice %298 {offsets = [0, 0], sizes = [8, 384], strides = [1, 1]} : vector<8x512xf32> to vector<8x384xf32>
    %300 = arith.negf %299 : vector<8x384xf32>
    %301 = math.exp %300 : vector<8x384xf32>
    %cst_98 = arith.constant 1.000000e+00 : f32
    %302 = vector.broadcast %cst_98 : f32 to vector<8x384xf32>
    %303 = arith.addf %302, %301 : vector<8x384xf32>
    %304 = arith.divf %302, %303 : vector<8x384xf32>
    %305 = vector.extract_strided_slice %304 {offsets = [0, 0], sizes = [8, 128], strides = [1, 1]} : vector<8x384xf32> to vector<8x128xf32>
    %306 = vector.extract_strided_slice %304 {offsets = [0, 128], sizes = [8, 128], strides = [1, 1]} : vector<8x384xf32> to vector<8x128xf32>
    %307 = vector.extract_strided_slice %304 {offsets = [0, 256], sizes = [8, 128], strides = [1, 1]} : vector<8x384xf32> to vector<8x128xf32>
    %308 = vector.extract_strided_slice %298 {offsets = [0, 384], sizes = [8, 128], strides = [1, 1]} : vector<8x512xf32> to vector<8x128xf32>
    %309 = math.tanh %308 : vector<8x128xf32>
    %310 = arith.mulf %306, %290 : vector<8x128xf32>
    %311 = arith.mulf %305, %309 : vector<8x128xf32>
    %312 = arith.addf %310, %311 : vector<8x128xf32>
    %313 = math.tanh %312 : vector<8x128xf32>
    %314 = arith.mulf %307, %313 : vector<8x128xf32>
    %c3_i32_99 = arith.constant 3 : i32
    %315 = arith.index_cast %c3_i32_99 : i32 to index
    %c0_100 = arith.constant 0 : index
    %c0_101 = arith.constant 0 : index
    %316 = vector.load %arg10[%315, %c0_100, %c0_101] : memref<8x8x512xf32, #tpu.memory_space<vmem>>, vector<1x8x512xf32>
    %317 = vector.shape_cast %316 : vector<1x8x512xf32> to vector<8x512xf32>
    %318 = arith.truncf %314 : vector<8x128xf32> to vector<8x128xbf16>
    %cst_102 = arith.constant dense<0.000000e+00> : vector<8x512xf32>
    %319 = tpu.matmul %318, %238, %cst_102 {dimension_numbers = #tpu.dot_dimension_numbers<[1], [0], [0], [1], [0, 0, 1, 1], [], []>} : vector<8x128xbf16>, vector<128x512xbf16>, vector<8x512xf32> -> vector<8x512xf32>
    %320 = arith.addf %317, %319 : vector<8x512xf32>
    %321 = vector.extract_strided_slice %320 {offsets = [0, 0], sizes = [8, 384], strides = [1, 1]} : vector<8x512xf32> to vector<8x384xf32>
    %322 = arith.negf %321 : vector<8x384xf32>
    %323 = math.exp %322 : vector<8x384xf32>
    %cst_103 = arith.constant 1.000000e+00 : f32
    %324 = vector.broadcast %cst_103 : f32 to vector<8x384xf32>
    %325 = arith.addf %324, %323 : vector<8x384xf32>
    %326 = arith.divf %324, %325 : vector<8x384xf32>
    %327 = vector.extract_strided_slice %326 {offsets = [0, 0], sizes = [8, 128], strides = [1, 1]} : vector<8x384xf32> to vector<8x128xf32>
    %328 = vector.extract_strided_slice %326 {offsets = [0, 128], sizes = [8, 128], strides = [1, 1]} : vector<8x384xf32> to vector<8x128xf32>
    %329 = vector.extract_strided_slice %326 {offsets = [0, 256], sizes = [8, 128], strides = [1, 1]} : vector<8x384xf32> to vector<8x128xf32>
    %330 = vector.extract_strided_slice %320 {offsets = [0, 384], sizes = [8, 128], strides = [1, 1]} : vector<8x512xf32> to vector<8x128xf32>
    %331 = math.tanh %330 : vector<8x128xf32>
    %332 = arith.mulf %328, %312 : vector<8x128xf32>
    %333 = arith.mulf %327, %331 : vector<8x128xf32>
    %334 = arith.addf %332, %333 : vector<8x128xf32>
    %335 = math.tanh %334 : vector<8x128xf32>
    %336 = arith.mulf %329, %335 : vector<8x128xf32>
    %c4_i32_104 = arith.constant 4 : i32
    %337 = arith.index_cast %c4_i32_104 : i32 to index
    %c0_105 = arith.constant 0 : index
    %c0_106 = arith.constant 0 : index
    %338 = vector.load %arg10[%337, %c0_105, %c0_106] : memref<8x8x512xf32, #tpu.memory_space<vmem>>, vector<1x8x512xf32>
    %339 = vector.shape_cast %338 : vector<1x8x512xf32> to vector<8x512xf32>
    %340 = arith.truncf %336 : vector<8x128xf32> to vector<8x128xbf16>
    %cst_107 = arith.constant dense<0.000000e+00> : vector<8x512xf32>
    %341 = tpu.matmul %340, %238, %cst_107 {dimension_numbers = #tpu.dot_dimension_numbers<[1], [0], [0], [1], [0, 0, 1, 1], [], []>} : vector<8x128xbf16>, vector<128x512xbf16>, vector<8x512xf32> -> vector<8x512xf32>
    %342 = arith.addf %339, %341 : vector<8x512xf32>
    %343 = vector.extract_strided_slice %342 {offsets = [0, 0], sizes = [8, 384], strides = [1, 1]} : vector<8x512xf32> to vector<8x384xf32>
    %344 = arith.negf %343 : vector<8x384xf32>
    %345 = math.exp %344 : vector<8x384xf32>
    %cst_108 = arith.constant 1.000000e+00 : f32
    %346 = vector.broadcast %cst_108 : f32 to vector<8x384xf32>
    %347 = arith.addf %346, %345 : vector<8x384xf32>
    %348 = arith.divf %346, %347 : vector<8x384xf32>
    %349 = vector.extract_strided_slice %348 {offsets = [0, 0], sizes = [8, 128], strides = [1, 1]} : vector<8x384xf32> to vector<8x128xf32>
    %350 = vector.extract_strided_slice %348 {offsets = [0, 128], sizes = [8, 128], strides = [1, 1]} : vector<8x384xf32> to vector<8x128xf32>
    %351 = vector.extract_strided_slice %348 {offsets = [0, 256], sizes = [8, 128], strides = [1, 1]} : vector<8x384xf32> to vector<8x128xf32>
    %352 = vector.extract_strided_slice %342 {offsets = [0, 384], sizes = [8, 128], strides = [1, 1]} : vector<8x512xf32> to vector<8x128xf32>
    %353 = math.tanh %352 : vector<8x128xf32>
    %354 = arith.mulf %350, %334 : vector<8x128xf32>
    %355 = arith.mulf %349, %353 : vector<8x128xf32>
    %356 = arith.addf %354, %355 : vector<8x128xf32>
    %357 = math.tanh %356 : vector<8x128xf32>
    %358 = arith.mulf %351, %357 : vector<8x128xf32>
    %c5_i32_109 = arith.constant 5 : i32
    %359 = arith.index_cast %c5_i32_109 : i32 to index
    %c0_110 = arith.constant 0 : index
    %c0_111 = arith.constant 0 : index
    %360 = vector.load %arg10[%359, %c0_110, %c0_111] : memref<8x8x512xf32, #tpu.memory_space<vmem>>, vector<1x8x512xf32>
    %361 = vector.shape_cast %360 : vector<1x8x512xf32> to vector<8x512xf32>
    %362 = arith.truncf %358 : vector<8x128xf32> to vector<8x128xbf16>
    %cst_112 = arith.constant dense<0.000000e+00> : vector<8x512xf32>
    %363 = tpu.matmul %362, %238, %cst_112 {dimension_numbers = #tpu.dot_dimension_numbers<[1], [0], [0], [1], [0, 0, 1, 1], [], []>} : vector<8x128xbf16>, vector<128x512xbf16>, vector<8x512xf32> -> vector<8x512xf32>
    %364 = arith.addf %361, %363 : vector<8x512xf32>
    %365 = vector.extract_strided_slice %364 {offsets = [0, 0], sizes = [8, 384], strides = [1, 1]} : vector<8x512xf32> to vector<8x384xf32>
    %366 = arith.negf %365 : vector<8x384xf32>
    %367 = math.exp %366 : vector<8x384xf32>
    %cst_113 = arith.constant 1.000000e+00 : f32
    %368 = vector.broadcast %cst_113 : f32 to vector<8x384xf32>
    %369 = arith.addf %368, %367 : vector<8x384xf32>
    %370 = arith.divf %368, %369 : vector<8x384xf32>
    %371 = vector.extract_strided_slice %370 {offsets = [0, 0], sizes = [8, 128], strides = [1, 1]} : vector<8x384xf32> to vector<8x128xf32>
    %372 = vector.extract_strided_slice %370 {offsets = [0, 128], sizes = [8, 128], strides = [1, 1]} : vector<8x384xf32> to vector<8x128xf32>
    %373 = vector.extract_strided_slice %370 {offsets = [0, 256], sizes = [8, 128], strides = [1, 1]} : vector<8x384xf32> to vector<8x128xf32>
    %374 = vector.extract_strided_slice %364 {offsets = [0, 384], sizes = [8, 128], strides = [1, 1]} : vector<8x512xf32> to vector<8x128xf32>
    %375 = math.tanh %374 : vector<8x128xf32>
    %376 = arith.mulf %372, %356 : vector<8x128xf32>
    %377 = arith.mulf %371, %375 : vector<8x128xf32>
    %378 = arith.addf %376, %377 : vector<8x128xf32>
    %379 = math.tanh %378 : vector<8x128xf32>
    %380 = arith.mulf %373, %379 : vector<8x128xf32>
    %c6_i32_114 = arith.constant 6 : i32
    %381 = arith.index_cast %c6_i32_114 : i32 to index
    %c0_115 = arith.constant 0 : index
    %c0_116 = arith.constant 0 : index
    %382 = vector.load %arg10[%381, %c0_115, %c0_116] : memref<8x8x512xf32, #tpu.memory_space<vmem>>, vector<1x8x512xf32>
    %383 = vector.shape_cast %382 : vector<1x8x512xf32> to vector<8x512xf32>
    %384 = arith.truncf %380 : vector<8x128xf32> to vector<8x128xbf16>
    %cst_117 = arith.constant dense<0.000000e+00> : vector<8x512xf32>
    %385 = tpu.matmul %384, %238, %cst_117 {dimension_numbers = #tpu.dot_dimension_numbers<[1], [0], [0], [1], [0, 0, 1, 1], [], []>} : vector<8x128xbf16>, vector<128x512xbf16>, vector<8x512xf32> -> vector<8x512xf32>
    %386 = arith.addf %383, %385 : vector<8x512xf32>
    %387 = vector.extract_strided_slice %386 {offsets = [0, 0], sizes = [8, 384], strides = [1, 1]} : vector<8x512xf32> to vector<8x384xf32>
    %388 = arith.negf %387 : vector<8x384xf32>
    %389 = math.exp %388 : vector<8x384xf32>
    %cst_118 = arith.constant 1.000000e+00 : f32
    %390 = vector.broadcast %cst_118 : f32 to vector<8x384xf32>
    %391 = arith.addf %390, %389 : vector<8x384xf32>
    %392 = arith.divf %390, %391 : vector<8x384xf32>
    %393 = vector.extract_strided_slice %392 {offsets = [0, 0], sizes = [8, 128], strides = [1, 1]} : vector<8x384xf32> to vector<8x128xf32>
    %394 = vector.extract_strided_slice %392 {offsets = [0, 128], sizes = [8, 128], strides = [1, 1]} : vector<8x384xf32> to vector<8x128xf32>
    %395 = vector.extract_strided_slice %392 {offsets = [0, 256], sizes = [8, 128], strides = [1, 1]} : vector<8x384xf32> to vector<8x128xf32>
    %396 = vector.extract_strided_slice %386 {offsets = [0, 384], sizes = [8, 128], strides = [1, 1]} : vector<8x512xf32> to vector<8x128xf32>
    %397 = math.tanh %396 : vector<8x128xf32>
    %398 = arith.mulf %394, %378 : vector<8x128xf32>
    %399 = arith.mulf %393, %397 : vector<8x128xf32>
    %400 = arith.addf %398, %399 : vector<8x128xf32>
    %401 = math.tanh %400 : vector<8x128xf32>
    %402 = arith.mulf %395, %401 : vector<8x128xf32>
    %c7_i32_119 = arith.constant 7 : i32
    %403 = arith.index_cast %c7_i32_119 : i32 to index
    %c0_120 = arith.constant 0 : index
    %c0_121 = arith.constant 0 : index
    %404 = vector.load %arg10[%403, %c0_120, %c0_121] : memref<8x8x512xf32, #tpu.memory_space<vmem>>, vector<1x8x512xf32>
    %405 = vector.shape_cast %404 : vector<1x8x512xf32> to vector<8x512xf32>
    %406 = arith.truncf %402 : vector<8x128xf32> to vector<8x128xbf16>
    %cst_122 = arith.constant dense<0.000000e+00> : vector<8x512xf32>
    %407 = tpu.matmul %406, %238, %cst_122 {dimension_numbers = #tpu.dot_dimension_numbers<[1], [0], [0], [1], [0, 0, 1, 1], [], []>} : vector<8x128xbf16>, vector<128x512xbf16>, vector<8x512xf32> -> vector<8x512xf32>
    %408 = arith.addf %405, %407 : vector<8x512xf32>
    %409 = vector.extract_strided_slice %408 {offsets = [0, 0], sizes = [8, 384], strides = [1, 1]} : vector<8x512xf32> to vector<8x384xf32>
    %410 = arith.negf %409 : vector<8x384xf32>
    %411 = math.exp %410 : vector<8x384xf32>
    %cst_123 = arith.constant 1.000000e+00 : f32
    %412 = vector.broadcast %cst_123 : f32 to vector<8x384xf32>
    %413 = arith.addf %412, %411 : vector<8x384xf32>
    %414 = arith.divf %412, %413 : vector<8x384xf32>
    %415 = vector.extract_strided_slice %414 {offsets = [0, 0], sizes = [8, 128], strides = [1, 1]} : vector<8x384xf32> to vector<8x128xf32>
    %416 = vector.extract_strided_slice %414 {offsets = [0, 128], sizes = [8, 128], strides = [1, 1]} : vector<8x384xf32> to vector<8x128xf32>
    %417 = vector.extract_strided_slice %414 {offsets = [0, 256], sizes = [8, 128], strides = [1, 1]} : vector<8x384xf32> to vector<8x128xf32>
    %418 = vector.extract_strided_slice %408 {offsets = [0, 384], sizes = [8, 128], strides = [1, 1]} : vector<8x512xf32> to vector<8x128xf32>
    %419 = math.tanh %418 : vector<8x128xf32>
    %420 = arith.mulf %416, %400 : vector<8x128xf32>
    %421 = arith.mulf %415, %419 : vector<8x128xf32>
    %422 = arith.addf %420, %421 : vector<8x128xf32>
    %423 = math.tanh %422 : vector<8x128xf32>
    %424 = arith.mulf %417, %423 : vector<8x128xf32>
    %c8_i32_124 = arith.constant 8 : i32
    %c0_125 = arith.constant 0 : index
    %c0_126 = arith.constant 0 : index
    %425 = vector.load %arg7[%c0_125, %c0_126] : memref<128x128xf32, #tpu.memory_space<vmem>>, vector<128x128xf32>
    %cst_127 = arith.constant dense<0.000000e+00> : vector<8x128xf32>
    %426 = tpu.matmul %424, %425, %cst_127 {dimension_numbers = #tpu.dot_dimension_numbers<[1], [0], [0], [1], [0, 0, 1, 1], [], []>} : vector<8x128xf32>, vector<128x128xf32>, vector<8x128xf32> -> vector<8x128xf32>
    %c0_128 = arith.constant 0 : index
    %c0_129 = arith.constant 0 : index
    %427 = vector.load %arg8[%c0_128, %c0_129] : memref<1x128xf32, #tpu.memory_space<vmem>>, vector<1x128xf32>
    %428 = vector.broadcast %427 : vector<1x128xf32> to vector<8x128xf32>
    %429 = arith.addf %426, %428 : vector<8x128xf32>
    %cst_130 = arith.constant 0.000000e+00 : f32
    %430 = vector.broadcast %cst_130 : f32 to vector<8x128xf32>
    %431 = arith.maximumf %429, %430 : vector<8x128xf32>
    %c0_131 = arith.constant 0 : index
    %c0_132 = arith.constant 0 : index
    %432 = vector.load %arg9[%c0_131, %c0_132] : memref<8x128xf32, #tpu.memory_space<vmem>>, vector<8x128xf32>
    tpu.vector_store %arg9[%c0_131, %c0_132], %431 {strides = array<i32>} : memref<8x128xf32, #tpu.memory_space<vmem>>, vector<8x128xf32>,
    return
  }
}

</mosaic_0001>

<bundles_post_ra>
// kernel: tpu_custom_call.1
= control target key start
LH: loop header
LB: loop body
LE: loop exit
PB: predicated region body
PF: predicated region fallthrough
CT: control target
= control target key end

     0   :  { %14 = vsyncpa [#allocation5], 0  ;;  %s5604_s0 = inlined_call_operand.hbm [shape: f32[8,8,128], index: 0, kind: input, shape index: {}]   ;;  %s5605_s1 = inlined_call_operand.hbm [shape: bf16[128,512], index: 1, kind: input, shape index: {}]   ;;  %s5606_s2 = inlined_call_operand.hbm [shape: bf16[128,512], index: 2, kind: input, shape index: {}]   ;;  %s5607_s3 = inlined_call_operand.vmem [shape: f32[1,512], index: 3, kind: input, shape index: {}]   ;;  %s5608_s4 = inlined_call_operand.hbm [shape: bf16[128,512], index: 4, kind: input, shape index: {}]   ;;  %s5609_s5 = inlined_call_operand.hbm [shape: bf16[128,512], index: 5, kind: input, shape index: {}]   ;;  %s5610_s6 = inlined_call_operand.vmem [shape: f32[1,512], index: 6, kind: input, shape index: {}]   ;;  %s5611_s7 = inlined_call_operand.hbm [shape: f32[128,128], index: 7, kind: input, shape index: {}]   ;;  %s5612_s8 = inlined_call_operand.vmem [shape: f32[1,128], index: 8, kind: input, shape index: {}]   ;;  %s5613_s9 = inlined_call_operand.hbm [shape: f32[8,128], index: 9, kind: output, shape index: {}]  }
   0x1   :  { %15 = vsyncpa [#allocation8], 0 }
   0x2   :  { %16 = vsyncpa [#allocation11], 0 }
   0x3   :  { %17 = vsyncpa [#allocation14], 0 }
   0x4   :  { %18 = vsyncpa [#allocation6], 0  ;;  %s4290_s30 = smov [#allocation7]   ;;  %s4126_s13 = scalar_lea.hbm %s5605_s1, 4096 }
   0x5   :  { %s36_s10 = sshll.u32 %s4290_s30, 4  ;;  %p4127_p0 = scmp.ne.s32.totalorder %s5605_s1, %s4126_s13  ;;  %s37_s10 = int_to_ptr.vmem [resolvable:$true] %s36_s10 }
   0x6   :  { %p4130_p1 = scmp.lt.u32.totalorder %s4126_s13, %s5605_s1 }
   0x8   :  { %p4132_p2 = pnand %p4130_p1, %p4127_p0 }
   0xa   :  { %4135 = shalt.err (!%p4132_p2)
}
   0xb   :  { %s4136_s18 = scalar_lea.vmem %s37_s10, 4096  ;;  %p4141_p4 = scmp.lt.s32.totalorder %s37_s10, %s37_s10 }
   0xc   :  { %p4137_p3 = scmp.ne.s32.totalorder %s37_s10, %s4136_s18  ;;  %p4142_p5 = scmp.lt.s32.totalorder %s4136_s18, %s4136_s18 }
   0xe   :  { %p4143_p6 = por %p4142_p5, %p4141_p4 }
  0x10   :  { %p4144_p7 = pnand %p4143_p6, %p4137_p3 }
  0x12   :  { %4147 = shalt.err (!%p4144_p7)
}
  0x13   :  { %s4291_s19 = smov 256   ;;  %s4292_s20 = smov 16  }
  0x14   :  { %42 = dma.hbm_to_vmem [thread:$0]  %s5605_s1, 4096, %s37_s10, [#allocation8], %s4291_s19, %s4291_s19, %s4292_s20  }
  0x15   :  { %s4293_s23 = smov [#allocation10]   ;;  %s4294_s25 = smov [#allocation4]  }
  0x16   :  { %s62_s24 = sshll.u32 %s4293_s23, 4  ;;  %s24_s26 = sshll.u32 %s4294_s25, 4  ;;  %s63_s24 = int_to_ptr.vmem [resolvable:$true] %s62_s24  ;;  %s25_s26 = int_to_ptr.vmem [resolvable:$true] %s24_s26 }
  0x17   :  { %s4148_s29 = scalar_lea.hbm %s5608_s4, 4096 }
  0x18   :  { %p4149_p8 = scmp.ne.s32.totalorder %s5608_s4, %s4148_s29  ;;  %p4152_p9 = scmp.lt.u32.totalorder %s4148_s29, %s5608_s4 }
  0x1a   :  { %p4154_p10 = pnand %p4152_p9, %p4149_p8 }
  0x1c   :  { %4157 = shalt.err (!%p4154_p10)
}
  0x1d   :  { %s4158_s1 = scalar_lea.vmem %s63_s24, 4096  ;;  %p4163_p12 = scmp.lt.s32.totalorder %s63_s24, %s63_s24 }
  0x1e   :  { %p4159_p11 = scmp.ne.s32.totalorder %s63_s24, %s4158_s1  ;;  %p4164_p13 = scmp.lt.s32.totalorder %s4158_s1, %s4158_s1 }
  0x20   :  { %p4165_p0 = por %p4164_p13, %p4163_p12 }
  0x22   :  { %p4166_p1 = pnand %p4165_p0, %p4159_p11 }
  0x24   :  { %4169 = shalt.err (!%p4166_p1)
}
  0x25   :  { %68 = dma.hbm_to_vmem [thread:$0]  %s5608_s4, 4096, %s63_s24, [#allocation11], %s4291_s19, %s4291_s19, %s4292_s20  }
  0x26   :  { %s4170_s17 = scalar_lea.hbm %s5604_s0, 1024 }
  0x27   :  { %p4171_p2 = scmp.ne.s32.totalorder %s5604_s0, %s4170_s17  ;;  %p4174_p3 = scmp.lt.u32.totalorder %s4170_s17, %s5604_s0 }
  0x29   :  { %p4176_p4 = pnand %p4174_p3, %p4171_p2 }
  0x2b   :  { %4179 = shalt.err (!%p4176_p4)
}
  0x2c   :  { %s4180_s25 = scalar_lea.vmem %s25_s26, 1024  ;;  %p4185_p6 = scmp.lt.s32.totalorder %s25_s26, %s25_s26 }
  0x2d   :  { %p4181_p5 = scmp.ne.s32.totalorder %s25_s26, %s4180_s25  ;;  %p4186_p7 = scmp.lt.s32.totalorder %s4180_s25, %s4180_s25 }
  0x2f   :  { %p4187_p8 = por %p4186_p7, %p4185_p6 }
  0x31   :  { %p4188_p9 = pnand %p4187_p8, %p4181_p5 }
  0x33   :  { %4191 = shalt.err (!%p4188_p9)
}
  0x34   :  { %s4295_s4 = smov 128   ;;  %s4296_s24 = smov 8  }
  0x35   :  { %30 = dma.hbm_to_vmem [thread:$0]  %s5604_s0, 1024, %s25_s26, [#allocation5], %s4295_s4, %s4295_s4, %s4296_s24  }
  0x36   :  { %s4297_s29 = smov [#allocation9]   ;;  %s4298_s11 = smov [#allocation12]  }
  0x37   :  { %s48_s30 = sshll.u32 %s4297_s29, 4  ;;  %s74_s12 = sshll.u32 %s4298_s11, 4  ;;  %s49_s30 = int_to_ptr.vmem [resolvable:$true] %s48_s30  ;;  %s75_s12 = int_to_ptr.vmem [resolvable:$true] %s74_s12 }
  0x38   :  { %s4192_s10 = scalar_lea.hbm %s5606_s2, 4096 }
  0x39   :  { %p4193_p10 = scmp.ne.s32.totalorder %s5606_s2, %s4192_s10  ;;  %p4196_p11 = scmp.lt.u32.totalorder %s4192_s10, %s5606_s2 }
  0x3b   :  { %p4198_p12 = pnand %p4196_p11, %p4193_p10 }
  0x3d   :  { %4201 = shalt.err (!%p4198_p12)
}
  0x3e   :  { %s4202_s0 = scalar_lea.vmem %s49_s30, 4096  ;;  %p4207_p0 = scmp.lt.s32.totalorder %s49_s30, %s49_s30 }
  0x3f   :  { %p4203_p13 = scmp.ne.s32.totalorder %s49_s30, %s4202_s0  ;;  %p4208_p1 = scmp.lt.s32.totalorder %s4202_s0, %s4202_s0 }
  0x41   :  { %p4209_p2 = por %p4208_p1, %p4207_p0 }
  0x43   :  { %p4210_p3 = pnand %p4209_p2, %p4203_p13 }
  0x45   :  { %4213 = shalt.err (!%p4210_p3)
}
  0x46   :  { %54 = dma.hbm_to_vmem [thread:$0]  %s5606_s2, 4096, %s49_s30, [#allocation8], %s4291_s19, %s4291_s19, %s4292_s20  }
  0x47   :  { %s4214_s23 = scalar_lea.hbm %s5609_s5, 4096 }
  0x48   :  { %p4215_p4 = scmp.ne.s32.totalorder %s5609_s5, %s4214_s23  ;;  %p4218_p5 = scmp.lt.u32.totalorder %s4214_s23, %s5609_s5 }
  0x4a   :  { %p4220_p6 = pnand %p4218_p5, %p4215_p4 }
  0x4c   :  { %4223 = shalt.err (!%p4220_p6)
}
  0x4d   :  { %s4224_s11 = scalar_lea.vmem %s75_s12, 4096  ;;  %p4229_p8 = scmp.lt.s32.totalorder %s75_s12, %s75_s12 }
  0x4e   :  { %p4225_p7 = scmp.ne.s32.totalorder %s75_s12, %s4224_s11  ;;  %p4230_p9 = scmp.lt.s32.totalorder %s4224_s11, %s4224_s11 }
  0x50   :  { %p4231_p10 = por %p4230_p9, %p4229_p8 }
  0x52   :  { %p4232_p11 = pnand %p4231_p10, %p4225_p7 }
  0x54   :  { %4235 = shalt.err (!%p4232_p11)
}
  0x55   :  { %80 = dma.hbm_to_vmem [thread:$0]  %s5609_s5, 4096, %s75_s12, [#allocation11], %s4291_s19, %s4291_s19, %s4292_s20  }
  0x56   :  { %s4299_s13 = smov [#allocation13]   ;;  %s4236_s15 = scalar_lea.hbm %s5611_s7, 2048 }
  0x57   :  { %s88_s1 = sshll.u32 %s4299_s13, 4  ;;  %p4237_p12 = scmp.ne.s32.totalorder %s5611_s7, %s4236_s15  ;;  %s89_s1 = int_to_ptr.vmem [resolvable:$true] %s88_s1 }
  0x58   :  { %p4240_p13 = scmp.lt.u32.totalorder %s4236_s15, %s5611_s7 }
  0x5a   :  { %p4242_p0 = pnand %p4240_p13, %p4237_p12 }
  0x5c   :  { %4245 = shalt.err (!%p4242_p0)
}
  0x5d   :  { %s4246_s18 = scalar_lea.vmem %s89_s1, 2048  ;;  %p4251_p2 = scmp.lt.s32.totalorder %s89_s1, %s89_s1 }
  0x5e   :  { %p4247_p1 = scmp.ne.s32.totalorder %s89_s1, %s4246_s18  ;;  %p4252_p3 = scmp.lt.s32.totalorder %s4246_s18, %s4246_s18 }
  0x60   :  { %p4253_p4 = por %p4252_p3, %p4251_p2 }
  0x62   :  { %p4254_p5 = pnand %p4253_p4, %p4247_p1 }
  0x64   :  { %4257 = shalt.err (!%p4254_p5)
}
  0x65   :  { %94 = dma.hbm_to_vmem [thread:$0]  %s5611_s7, 2048, %s89_s1, [#allocation14], %s4295_s4, %s4295_s4, %s4296_s24  }
  0x66   :  { %4280 = dma.done.wait [#allocation5], 1024  }
  0x67   :  { %4281 = vsyncadd [#allocation5], 4294966272 }
  0x68   :  { %4282 = dma.done.wait [#allocation8], 8192  }
  0x69   :  { %4283 = vsyncadd [#allocation8], 4294959104 }
  0x6a   :  { %4284 = dma.done.wait [#allocation11], 8192  }
  0x6b   :  { %4285 = vsyncadd [#allocation11], 4294959104 }
  0x6c   :  { %4286 = dma.done.wait [#allocation14], 2048  }
  0x6d   :  { %4287 = vsyncadd [#allocation14], 4294965248  ;;  %v5618_v0 = vmov 0   ;;  %v3610_v1 = vld [vmem:[#allocation7 + $0x4] ss:$16 sps:$4 sm:$0xff]   ;;  %v182_v34 = vld [vmem:[#allocation4 + $0x8] sm:$0xff] }
  0x6e   :  { %434 = vmatprep.mubr.bf16.mxu0 %v5618_v0  ;;  %507 = vmatprep.mubr.bf16.mxu1 %v5618_v0  ;;  %v3612_v2 = vld [vmem:[#allocation7 + $0xc] ss:$16 sps:$4 sm:$0xff]   ;;  %v3614_v3 = vld [vmem:[#allocation7] ss:$16 sps:$4 sm:$0xff]   ;;  %v3615_v4 = vld [vmem:[#allocation7 + $0x8] ss:$16 sps:$4 sm:$0xff]  }
  0x6f   :  { %402 = vmatprep.subr.bf16.mxu0 %v3610_v1  ;;  %475 = vmatprep.subr.bf16.mxu1 %v3612_v2  ;;  %v3616_v5 = vld [vmem:[#allocation7 + $0x24] ss:$16 sps:$4 sm:$0xff]   ;;  %v3618_v6 = vld [vmem:[#allocation7 + $0x2c] ss:$16 sps:$4 sm:$0xff]   ;;  %v3620_v7 = vld [vmem:[#allocation7 + $0x20] ss:$16 sps:$4 sm:$0xff]  }
  0x70   :  { %403 = vmatpush1.bf16.msra.mxu0 %v3614_v3  ;;  %476 = vmatpush1.bf16.msra.mxu1 %v3615_v4  ;;  %v3621_v8 = vld [vmem:[#allocation7 + $0x28] ss:$16 sps:$4 sm:$0xff]   ;;  %v3622_v9 = vld [vmem:[#allocation7 + $0x44] ss:$16 sps:$4 sm:$0xff]   ;;  %v3624_v10 = vld [vmem:[#allocation7 + $0x4c] ss:$16 sps:$4 sm:$0xff]  }
  0x71   :  { %404 = vmatprep.subr.bf16.mxu0 %v3616_v5  ;;  %477 = vmatprep.subr.bf16.mxu1 %v3618_v6  ;;  %v3626_v11 = vld [vmem:[#allocation7 + $0x40] ss:$16 sps:$4 sm:$0xff]   ;;  %v3627_v12 = vld [vmem:[#allocation7 + $0x48] ss:$16 sps:$4 sm:$0xff]   ;;  %v3628_v13 = vld [vmem:[#allocation7 + $0x64] ss:$16 sps:$4 sm:$0xff]  }
  0x72   :  { %v3630_v14 = vld [vmem:[#allocation7 + $0x6c] ss:$16 sps:$4 sm:$0xff]   ;;  %v3632_v15 = vld [vmem:[#allocation7 + $0x60] ss:$16 sps:$4 sm:$0xff]   ;;  %v3633_v16 = vld [vmem:[#allocation7 + $0x68] ss:$16 sps:$4 sm:$0xff]  }
  0x73   :  { %v3634_v17 = vld [vmem:[#allocation7 + $0x84] ss:$16 sps:$4 sm:$0xff]   ;;  %v3636_v18 = vld [vmem:[#allocation7 + $0x8c] ss:$16 sps:$4 sm:$0xff]   ;;  %v3638_v19 = vld [vmem:[#allocation7 + $0x80] ss:$16 sps:$4 sm:$0xff]  }
  0x74   :  { %405 = vmatpush1.bf16.msra.mxu0 %v3620_v7  ;;  %478 = vmatpush1.bf16.msra.mxu1 %v3621_v8  ;;  %v3639_v20 = vld [vmem:[#allocation7 + $0x88] ss:$16 sps:$4 sm:$0xff]   ;;  %v3640_v21 = vld [vmem:[#allocation7 + $0xa4] ss:$16 sps:$4 sm:$0xff]   ;;  %v3642_v22 = vld [vmem:[#allocation7 + $0xac] ss:$16 sps:$4 sm:$0xff]  }
  0x75   :  { %406 = vmatprep.subr.bf16.mxu0 %v3622_v9  ;;  %479 = vmatprep.subr.bf16.mxu1 %v3624_v10  ;;  %v3644_v23 = vld [vmem:[#allocation7 + $0xa0] ss:$16 sps:$4 sm:$0xff]   ;;  %v3645_v24 = vld [vmem:[#allocation7 + $0xa8] ss:$16 sps:$4 sm:$0xff]   ;;  %v3646_v25 = vld [vmem:[#allocation7 + $0xc4] ss:$16 sps:$4 sm:$0xff]  }
  0x76   :  { %v3648_v26 = vld [vmem:[#allocation7 + $0xcc] ss:$16 sps:$4 sm:$0xff]   ;;  %v3650_v27 = vld [vmem:[#allocation7 + $0xc0] ss:$16 sps:$4 sm:$0xff]   ;;  %v3651_v28 = vld [vmem:[#allocation7 + $0xc8] ss:$16 sps:$4 sm:$0xff]  }
  0x77   :  { %v3652_v29 = vld [vmem:[#allocation7 + $0xe4] ss:$16 sps:$4 sm:$0xff]   ;;  %v3654_v30 = vld [vmem:[#allocation7 + $0xec] ss:$16 sps:$4 sm:$0xff]   ;;  %v3656_v31 = vld [vmem:[#allocation7 + $0xe0] ss:$16 sps:$4 sm:$0xff]  }
  0x78   :  { %407 = vmatpush1.bf16.msra.mxu0 %v3626_v11  ;;  %480 = vmatpush1.bf16.msra.mxu1 %v3627_v12  ;;  %v3657_v32 = vld [vmem:[#allocation7 + $0xe8] ss:$16 sps:$4 sm:$0xff]   ;;  %v181_v33 = vld [vmem:[#allocation4] sm:$0xff]  ;;  %v4449_v36 = vld [vmem:[#allocation9 + $0xc] ss:$16 sps:$4 sm:$0xff]   ;;  %vm4302_vm0 = vmmov 0  }
  0x79   :  { %408 = vmatprep.subr.bf16.mxu0 %v3628_v13  ;;  %481 = vmatprep.subr.bf16.mxu1 %v3630_v14  ;;  %v4447_v35 = vld [vmem:[#allocation9 + $0x4] ss:$16 sps:$4 sm:$0xff]   ;;  %v3515_v37 = vpack.c.bf16 %v182_v34, %v181_v33  ;;  %v4451_v38 = vld [vmem:[#allocation9] ss:$16 sps:$4 sm:$0xff]   ;;  %v4453_v39 = vld [vmem:[#allocation9 + $0x8] ss:$16 sps:$4 sm:$0xff]   ;;  %v198_v14 = vlaneseq }
  0x7a   :  { %v4457_v40 = vld [vmem:[#allocation9 + $0x24] ss:$16 sps:$4 sm:$0xff]   ;;  %v4459_v41 = vld [vmem:[#allocation9 + $0x2c] ss:$16 sps:$4 sm:$0xff]   ;;  %v4461_v42 = vld [vmem:[#allocation9 + $0x20] ss:$16 sps:$4 sm:$0xff]  }
  0x7b   :  { %v4463_v43 = vld [vmem:[#allocation9 + $0x28] ss:$16 sps:$4 sm:$0xff]   ;;  %v183_v44 = vld [vmem:[#allocation4 + $0x10] sm:$0xff]  ;;  %v4471_v47 = vld [vmem:[#allocation9 + $0x4c] ss:$16 sps:$4 sm:$0xff]   ;;  %s4304_s12 = smov [#allocation15]  }
  0x7c   :  { %409 = vmatpush1.bf16.msra.mxu0 %v3632_v15  ;;  %482 = vmatpush1.bf16.msra.mxu1 %v3633_v16  ;;  %v184_v45 = vld [vmem:[#allocation4 + $0x18] sm:$0xff]  ;;  %v4467_v46 = vld [vmem:[#allocation9 + $0x44] ss:$16 sps:$4 sm:$0xff]   ;;  %v4475_v49 = vld [vmem:[#allocation9 + $0x40] ss:$16 sps:$4 sm:$0xff]   ;;  %v4589_v15 = vshrl.u32 %v198_v14, 7 }
  0x7d   :  { %410 = vmatprep.subr.bf16.mxu0 %v3634_v17  ;;  %483 = vmatprep.subr.bf16.mxu1 %v3636_v18  ;;  %v3516_v48 = vpack.c.bf16 %v184_v45, %v183_v44  ;;  %v4477_v50 = vld [vmem:[#allocation9 + $0x48] ss:$16 sps:$4 sm:$0xff]   ;;  %v4481_v51 = vld [vmem:[#allocation9 + $0x64] ss:$16 sps:$4 sm:$0xff]   ;;  %v4485_v52 = vld [vmem:[#allocation9 + $0x6c] ss:$16 sps:$4 sm:$0xff]  }
  0x7e   :  { %v4487_v53 = vld [vmem:[#allocation9 + $0x60] ss:$16 sps:$4 sm:$0xff]   ;;  %v4489_v54 = vld [vmem:[#allocation9 + $0x68] ss:$16 sps:$4 sm:$0xff]   ;;  %v4495_v57 = vld [vmem:[#allocation9 + $0x84] ss:$16 sps:$4 sm:$0xff]  }
  0x7f   :  { %v185_v55 = vld [vmem:[#allocation4 + $0x20] sm:$0xff]  ;;  %v186_v56 = vld [vmem:[#allocation4 + $0x28] sm:$0xff]  ;;  %v187_v3 = vld [vmem:[#allocation4 + $0x30] sm:$0xff]  ;;  %5622 = vst [vmem:[#allocation21_spill] sm:$0xff] %v4589_v15  ;;  %v5616_v16 = vsub.s32 2, %v4589_v15  ;;  %v5614_v17 = vsub.s32 3, %v4589_v15 }
  0x80   :  { %411 = vmatpush1.bf16.msra.mxu0 %v3638_v19  ;;  %484 = vmatpush1.bf16.msra.mxu1 %v3639_v20  ;;  %v4497_v58 = vld [vmem:[#allocation9 + $0x8c] ss:$16 sps:$4 sm:$0xff]   ;;  %v4501_v59 = vld [vmem:[#allocation9 + $0x80] ss:$16 sps:$4 sm:$0xff]   ;;  %v4503_v60 = vld [vmem:[#allocation9 + $0x88] ss:$16 sps:$4 sm:$0xff]   ;;  %v3517_v61 = vpack.c.bf16 %v186_v56, %v185_v55 }
  0x81   :  { %412 = vmatprep.subr.bf16.mxu0 %v3640_v21  ;;  %485 = vmatprep.subr.bf16.mxu1 %v3642_v22  ;;  %v4505_v62 = vld [vmem:[#allocation9 + $0xa4] ss:$16 sps:$4 sm:$0xff]   ;;  %v4507_v63 = vld [vmem:[#allocation9 + $0xac] ss:$16 sps:$4 sm:$0xff]   ;;  %v4513_v1 = vld [vmem:[#allocation9 + $0xa0] ss:$16 sps:$4 sm:$0xff]  }
  0x82   :  { %v4515_v2 = vld [vmem:[#allocation9 + $0xa8] ss:$16 sps:$4 sm:$0xff]   ;;  %v4517_v5 = vld [vmem:[#allocation9 + $0xc4] ss:$16 sps:$4 sm:$0xff]   ;;  %v4519_v6 = vld [vmem:[#allocation9 + $0xcc] ss:$16 sps:$4 sm:$0xff]  }
  0x83   :  { %v188_v4 = vld [vmem:[#allocation4 + $0x38] sm:$0xff]  ;;  %v4527_v7 = vld [vmem:[#allocation9 + $0xc0] ss:$16 sps:$4 sm:$0xff]   ;;  %v4531_v10 = vld [vmem:[#allocation9 + $0xe4] ss:$16 sps:$4 sm:$0xff]   ;;  %v5617_v18 = vsub.s32 0, %v4589_v15 }
  0x84   :  { %413 = vmatpush1.bf16.msra.mxu0 %v3644_v23  ;;  %486 = vmatpush1.bf16.msra.mxu1 %v3645_v24  ;;  %v4529_v8 = vld [vmem:[#allocation9 + $0xc8] ss:$16 sps:$4 sm:$0xff]   ;;  %v3518_v9 = vpack.c.bf16 %v188_v4, %v187_v3  ;;  %v4533_v11 = vld [vmem:[#allocation9 + $0xec] ss:$16 sps:$4 sm:$0xff]   ;;  %v4539_v12 = vld [vmem:[#allocation9 + $0xe0] ss:$16 sps:$4 sm:$0xff]  }
  0x85   :  { %414 = vmatprep.subr.bf16.mxu0 %v3646_v25  ;;  %487 = vmatprep.subr.bf16.mxu1 %v3648_v26  ;;  %v4541_v13 = vld [vmem:[#allocation9 + $0xe8] ss:$16 sps:$4 sm:$0xff]   ;;  %v180_v19 = vld [vmem:[%s5607_s3] sm:$0xf]  ;;  %v5615_v20 = vsub.s32 1, %v4589_v15  ;;  %s3318_s21 = sshll.u32 %s4304_s12, 4  ;;  %s3319_s21 = int_to_ptr.vmem [resolvable:$true] %s3318_s21 }
  0x86   :  { %v4600_v21 = vrot.slane %v180_v19, %v5616_v16  ;;  %v4608_v24 = vrot.slane %v180_v19, %v5614_v17  ;;  %v201_v25 = vrot.slane %v180_v19, %v5617_v18  ;;  %s4258_s22 = scalar_lea.vmem %s3319_s21, 128  ;;  %p4263_p7 = scmp.lt.s32.totalorder %s3319_s21, %s3319_s21 }
  0x87   :  { %p4259_p6 = scmp.ne.s32.totalorder %s3319_s21, %s4258_s22  ;;  %p4264_p8 = scmp.lt.s32.totalorder %s4258_s22, %s4258_s22 }
  0x88   :  { %415 = vmatpush1.bf16.msra.mxu0 %v3650_v27  ;;  %488 = vmatpush1.bf16.msra.mxu1 %v3651_v28  ;;  %v205_v28 = vrot.slane %v180_v19, %v5615_v20 }
  0x89   :  { %416 = vmatprep.subr.bf16.mxu0 %v3652_v29  ;;  %489 = vmatprep.subr.bf16.mxu1 %v3654_v30  ;;  %p4265_p9 = por %p4264_p8, %p4263_p7 }
  0x8b   :  { %p4266_p10 = pnand %p4265_p9, %p4259_p6 }
  0x8c   :  { %417 = vmatpush1.bf16.msra.mxu0 %v3656_v31  ;;  %490 = vmatpush1.bf16.msra.mxu1 %v3657_v32 }
  0x8d   :  { %744 = vmatprep.subr.bf16.mxu0 %v4447_v35  ;;  %785 = vmatprep.subr.bf16.mxu1 %v4449_v36 }
  0x8f   :  { %435 = vmatmul.mubr.bf16.vlgmr.msra.gmra.mrb[0].mxu0 %v3515_v37  ;;  %508 = vmatmul.mubr.bf16.vlgmr.msra.gmra.mrb[0].mxu1 %v3515_v37 }
  0x90   :  { %745 = vmatpush1.bf16.msra.mxu0 %v4451_v38  ;;  %786 = vmatpush1.bf16.msra.mxu1 %v4453_v39 }
  0x91   :  { %746 = vmatprep.subr.bf16.mxu0 %v4457_v40  ;;  %787 = vmatprep.subr.bf16.mxu1 %v4459_v41 }
  0x92   :  { %444 = vmatprep.mubr.bf16.mxu0 %v5618_v0  ;;  %517 = vmatprep.mubr.bf16.mxu1 %v5618_v0 }
  0x94   :  { %747 = vmatpush1.bf16.msra.mxu0 %v4461_v42  ;;  %788 = vmatpush1.bf16.msra.mxu1 %v4463_v43 }
  0x95   :  { %748 = vmatprep.subr.bf16.mxu0 %v4467_v46  ;;  %789 = vmatprep.subr.bf16.mxu1 %v4471_v47 }
  0x97   :  { %445 = vmatmul.mubr.bf16.gmra.mrb[4].mxu0 %v3516_v48  ;;  %518 = vmatmul.mubr.bf16.gmra.mrb[4].mxu1 %v3516_v48 }
  0x98   :  { %749 = vmatpush1.bf16.msra.mxu0 %v4475_v49  ;;  %790 = vmatpush1.bf16.msra.mxu1 %v4477_v50 }
  0x99   :  { %750 = vmatprep.subr.bf16.mxu0 %v4481_v51  ;;  %791 = vmatprep.subr.bf16.mxu1 %v4485_v52 }
  0x9a   :  { %454 = vmatprep.mubr.bf16.mxu0 %v5618_v0  ;;  %527 = vmatprep.mubr.bf16.mxu1 %v5618_v0 }
  0x9c   :  { %751 = vmatpush1.bf16.msra.mxu0 %v4487_v53  ;;  %792 = vmatpush1.bf16.msra.mxu1 %v4489_v54 }
  0x9d   :  { %752 = vmatprep.subr.bf16.mxu0 %v4495_v57  ;;  %793 = vmatprep.subr.bf16.mxu1 %v4497_v58 }
  0x9f   :  { %455 = vmatmul.mubr.bf16.gmra.mrb[8].mxu0 %v3517_v61  ;;  %528 = vmatmul.mubr.bf16.gmra.mrb[8].mxu1 %v3517_v61 }
  0xa0   :  { %753 = vmatpush1.bf16.msra.mxu0 %v4501_v59  ;;  %794 = vmatpush1.bf16.msra.mxu1 %v4503_v60 }
  0xa1   :  { %754 = vmatprep.subr.bf16.mxu0 %v4505_v62  ;;  %795 = vmatprep.subr.bf16.mxu1 %v4507_v63 }
  0xa2   :  { %464 = vmatprep.mubr.bf16.mxu0 %v5618_v0  ;;  %537 = vmatprep.mubr.bf16.mxu1 %v5618_v0 }
  0xa4   :  { %755 = vmatpush1.bf16.msra.mxu0 %v4513_v1  ;;  %796 = vmatpush1.bf16.msra.mxu1 %v4515_v2 }
  0xa5   :  { %756 = vmatprep.subr.bf16.mxu0 %v4517_v5  ;;  %797 = vmatprep.subr.bf16.mxu1 %v4519_v6 }
  0xa7   :  { %465 = vmatmul.mubr.bf16.gmra.mrb[12].mxu0 %v3518_v9  ;;  %538 = vmatmul.mubr.bf16.gmra.mrb[12].mxu1 %v3518_v9 }
  0xa8   :  { %757 = vmatpush1.bf16.msra.mxu0 %v4527_v7  ;;  %798 = vmatpush1.bf16.msra.mxu1 %v4529_v8 }
  0xa9   :  { %758 = vmatprep.subr.bf16.mxu0 %v4531_v10  ;;  %799 = vmatprep.subr.bf16.mxu1 %v4533_v11 }
  0xaa   :  { %776 = vmatprep.mubr.bf16.mxu0 %v5618_v0  ;;  %817 = vmatprep.mubr.bf16.mxu1 %v5618_v0 }
  0xac   :  { %759 = vmatpush1.bf16.msra.mxu0 %v4539_v12  ;;  %800 = vmatpush1.bf16.msra.mxu1 %v4541_v13 }
  0xad   :  { %861 = vmatprep.subr.bf16.mxu0 %v4447_v35  ;;  %902 = vmatprep.subr.bf16.mxu1 %v4449_v36 }
  0xaf   :  { %777 = vmatmul.mubr.bf16.vlgmr.msra.gmra.mrb[16].mxu0 %v5618_v0  ;;  %818 = vmatmul.mubr.bf16.vlgmr.msra.gmra.mrb[16].mxu1 %v5618_v0 }
  0xb0   :  { %862 = vmatpush1.bf16.msra.mxu0 %v4451_v38  ;;  %903 = vmatpush1.bf16.msra.mxu1 %v4453_v39 }
  0xb1   :  { %863 = vmatprep.subr.bf16.mxu0 %v4457_v40  ;;  %904 = vmatprep.subr.bf16.mxu1 %v4459_v41 }
  0xb2   :  { %893 = vmatprep.mubr.bf16.mxu0 %v5618_v0  ;;  %934 = vmatprep.mubr.bf16.mxu1 %v5618_v0 }
  0xb4   :  { %864 = vmatpush1.bf16.msra.mxu0 %v4461_v42  ;;  %905 = vmatpush1.bf16.msra.mxu1 %v4463_v43 }
  0xb5   :  { %865 = vmatprep.subr.bf16.mxu0 %v4467_v46  ;;  %906 = vmatprep.subr.bf16.mxu1 %v4471_v47 }
  0xb8   :  { %866 = vmatpush1.bf16.msra.mxu0 %v4475_v49  ;;  %907 = vmatpush1.bf16.msra.mxu1 %v4477_v50 }
  0xb9   :  { %867 = vmatprep.subr.bf16.mxu0 %v4481_v51  ;;  %908 = vmatprep.subr.bf16.mxu1 %v4485_v52 }
  0xbc   :  { %868 = vmatpush1.bf16.msra.mxu0 %v4487_v53  ;;  %909 = vmatpush1.bf16.msra.mxu1 %v4489_v54 }
  0xbd   :  { %869 = vmatprep.subr.bf16.mxu0 %v4495_v57  ;;  %910 = vmatprep.subr.bf16.mxu1 %v4497_v58 }
  0xc0   :  { %870 = vmatpush1.bf16.msra.mxu0 %v4501_v59  ;;  %911 = vmatpush1.bf16.msra.mxu1 %v4503_v60 }
  0xc1   :  { %871 = vmatprep.subr.bf16.mxu0 %v4505_v62  ;;  %912 = vmatprep.subr.bf16.mxu1 %v4507_v63 }
  0xc4   :  { %872 = vmatpush1.bf16.msra.mxu0 %v4513_v1  ;;  %913 = vmatpush1.bf16.msra.mxu1 %v4515_v2 }
  0xc5   :  { %873 = vmatprep.subr.bf16.mxu0 %v4517_v5  ;;  %914 = vmatprep.subr.bf16.mxu1 %v4519_v6 }
  0xc8   :  { %874 = vmatpush1.bf16.msra.mxu0 %v4527_v7  ;;  %915 = vmatpush1.bf16.msra.mxu1 %v4529_v8 }
  0xc9   :  { %875 = vmatprep.subr.bf16.mxu0 %v4531_v10  ;;  %916 = vmatprep.subr.bf16.mxu1 %v4533_v11 }
  0xcc   :  { %876 = vmatpush1.bf16.msra.mxu0 %v4539_v12  ;;  %917 = vmatpush1.bf16.msra.mxu1 %v4541_v13 }
  0xcd   :  { %979 = vmatprep.subr.bf16.mxu0 %v4447_v35  ;;  %1020 = vmatprep.subr.bf16.mxu1 %v4449_v36 }
 0x162   :  { %v4602_v22 = vpop.f32.mrb[0].mxu0  ;;  %v4604_v23 = vpop.f32.mrb[0].mxu1 }
 0x163   :  { %v438_v26 = vpop.f32.mrb[1].mxu0  ;;  %v511_v27 = vpop.f32.mrb[1].mxu1 }
 0x164   :  { %v440_v29 = vpop.f32.mrb[2].mxu0  ;;  %v513_v30 = vpop.f32.mrb[2].mxu1 }
 0x165   :  { %v4614_v31 = vadd.f32 %v440_v29, %v201_v25  ;;  %v442_v32 = vpop.f32.mrb[3].mxu0  ;;  %v4617_v33 = vadd.f32 %v513_v30, %v4600_v21  ;;  %v515_v34 = vpop.f32.mrb[3].mxu1 }
 0x166   :  { %v4619_v37 = vadd.f32 %v442_v32, %v205_v28  ;;  %v4622_v44 = vadd.f32 %v515_v34, %v4608_v24 }
 0x16a   :  { %v446_v45 = vpop.f32.mrb[4].mxu0  ;;  %v519_v48 = vpop.f32.mrb[4].mxu1 }
 0x16b   :  { %v4624_v55 = vadd.f32 %v446_v45, %v201_v25  ;;  %v448_v56 = vpop.f32.mrb[5].mxu0  ;;  %v4627_v61 = vadd.f32 %v519_v48, %v4600_v21  ;;  %v521_v3 = vpop.f32.mrb[5].mxu1 }
 0x16c   :  { %v4629_v4 = vadd.f32 %v448_v56, %v205_v28  ;;  %v450_v9 = vpop.f32.mrb[6].mxu0  ;;  %v4632_v14 = vadd.f32 %v521_v3, %v4608_v24  ;;  %v523_v19 = vpop.f32.mrb[6].mxu1 }
 0x16d   :  { %v4634_v29 = vadd.f32 %v450_v9, %v201_v25  ;;  %v452_v30 = vpop.f32.mrb[7].mxu0  ;;  %v4637_v32 = vadd.f32 %v523_v19, %v4600_v21  ;;  %v525_v34 = vpop.f32.mrb[7].mxu1 }
 0x16e   :  { %5623 = vst [vmem:[#allocation22_spill] sm:$0xff] %v4632_v14  ;;  %v4639_v45 = vadd.f32 %v452_v30, %v205_v28  ;;  %v4642_v48 = vadd.f32 %v525_v34, %v4608_v24 }
 0x16f   :  { %5624 = vst [vmem:[#allocation23_spill] sm:$0xff] %v4634_v29  ;;  %5625 = vst [vmem:[#allocation24_spill] sm:$0xff] %v4637_v32 }
 0x170   :  { %5626 = vst [vmem:[#allocation25_spill] sm:$0xff] %v4639_v45  ;;  %5627 = vst [vmem:[#allocation26_spill] sm:$0xff] %v4642_v48 }
 0x172   :  { %v456_v17 = vpop.f32.mrb[8].mxu0  ;;  %v529_v56 = vpop.f32.mrb[8].mxu1 }
 0x173   :  { %v4644_v20 = vadd.f32 %v456_v17, %v201_v25  ;;  %v458_v16 = vpop.f32.mrb[9].mxu0  ;;  %v4647_v3 = vadd.f32 %v529_v56, %v4600_v21  ;;  %v531_v9 = vpop.f32.mrb[9].mxu1 }
 0x174   :  { %v4649_v18 = vadd.f32 %v458_v16, %v205_v28  ;;  %v460_v0 = vpop.f32.mrb[10].mxu0  ;;  %v4652_v19 = vadd.f32 %v531_v9, %v4608_v24  ;;  %v533_v30 = vpop.f32.mrb[10].mxu1 }
 0x175   :  { %5628 = vst [vmem:[#allocation27_spill] sm:$0xff] %v4644_v20  ;;  %5629 = vst [vmem:[#allocation28_spill] sm:$0xff] %v4647_v3  ;;  %v4654_v15 = vadd.f32 %v460_v0, %v201_v25  ;;  %v462_v34 = vpop.f32.mrb[11].mxu0  ;;  %v4657_v48 = vadd.f32 %v533_v30, %v4600_v21  ;;  %v535_v17 = vpop.f32.mrb[11].mxu1 }
 0x176   :  { %5630 = vst [vmem:[#allocation29_spill] sm:$0xff] %v4649_v18  ;;  %5631 = vst [vmem:[#allocation30_spill] sm:$0xff] %v4652_v19  ;;  %v4659_v20 = vadd.f32 %v462_v34, %v205_v28  ;;  %v4662_v56 = vadd.f32 %v535_v17, %v4608_v24 }
 0x177   :  { %5632 = vst [vmem:[#allocation31_spill] sm:$0xff] %v4654_v15  ;;  %5633 = vst [vmem:[#allocation32_spill] sm:$0xff] %v4657_v48 }
 0x178   :  { %5634 = vst [vmem:[#allocation33_spill] sm:$0xff] %v4659_v20  ;;  %5635 = vst [vmem:[#allocation34_spill] sm:$0xff] %v4662_v56 }
 0x17a   :  { %v466_v3 = vpop.f32.mrb[12].mxu0  ;;  %v539_v16 = vpop.f32.mrb[12].mxu1 }
 0x17b   :  { %v4664_v18 = vadd.f32 %v466_v3, %v201_v25  ;;  %v468_v45 = vpop.f32.mrb[13].mxu0  ;;  %v4667_v9 = vadd.f32 %v539_v16, %v4600_v21  ;;  %v541_v0 = vpop.f32.mrb[13].mxu1 }
 0x17c   :  { %v4669_v15 = vadd.f32 %v468_v45, %v205_v28  ;;  %v470_v19 = vpop.f32.mrb[14].mxu0  ;;  %v4672_v30 = vadd.f32 %v541_v0, %v4608_v24  ;;  %v543_v34 = vpop.f32.mrb[14].mxu1  ;;  %v437_v45 = vadd.f32 %v4602_v22, %v201_v25  ;;  %v439_v0 = vadd.f32 %v438_v26, %v205_v28 }
 0x17d   :  { %5636 = vst [vmem:[#allocation35_spill] sm:$0xff] %v4664_v18  ;;  %5637 = vst [vmem:[#allocation36_spill] sm:$0xff] %v4667_v9  ;;  %v4674_v20 = vadd.f32 %v470_v19, %v201_v25  ;;  %v472_v17 = vpop.f32.mrb[15].mxu0  ;;  %v4677_v56 = vadd.f32 %v543_v34, %v4600_v21  ;;  %v545_v3 = vpop.f32.mrb[15].mxu1 }
 0x17e   :  { %5638 = vst [vmem:[#allocation37_spill] sm:$0xff] %v4669_v15  ;;  %5639 = vst [vmem:[#allocation38_spill] sm:$0xff] %v4672_v30  ;;  %v4679_v18 = vadd.f32 %v472_v17, %v205_v28  ;;  %v4682_v16 = vadd.f32 %v545_v3, %v4608_v24  ;;  %v510_v15 = vadd.f32 %v4604_v23, %v4600_v21 }
 0x17f   :  { %5640 = vst [vmem:[#allocation39_spill] sm:$0xff] %v4674_v20  ;;  %5641 = vst [vmem:[#allocation40_spill] sm:$0xff] %v4677_v56  ;;  %v512_v30 = vadd.f32 %v511_v27, %v4608_v24 }
 0x180   :  { %5642 = vst [vmem:[#allocation41_spill] sm:$0xff] %v4679_v18  ;;  %5643 = vst [vmem:[#allocation42_spill] sm:$0xff] %v4682_v16 }
 0x182   :  { %v778_v19 = vpop.f32.mrb[16].mxu0  ;;  %v819_v20 = vpop.f32.mrb[16].mxu1 }
 0x183   :  { %v826_v9 = vadd.f32 %v778_v19, %v437_v45  ;;  %v828_v48 = vadd.f32 %v819_v20, %v510_v15  ;;  %v780_v34 = vpop.f32.mrb[17].mxu0  ;;  %v821_v56 = vpop.f32.mrb[17].mxu1 }
 0x184   :  { %v827_v32 = vadd.f32 %v780_v34, %v439_v0  ;;  %v829_v17 = vadd.f32 %v821_v56, %v512_v30  ;;  %v782_v18 = vpop.f32.mrb[18].mxu0  ;;  %v823_v29 = vpop.f32.mrb[18].mxu1 }
 0x185   :  { %v3398_v3 = vmul.f32 -1.442695, %v826_v9  ;;  %v783_v16 = vpop.f32.mrb[19].mxu0  ;;  %v824_v14 = vpop.f32.mrb[19].mxu1  ;;  %v3400_v21 = vmul.f32 -1.442695, %v828_v48 }
 0x186   :  { %v3399_v22 = vmul.f32 -1.442695, %v827_v32  ;;  %v5644_v16 = vmov 0  }
 0x187   :  { %3806 = vpow2.f32 %v3398_v3 }
 0x188   :  { %3808 = vpow2.f32 %v3399_v22 }
 0x189   :  { %3810 = vtanh.f32 %v829_v17 }
 0x18a   :  { %3812 = vpow2.f32 %v3400_v21 }
 0x191   :  { %v3807_v23 = vpop.eup %3806 }
 0x192   :  { %v839_v25 = vadd.f32 1.0, %v3807_v23  ;;  %v3809_v24 = vpop.eup %3808 }
 0x193   :  { %v840_v15 = vadd.f32 1.0, %v3809_v24  ;;  %v3811_v20 = vpop.eup %3810 }
 0x194   :  { %3814 = vrcp.f32 %v839_v25  ;;  %v3813_v26 = vpop.eup %3812 }
 0x195   :  { %3816 = vrcp.f32 %v840_v15  ;;  %v841_v29 = vadd.f32 1.0, %v3813_v26 }
 0x197   :  { %3818 = vrcp.f32 %v841_v29 }
 0x19e   :  { %v3815_v27 = vpop.eup %3814 }
 0x19f   :  { %v850_v18 = vmul.f32 %v3815_v27, %v3811_v20  ;;  %v3817_v28 = vpop.eup %3816 }
 0x1a0   :  { %v849_v56 = vmul.f32 0.0, %v3817_v28 }
 0x1a1   :  { %v3819_v32 = vpop.eup %3818 }
 0x1a2   :  { %v4688_v14 = vadd.f32 %v850_v18, %v849_v56 }
 0x1a4   :  { %3820 = vtanh.f32 %v4688_v14 }
 0x1ae   :  { %v3821_v48 = vpop.eup %3820 }
 0x1af   :  { %v853_v9 = vmul.f32 %v3821_v48, %v3819_v32 }
 0x1b1   :  { %v854_v30 = vpack.c.bf16 %v853_v9, %v853_v9 }
 0x1b3   :  { %855 = vst [vmem:[#allocation3] sm:$0xf] %v854_v30  ;;  %894 = vmatmul.mubr.bf16.vlgmr.msra.gmra.mrb[20].mxu0 %v854_v30  ;;  %935 = vmatmul.mubr.bf16.vlgmr.msra.gmra.mrb[20].mxu1 %v854_v30 }
 0x1b4   :  { %980 = vmatpush1.bf16.msra.mxu0 %v4451_v38  ;;  %1021 = vmatpush1.bf16.msra.mxu1 %v4453_v39 }
 0x1b5   :  { %981 = vmatprep.subr.bf16.mxu0 %v4457_v40  ;;  %1022 = vmatprep.subr.bf16.mxu1 %v4459_v41 }
 0x1b6   :  { %1011 = vmatprep.mubr.bf16.mxu0 %v5644_v16  ;;  %1052 = vmatprep.mubr.bf16.mxu1 %v5644_v16 }
 0x1b8   :  { %982 = vmatpush1.bf16.msra.mxu0 %v4461_v42  ;;  %1023 = vmatpush1.bf16.msra.mxu1 %v4463_v43 }
 0x1b9   :  { %983 = vmatprep.subr.bf16.mxu0 %v4467_v46  ;;  %1024 = vmatprep.subr.bf16.mxu1 %v4471_v47 }
 0x1bc   :  { %984 = vmatpush1.bf16.msra.mxu0 %v4475_v49  ;;  %1025 = vmatpush1.bf16.msra.mxu1 %v4477_v50 }
 0x1bd   :  { %985 = vmatprep.subr.bf16.mxu0 %v4481_v51  ;;  %1026 = vmatprep.subr.bf16.mxu1 %v4485_v52 }
 0x1c0   :  { %986 = vmatpush1.bf16.msra.mxu0 %v4487_v53  ;;  %1027 = vmatpush1.bf16.msra.mxu1 %v4489_v54 }
 0x1c1   :  { %987 = vmatprep.subr.bf16.mxu0 %v4495_v57  ;;  %1028 = vmatprep.subr.bf16.mxu1 %v4497_v58 }
 0x1c4   :  { %988 = vmatpush1.bf16.msra.mxu0 %v4501_v59  ;;  %1029 = vmatpush1.bf16.msra.mxu1 %v4503_v60 }
 0x1c5   :  { %989 = vmatprep.subr.bf16.mxu0 %v4505_v62  ;;  %1030 = vmatprep.subr.bf16.mxu1 %v4507_v63 }
 0x1c8   :  { %990 = vmatpush1.bf16.msra.mxu0 %v4513_v1  ;;  %1031 = vmatpush1.bf16.msra.mxu1 %v4515_v2 }
 0x1c9   :  { %991 = vmatprep.subr.bf16.mxu0 %v4517_v5  ;;  %1032 = vmatprep.subr.bf16.mxu1 %v4519_v6 }
 0x1cc   :  { %992 = vmatpush1.bf16.msra.mxu0 %v4527_v7  ;;  %1033 = vmatpush1.bf16.msra.mxu1 %v4529_v8 }
 0x1cd   :  { %993 = vmatprep.subr.bf16.mxu0 %v4531_v10  ;;  %1034 = vmatprep.subr.bf16.mxu1 %v4533_v11 }
 0x1d0   :  { %994 = vmatpush1.bf16.msra.mxu0 %v4539_v12  ;;  %1035 = vmatpush1.bf16.msra.mxu1 %v4541_v13 }
 0x1d1   :  { %1097 = vmatprep.subr.bf16.mxu0 %v4447_v35  ;;  %1138 = vmatprep.subr.bf16.mxu1 %v4449_v36 }
 0x286   :  { %v895_v45 = vpop.f32.mrb[20].mxu0  ;;  %v936_v0 = vpop.f32.mrb[20].mxu1 }
 0x287   :  { %v943_v19 = vadd.f32 %v895_v45, %v4614_v31  ;;  %v945_v34 = vadd.f32 %v936_v0, %v4617_v33  ;;  %v897_v17 = vpop.f32.mrb[21].mxu0  ;;  %v938_v3 = vpop.f32.mrb[21].mxu1 }
 0x288   :  { %v944_v22 = vadd.f32 %v897_v17, %v4619_v37  ;;  %v946_v21 = vadd.f32 %v938_v3, %v4622_v44  ;;  %v899_v23 = vpop.f32.mrb[22].mxu0  ;;  %v940_v25 = vpop.f32.mrb[22].mxu1 }
 0x289   :  { %v3401_v24 = vmul.f32 -1.442695, %v943_v19  ;;  %v900_v15 = vpop.f32.mrb[23].mxu0  ;;  %v941_v20 = vpop.f32.mrb[23].mxu1  ;;  %v3403_v27 = vmul.f32 -1.442695, %v945_v34 }
 0x28a   :  { %v3402_v26 = vmul.f32 -1.442695, %v944_v22 }
 0x28b   :  { %3822 = vpow2.f32 %v3401_v24  ;;  %v5645_v24 = vld [vmem:[#allocation22_spill] sm:$0xff] }
 0x28c   :  { %3824 = vpow2.f32 %v3402_v26 }
 0x28d   :  { %3826 = vtanh.f32 %v946_v21 }
 0x28e   :  { %3828 = vpow2.f32 %v3403_v27 }
 0x295   :  { %v3823_v18 = vpop.eup %3822 }
 0x296   :  { %v956_v28 = vadd.f32 1.0, %v3823_v18  ;;  %v3825_v31 = vpop.eup %3824 }
 0x297   :  { %v957_v33 = vadd.f32 1.0, %v3825_v31  ;;  %v3827_v37 = vpop.eup %3826 }
 0x298   :  { %3830 = vrcp.f32 %v956_v28  ;;  %v3829_v29 = vpop.eup %3828 }
 0x299   :  { %3832 = vrcp.f32 %v957_v33  ;;  %v958_v48 = vadd.f32 1.0, %v3829_v29 }
 0x29b   :  { %3834 = vrcp.f32 %v958_v48 }
 0x2a2   :  { %v3831_v44 = vpop.eup %3830 }
 0x2a3   :  { %v967_v56 = vmul.f32 %v3831_v44, %v3827_v37  ;;  %v3833_v32 = vpop.eup %3832 }
 0x2a4   :  { %v966_v9 = vmul.f32 %v3833_v32, %v4688_v14 }
 0x2a5   :  { %v3835_v45 = vpop.eup %3834 }
 0x2a6   :  { %v4730_v30 = vadd.f32 %v967_v56, %v966_v9 }
 0x2a8   :  { %3836 = vtanh.f32 %v4730_v30 }
 0x2b2   :  { %v3837_v0 = vpop.eup %3836 }
 0x2b3   :  { %v970_v19 = vmul.f32 %v3837_v0, %v3835_v45 }
 0x2b5   :  { %v971_v34 = vpack.c.bf16 %v970_v19, %v970_v19 }
 0x2b7   :  { %973 = vst [vmem:[#allocation3 + $0x4] sm:$0xf] %v971_v34  ;;  %1012 = vmatmul.mubr.bf16.vlgmr.msra.gmra.mrb[24].mxu0 %v971_v34  ;;  %1053 = vmatmul.mubr.bf16.vlgmr.msra.gmra.mrb[24].mxu1 %v971_v34 }
 0x2b8   :  { %1098 = vmatpush1.bf16.msra.mxu0 %v4451_v38  ;;  %1139 = vmatpush1.bf16.msra.mxu1 %v4453_v39 }
 0x2b9   :  { %1099 = vmatprep.subr.bf16.mxu0 %v4457_v40  ;;  %1140 = vmatprep.subr.bf16.mxu1 %v4459_v41 }
 0x2ba   :  { %1129 = vmatprep.mubr.bf16.mxu0 %v5644_v16  ;;  %1170 = vmatprep.mubr.bf16.mxu1 %v5644_v16 }
 0x2bc   :  { %1100 = vmatpush1.bf16.msra.mxu0 %v4461_v42  ;;  %1141 = vmatpush1.bf16.msra.mxu1 %v4463_v43 }
 0x2bd   :  { %1101 = vmatprep.subr.bf16.mxu0 %v4467_v46  ;;  %1142 = vmatprep.subr.bf16.mxu1 %v4471_v47 }
 0x2c0   :  { %1102 = vmatpush1.bf16.msra.mxu0 %v4475_v49  ;;  %1143 = vmatpush1.bf16.msra.mxu1 %v4477_v50 }
 0x2c1   :  { %1103 = vmatprep.subr.bf16.mxu0 %v4481_v51  ;;  %1144 = vmatprep.subr.bf16.mxu1 %v4485_v52 }
 0x2c4   :  { %1104 = vmatpush1.bf16.msra.mxu0 %v4487_v53  ;;  %1145 = vmatpush1.bf16.msra.mxu1 %v4489_v54 }
 0x2c5   :  { %1105 = vmatprep.subr.bf16.mxu0 %v4495_v57  ;;  %1146 = vmatprep.subr.bf16.mxu1 %v4497_v58 }
 0x2c8   :  { %1106 = vmatpush1.bf16.msra.mxu0 %v4501_v59  ;;  %1147 = vmatpush1.bf16.msra.mxu1 %v4503_v60 }
 0x2c9   :  { %1107 = vmatprep.subr.bf16.mxu0 %v4505_v62  ;;  %1148 = vmatprep.subr.bf16.mxu1 %v4507_v63 }
 0x2cc   :  { %1108 = vmatpush1.bf16.msra.mxu0 %v4513_v1  ;;  %1149 = vmatpush1.bf16.msra.mxu1 %v4515_v2 }
 0x2cd   :  { %1109 = vmatprep.subr.bf16.mxu0 %v4517_v5  ;;  %1150 = vmatprep.subr.bf16.mxu1 %v4519_v6 }
 0x2d0   :  { %1110 = vmatpush1.bf16.msra.mxu0 %v4527_v7  ;;  %1151 = vmatpush1.bf16.msra.mxu1 %v4529_v8 }
 0x2d1   :  { %1111 = vmatprep.subr.bf16.mxu0 %v4531_v10  ;;  %1152 = vmatprep.subr.bf16.mxu1 %v4533_v11 }
 0x2d4   :  { %1112 = vmatpush1.bf16.msra.mxu0 %v4539_v12  ;;  %1153 = vmatpush1.bf16.msra.mxu1 %v4541_v13 }
 0x2d5   :  { %1215 = vmatprep.subr.bf16.mxu0 %v4447_v35  ;;  %1256 = vmatprep.subr.bf16.mxu1 %v4449_v36 }
 0x38a   :  { %v1013_v14 = vpop.f32.mrb[24].mxu0  ;;  %v1054_v17 = vpop.f32.mrb[24].mxu1 }
 0x38b   :  { %v1061_v3 = vadd.f32 %v1013_v14, %v4624_v55  ;;  %v1063_v22 = vadd.f32 %v1054_v17, %v4627_v61  ;;  %v1015_v21 = vpop.f32.mrb[25].mxu0  ;;  %v1056_v23 = vpop.f32.mrb[25].mxu1 }
 0x38c   :  { %v1062_v25 = vadd.f32 %v1015_v21, %v4629_v4  ;;  %v1064_v15 = vadd.f32 %v1056_v23, %v5645_v24  ;;  %v1017_v20 = vpop.f32.mrb[26].mxu0  ;;  %v1058_v26 = vpop.f32.mrb[26].mxu1 }
 0x38d   :  { %v3404_v27 = vmul.f32 -1.442695, %v1061_v3  ;;  %v1018_v18 = vpop.f32.mrb[27].mxu0  ;;  %v1059_v28 = vpop.f32.mrb[27].mxu1  ;;  %v3406_v36 = vmul.f32 -1.442695, %v1063_v22 }
 0x38e   :  { %v3405_v35 = vmul.f32 -1.442695, %v1062_v25 }
 0x38f   :  { %3838 = vpow2.f32 %v3404_v27 }
 0x390   :  { %3840 = vpow2.f32 %v3405_v35 }
 0x391   :  { %3842 = vtanh.f32 %v1064_v15 }
 0x392   :  { %3844 = vpow2.f32 %v3406_v36 }
 0x399   :  { %v3839_v31 = vpop.eup %3838 }
 0x39a   :  { %v1074_v33 = vadd.f32 1.0, %v3839_v31  ;;  %v3841_v55 = vpop.eup %3840 }
 0x39b   :  { %v1075_v61 = vadd.f32 1.0, %v3841_v55  ;;  %v3843_v4 = vpop.eup %3842  ;;  %v4821_v55 = vld [vmem:[#allocation9] ss:$16 sps:$4 sm:$0xff]  }
 0x39c   :  { %3846 = vrcp.f32 %v1074_v33  ;;  %v3845_v37 = vpop.eup %3844 }
 0x39d   :  { %3848 = vrcp.f32 %v1075_v61  ;;  %v1076_v32 = vadd.f32 1.0, %v3845_v37  ;;  %v4824_v61 = vld [vmem:[#allocation9 + $0x8] ss:$16 sps:$4 sm:$0xff]   ;;  %v4830_v37 = vld [vmem:[#allocation9 + $0x2c] ss:$16 sps:$4 sm:$0xff]  }
 0x39f   :  { %3850 = vrcp.f32 %v1076_v32  ;;  %v4844_v32 = vld [vmem:[#allocation9 + $0x4c] ss:$16 sps:$4 sm:$0xff]  }
 0x3a6   :  { %v3847_v29 = vpop.eup %3846 }
 0x3a7   :  { %v1085_v44 = vmul.f32 %v3847_v29, %v3843_v4  ;;  %v3849_v56 = vpop.eup %3848  ;;  %v4827_v4 = vld [vmem:[#allocation9 + $0x24] ss:$16 sps:$4 sm:$0xff]   ;;  %v4835_v29 = vld [vmem:[#allocation9 + $0x20] ss:$16 sps:$4 sm:$0xff]  }
 0x3a8   :  { %v1084_v48 = vmul.f32 %v3849_v56, %v4730_v30  ;;  %v4841_v56 = vld [vmem:[#allocation9 + $0x44] ss:$16 sps:$4 sm:$0xff]  }
 0x3a9   :  { %v3851_v45 = vpop.eup %3850 }
 0x3aa   :  { %v4772_v9 = vadd.f32 %v1085_v44, %v1084_v48  ;;  %v4838_v44 = vld [vmem:[#allocation9 + $0x28] ss:$16 sps:$4 sm:$0xff]   ;;  %v4847_v48 = vld [vmem:[#allocation9 + $0x40] ss:$16 sps:$4 sm:$0xff]  }
 0x3ac   :  { %3852 = vtanh.f32 %v4772_v9 }
 0x3b6   :  { %v3853_v0 = vpop.eup %3852 }
 0x3b7   :  { %v1088_v19 = vmul.f32 %v3853_v0, %v3851_v45  ;;  %v4853_v45 = vld [vmem:[#allocation9 + $0x64] ss:$16 sps:$4 sm:$0xff]   ;;  %v4856_v0 = vld [vmem:[#allocation9 + $0x6c] ss:$16 sps:$4 sm:$0xff]  }
 0x3b9   :  { %v1089_v34 = vpack.c.bf16 %v1088_v19, %v1088_v19  ;;  %v4859_v19 = vld [vmem:[#allocation9 + $0x60] ss:$16 sps:$4 sm:$0xff]  }
 0x3bb   :  { %1091 = vst [vmem:[#allocation3 + $0x8] sm:$0xf] %v1089_v34  ;;  %1130 = vmatmul.mubr.bf16.vlgmr.msra.gmra.mrb[28].mxu0 %v1089_v34  ;;  %1171 = vmatmul.mubr.bf16.vlgmr.msra.gmra.mrb[28].mxu1 %v1089_v34  ;;  %v4862_v34 = vld [vmem:[#allocation9 + $0x68] ss:$16 sps:$4 sm:$0xff]  }
 0x3bc   :  { %1216 = vmatpush1.bf16.msra.mxu0 %v4451_v38  ;;  %1257 = vmatpush1.bf16.msra.mxu1 %v4453_v39  ;;  %v4807_v38 = vld [vmem:[#allocation9 + $0x4] ss:$16 sps:$4 sm:$0xff]   ;;  %v4810_v39 = vld [vmem:[#allocation9 + $0xc] ss:$16 sps:$4 sm:$0xff]  }
 0x3bd   :  { %1217 = vmatprep.subr.bf16.mxu0 %v4457_v40  ;;  %1258 = vmatprep.subr.bf16.mxu1 %v4459_v41 }
 0x3be   :  { %1247 = vmatprep.mubr.bf16.mxu0 %v5644_v16  ;;  %1288 = vmatprep.mubr.bf16.mxu1 %v5644_v16 }
 0x3c0   :  { %1218 = vmatpush1.bf16.msra.mxu0 %v4461_v42  ;;  %1259 = vmatpush1.bf16.msra.mxu1 %v4463_v43  ;;  %v5646_v42 = vld [vmem:[#allocation23_spill] sm:$0xff] }
 0x3c1   :  { %1219 = vmatprep.subr.bf16.mxu0 %v4467_v46  ;;  %1260 = vmatprep.subr.bf16.mxu1 %v4471_v47  ;;  %v5647_v46 = vld [vmem:[#allocation24_spill] sm:$0xff] }
 0x3c4   :  { %1220 = vmatpush1.bf16.msra.mxu0 %v4475_v49  ;;  %1261 = vmatpush1.bf16.msra.mxu1 %v4477_v50 }
 0x3c5   :  { %1221 = vmatprep.subr.bf16.mxu0 %v4481_v51  ;;  %1262 = vmatprep.subr.bf16.mxu1 %v4485_v52  ;;  %v5648_v51 = vld [vmem:[#allocation25_spill] sm:$0xff] }
 0x3c8   :  { %1222 = vmatpush1.bf16.msra.mxu0 %v4487_v53  ;;  %1263 = vmatpush1.bf16.msra.mxu1 %v4489_v54  ;;  %v5649_v53 = vld [vmem:[#allocation26_spill] sm:$0xff] }
 0x3c9   :  { %1223 = vmatprep.subr.bf16.mxu0 %v4495_v57  ;;  %1264 = vmatprep.subr.bf16.mxu1 %v4497_v58 }
 0x3cc   :  { %1224 = vmatpush1.bf16.msra.mxu0 %v4501_v59  ;;  %1265 = vmatpush1.bf16.msra.mxu1 %v4503_v60 }
 0x3cd   :  { %1225 = vmatprep.subr.bf16.mxu0 %v4505_v62  ;;  %1266 = vmatprep.subr.bf16.mxu1 %v4507_v63 }
 0x3d0   :  { %1226 = vmatpush1.bf16.msra.mxu0 %v4513_v1  ;;  %1267 = vmatpush1.bf16.msra.mxu1 %v4515_v2 }
 0x3d1   :  { %1227 = vmatprep.subr.bf16.mxu0 %v4517_v5  ;;  %1268 = vmatprep.subr.bf16.mxu1 %v4519_v6 }
 0x3d4   :  { %1228 = vmatpush1.bf16.msra.mxu0 %v4527_v7  ;;  %1269 = vmatpush1.bf16.msra.mxu1 %v4529_v8 }
 0x3d5   :  { %1229 = vmatprep.subr.bf16.mxu0 %v4531_v10  ;;  %1270 = vmatprep.subr.bf16.mxu1 %v4533_v11 }
 0x3d8   :  { %1230 = vmatpush1.bf16.msra.mxu0 %v4539_v12  ;;  %1271 = vmatpush1.bf16.msra.mxu1 %v4541_v13 }
 0x3d9   :  { %1333 = vmatprep.subr.bf16.mxu0 %v4807_v38  ;;  %1374 = vmatprep.subr.bf16.mxu1 %v4810_v39 }
 0x48e   :  { %v1131_v40 = vpop.f32.mrb[28].mxu0  ;;  %v1172_v41 = vpop.f32.mrb[28].mxu1 }
 0x48f   :  { %v1179_v43 = vadd.f32 %v1131_v40, %v5646_v42  ;;  %v1181_v47 = vadd.f32 %v1172_v41, %v5647_v46  ;;  %v1133_v49 = vpop.f32.mrb[29].mxu0  ;;  %v1174_v50 = vpop.f32.mrb[29].mxu1  ;;  %v4865_v40 = vld [vmem:[#allocation9 + $0x84] ss:$16 sps:$4 sm:$0xff]   ;;  %v4868_v41 = vld [vmem:[#allocation9 + $0x8c] ss:$16 sps:$4 sm:$0xff]  }
 0x490   :  { %v1180_v52 = vadd.f32 %v1133_v49, %v5648_v51  ;;  %v1182_v54 = vadd.f32 %v1174_v50, %v5649_v53  ;;  %v1135_v57 = vpop.f32.mrb[30].mxu0  ;;  %v1176_v58 = vpop.f32.mrb[30].mxu1  ;;  %v4871_v42 = vld [vmem:[#allocation9 + $0x80] ss:$16 sps:$4 sm:$0xff]   ;;  %v5652_v46 = vld [vmem:[#allocation29_spill] sm:$0xff] }
 0x491   :  { %v3407_v59 = vmul.f32 -1.442695, %v1179_v43  ;;  %v1136_v60 = vpop.f32.mrb[31].mxu0  ;;  %v1177_v30 = vpop.f32.mrb[31].mxu1  ;;  %v3409_v17 = vmul.f32 -1.442695, %v1181_v47 }
 0x492   :  { %v3408_v14 = vmul.f32 -1.442695, %v1180_v52  ;;  %v4874_v43 = vld [vmem:[#allocation9 + $0x88] ss:$16 sps:$4 sm:$0xff]   ;;  %v5653_v47 = vld [vmem:[#allocation30_spill] sm:$0xff] }
 0x493   :  { %3854 = vpow2.f32 %v3407_v59 }
 0x494   :  { %3856 = vpow2.f32 %v3408_v14 }
 0x495   :  { %3858 = vtanh.f32 %v1182_v54 }
 0x496   :  { %3860 = vpow2.f32 %v3409_v17 }
 0x49d   :  { %v3855_v3 = vpop.eup %3854 }
 0x49e   :  { %v1192_v22 = vadd.f32 1.0, %v3855_v3  ;;  %v3857_v21 = vpop.eup %3856 }
 0x49f   :  { %v1193_v23 = vadd.f32 1.0, %v3857_v21  ;;  %v3859_v25 = vpop.eup %3858 }
 0x4a0   :  { %3862 = vrcp.f32 %v1192_v22  ;;  %v3861_v24 = vpop.eup %3860 }
 0x4a1   :  { %3864 = vrcp.f32 %v1193_v23  ;;  %v1194_v27 = vadd.f32 1.0, %v3861_v24 }
 0x4a3   :  { %3866 = vrcp.f32 %v1194_v27  ;;  %v4922_v27 = vld [vmem:[#allocation9 + $0xac] ss:$16 sps:$4 sm:$0xff]  }
 0x4aa   :  { %v3863_v15 = vpop.eup %3862 }
 0x4ab   :  { %v1203_v20 = vmul.f32 %v3863_v15, %v3859_v25  ;;  %v3865_v26 = vpop.eup %3864 }
 0x4ac   :  { %v1202_v18 = vmul.f32 %v3865_v26, %v4772_v9  ;;  %v4850_v9 = vld [vmem:[#allocation9 + $0x48] ss:$16 sps:$4 sm:$0xff]   ;;  %v4919_v26 = vld [vmem:[#allocation9 + $0xa4] ss:$16 sps:$4 sm:$0xff]  }
 0x4ad   :  { %v3867_v35 = vpop.eup %3866 }
 0x4ae   :  { %v4818_v28 = vadd.f32 %v1203_v20, %v1202_v18  ;;  %v4925_v18 = vld [vmem:[#allocation9 + $0xa0] ss:$16 sps:$4 sm:$0xff]  }
 0x4b0   :  { %3868 = vtanh.f32 %v4818_v28 }
 0x4ba   :  { %v3869_v36 = vpop.eup %3868 }
 0x4bb   :  { %v1206_v31 = vmul.f32 %v3869_v36, %v3867_v35  ;;  %v4931_v35 = vld [vmem:[#allocation9 + $0xc4] ss:$16 sps:$4 sm:$0xff]   ;;  %v4934_v36 = vld [vmem:[#allocation9 + $0xcc] ss:$16 sps:$4 sm:$0xff]  }
 0x4bd   :  { %v1207_v33 = vpack.c.bf16 %v1206_v31, %v1206_v31  ;;  %v4937_v31 = vld [vmem:[#allocation9 + $0xc0] ss:$16 sps:$4 sm:$0xff]  }
 0x4bf   :  { %1209 = vst [vmem:[#allocation3 + $0xc] sm:$0xf] %v1207_v33  ;;  %1248 = vmatmul.mubr.bf16.vlgmr.msra.gmra.mrb[32].mxu0 %v1207_v33  ;;  %1289 = vmatmul.mubr.bf16.vlgmr.msra.gmra.mrb[32].mxu1 %v1207_v33  ;;  %v4940_v33 = vld [vmem:[#allocation9 + $0xc8] ss:$16 sps:$4 sm:$0xff]  }
 0x4c0   :  { %1334 = vmatpush1.bf16.msra.mxu0 %v4821_v55  ;;  %1375 = vmatpush1.bf16.msra.mxu1 %v4824_v61 }
 0x4c1   :  { %1335 = vmatprep.subr.bf16.mxu0 %v4827_v4  ;;  %1376 = vmatprep.subr.bf16.mxu1 %v4830_v37 }
 0x4c2   :  { %1365 = vmatprep.mubr.bf16.mxu0 %v5644_v16  ;;  %1406 = vmatprep.mubr.bf16.mxu1 %v5644_v16 }
 0x4c4   :  { %1336 = vmatpush1.bf16.msra.mxu0 %v4835_v29  ;;  %1377 = vmatpush1.bf16.msra.mxu1 %v4838_v44 }
 0x4c5   :  { %1337 = vmatprep.subr.bf16.mxu0 %v4841_v56  ;;  %1378 = vmatprep.subr.bf16.mxu1 %v4844_v32 }
 0x4c8   :  { %1338 = vmatpush1.bf16.msra.mxu0 %v4847_v48  ;;  %1379 = vmatpush1.bf16.msra.mxu1 %v4850_v9 }
 0x4c9   :  { %1339 = vmatprep.subr.bf16.mxu0 %v4853_v45  ;;  %1380 = vmatprep.subr.bf16.mxu1 %v4856_v0 }
 0x4cc   :  { %1340 = vmatpush1.bf16.msra.mxu0 %v4859_v19  ;;  %1381 = vmatpush1.bf16.msra.mxu1 %v4862_v34 }
 0x4cd   :  { %1341 = vmatprep.subr.bf16.mxu0 %v4865_v40  ;;  %1382 = vmatprep.subr.bf16.mxu1 %v4868_v41 }
 0x4d0   :  { %1342 = vmatpush1.bf16.msra.mxu0 %v4871_v42  ;;  %1383 = vmatpush1.bf16.msra.mxu1 %v4874_v43 }
 0x4d1   :  { %1343 = vmatprep.subr.bf16.mxu0 %v4505_v62  ;;  %1384 = vmatprep.subr.bf16.mxu1 %v4507_v63 }
 0x4d4   :  { %1344 = vmatpush1.bf16.msra.mxu0 %v4513_v1  ;;  %1385 = vmatpush1.bf16.msra.mxu1 %v4515_v2  ;;  %v5650_v1 = vld [vmem:[#allocation27_spill] sm:$0xff] }
 0x4d5   :  { %1345 = vmatprep.subr.bf16.mxu0 %v4517_v5  ;;  %1386 = vmatprep.subr.bf16.mxu1 %v4519_v6  ;;  %v5651_v5 = vld [vmem:[#allocation28_spill] sm:$0xff] }
 0x4d8   :  { %1346 = vmatpush1.bf16.msra.mxu0 %v4527_v7  ;;  %1387 = vmatpush1.bf16.msra.mxu1 %v4529_v8 }
 0x4d9   :  { %1347 = vmatprep.subr.bf16.mxu0 %v4531_v10  ;;  %1388 = vmatprep.subr.bf16.mxu1 %v4533_v11 }
 0x4dc   :  { %1348 = vmatpush1.bf16.msra.mxu0 %v4539_v12  ;;  %1389 = vmatpush1.bf16.msra.mxu1 %v4541_v13 }
 0x4dd   :  { %1451 = vmatprep.subr.bf16.mxu0 %v4807_v38  ;;  %1492 = vmatprep.subr.bf16.mxu1 %v4810_v39 }
 0x592   :  { %v1249_v62 = vpop.f32.mrb[32].mxu0  ;;  %v1290_v63 = vpop.f32.mrb[32].mxu1 }
 0x593   :  { %v1297_v2 = vadd.f32 %v1249_v62, %v5650_v1  ;;  %v1299_v6 = vadd.f32 %v1290_v63, %v5651_v5  ;;  %v1251_v7 = vpop.f32.mrb[33].mxu0  ;;  %v1292_v8 = vpop.f32.mrb[33].mxu1  ;;  %v4943_v62 = vld [vmem:[#allocation9 + $0xe4] ss:$16 sps:$4 sm:$0xff]   ;;  %v4946_v63 = vld [vmem:[#allocation9 + $0xec] ss:$16 sps:$4 sm:$0xff]  }
 0x594   :  { %v1298_v10 = vadd.f32 %v1251_v7, %v5652_v46  ;;  %v1300_v11 = vadd.f32 %v1292_v8, %v5653_v47  ;;  %v1253_v49 = vpop.f32.mrb[34].mxu0  ;;  %v1294_v12 = vpop.f32.mrb[34].mxu1  ;;  %v4949_v1 = vld [vmem:[#allocation9 + $0xe0] ss:$16 sps:$4 sm:$0xff]   ;;  %v5654_v7 = vld [vmem:[#allocation31_spill] sm:$0xff] }
 0x595   :  { %v3410_v50 = vmul.f32 -1.442695, %v1297_v2  ;;  %v1254_v13 = vpop.f32.mrb[35].mxu0  ;;  %v1295_v51 = vpop.f32.mrb[35].mxu1  ;;  %v3412_v53 = vmul.f32 -1.442695, %v1299_v6 }
 0x596   :  { %v3411_v52 = vmul.f32 -1.442695, %v1298_v10  ;;  %v4952_v2 = vld [vmem:[#allocation9 + $0xe8] ss:$16 sps:$4 sm:$0xff]   ;;  %v5655_v46 = vld [vmem:[#allocation32_spill] sm:$0xff] }
 0x597   :  { %3870 = vpow2.f32 %v3410_v50  ;;  %v5656_v49 = vld [vmem:[#allocation33_spill] sm:$0xff]  ;;  %v5657_v50 = vld [vmem:[#allocation34_spill] sm:$0xff] }
 0x598   :  { %3872 = vpow2.f32 %v3411_v52 }
 0x599   :  { %3874 = vtanh.f32 %v1300_v11 }
 0x59a   :  { %3876 = vpow2.f32 %v3412_v53 }
 0x5a1   :  { %v3871_v54 = vpop.eup %3870 }
 0x5a2   :  { %v1310_v57 = vadd.f32 1.0, %v3871_v54  ;;  %v3873_v58 = vpop.eup %3872 }
 0x5a3   :  { %v1311_v59 = vadd.f32 1.0, %v3873_v58  ;;  %v3875_v60 = vpop.eup %3874 }
 0x5a4   :  { %3878 = vrcp.f32 %v1310_v57  ;;  %v3877_v30 = vpop.eup %3876 }
 0x5a5   :  { %3880 = vrcp.f32 %v1311_v59  ;;  %v1312_v22 = vadd.f32 1.0, %v3877_v30 }
 0x5a7   :  { %3882 = vrcp.f32 %v1312_v22 }
 0x5ae   :  { %v3879_v14 = vpop.eup %3878 }
 0x5af   :  { %v1321_v17 = vmul.f32 %v3879_v14, %v3875_v60  ;;  %v3881_v3 = vpop.eup %3880 }
 0x5b0   :  { %v1320_v21 = vmul.f32 %v3881_v3, %v4818_v28  ;;  %v4928_v28 = vld [vmem:[#allocation9 + $0xa8] ss:$16 sps:$4 sm:$0xff]  }
 0x5b1   :  { %v3883_v25 = vpop.eup %3882 }
 0x5b2   :  { %v4896_v23 = vadd.f32 %v1321_v17, %v1320_v21 }
 0x5b4   :  { %3884 = vtanh.f32 %v4896_v23 }
 0x5be   :  { %v3885_v24 = vpop.eup %3884 }
 0x5bf   :  { %v1324_v15 = vmul.f32 %v3885_v24, %v3883_v25 }
 0x5c1   :  { %v1325_v20 = vpack.c.bf16 %v1324_v15, %v1324_v15 }
 0x5c3   :  { %1327 = vst [vmem:[#allocation3 + $0x10] sm:$0xf] %v1325_v20  ;;  %1366 = vmatmul.mubr.bf16.vlgmr.msra.gmra.mrb[36].mxu0 %v1325_v20  ;;  %1407 = vmatmul.mubr.bf16.vlgmr.msra.gmra.mrb[36].mxu1 %v1325_v20 }
 0x5c4   :  { %1452 = vmatpush1.bf16.msra.mxu0 %v4821_v55  ;;  %1493 = vmatpush1.bf16.msra.mxu1 %v4824_v61 }
 0x5c5   :  { %1453 = vmatprep.subr.bf16.mxu0 %v4827_v4  ;;  %1494 = vmatprep.subr.bf16.mxu1 %v4830_v37 }
 0x5c6   :  { %1483 = vmatprep.mubr.bf16.mxu0 %v5644_v16  ;;  %1524 = vmatprep.mubr.bf16.mxu1 %v5644_v16 }
 0x5c8   :  { %1454 = vmatpush1.bf16.msra.mxu0 %v4835_v29  ;;  %1495 = vmatpush1.bf16.msra.mxu1 %v4838_v44 }
 0x5c9   :  { %1455 = vmatprep.subr.bf16.mxu0 %v4841_v56  ;;  %1496 = vmatprep.subr.bf16.mxu1 %v4844_v32 }
 0x5cc   :  { %1456 = vmatpush1.bf16.msra.mxu0 %v4847_v48  ;;  %1497 = vmatpush1.bf16.msra.mxu1 %v4850_v9 }
 0x5cd   :  { %1457 = vmatprep.subr.bf16.mxu0 %v4853_v45  ;;  %1498 = vmatprep.subr.bf16.mxu1 %v4856_v0 }
 0x5d0   :  { %1458 = vmatpush1.bf16.msra.mxu0 %v4859_v19  ;;  %1499 = vmatpush1.bf16.msra.mxu1 %v4862_v34 }
 0x5d1   :  { %1459 = vmatprep.subr.bf16.mxu0 %v4865_v40  ;;  %1500 = vmatprep.subr.bf16.mxu1 %v4868_v41 }
 0x5d4   :  { %1460 = vmatpush1.bf16.msra.mxu0 %v4871_v42  ;;  %1501 = vmatpush1.bf16.msra.mxu1 %v4874_v43 }
 0x5d5   :  { %1461 = vmatprep.subr.bf16.mxu0 %v4919_v26  ;;  %1502 = vmatprep.subr.bf16.mxu1 %v4922_v27 }
 0x5d8   :  { %1462 = vmatpush1.bf16.msra.mxu0 %v4925_v18  ;;  %1503 = vmatpush1.bf16.msra.mxu1 %v4928_v28 }
 0x5d9   :  { %1463 = vmatprep.subr.bf16.mxu0 %v4931_v35  ;;  %1504 = vmatprep.subr.bf16.mxu1 %v4934_v36 }
 0x5dc   :  { %1464 = vmatpush1.bf16.msra.mxu0 %v4937_v31  ;;  %1505 = vmatpush1.bf16.msra.mxu1 %v4940_v33 }
 0x5dd   :  { %1465 = vmatprep.subr.bf16.mxu0 %v4943_v62  ;;  %1506 = vmatprep.subr.bf16.mxu1 %v4946_v63 }
 0x5e0   :  { %1466 = vmatpush1.bf16.msra.mxu0 %v4949_v1  ;;  %1507 = vmatpush1.bf16.msra.mxu1 %v4952_v2 }
 0x5e1   :  { %1569 = vmatprep.subr.bf16.mxu0 %v4807_v38  ;;  %1610 = vmatprep.subr.bf16.mxu1 %v4810_v39 }
 0x696   :  { %v1367_v5 = vpop.f32.mrb[36].mxu0  ;;  %v1408_v6 = vpop.f32.mrb[36].mxu1 }
 0x697   :  { %v1415_v8 = vadd.f32 %v1367_v5, %v5654_v7  ;;  %v1417_v10 = vadd.f32 %v1408_v6, %v5655_v46  ;;  %v1369_v47 = vpop.f32.mrb[37].mxu0  ;;  %v1410_v11 = vpop.f32.mrb[37].mxu1 }
 0x698   :  { %v1416_v12 = vadd.f32 %v1369_v47, %v5656_v49  ;;  %v1418_v13 = vadd.f32 %v1410_v11, %v5657_v50  ;;  %v1371_v51 = vpop.f32.mrb[38].mxu0  ;;  %v1412_v52 = vpop.f32.mrb[38].mxu1  ;;  %v3706_v49 = vld [vmem:[#allocation10] ss:$16 sps:$4 sm:$0xff]  }
 0x699   :  { %v3413_v53 = vmul.f32 -1.442695, %v1415_v8  ;;  %v1372_v54 = vpop.f32.mrb[39].mxu0  ;;  %v1413_v57 = vpop.f32.mrb[39].mxu1  ;;  %v3415_v39 = vmul.f32 -1.442695, %v1417_v10 }
 0x69a   :  { %v3414_v38 = vmul.f32 -1.442695, %v1416_v12  ;;  %v3709_v12 = vld [vmem:[#allocation10 + $0x8] ss:$16 sps:$4 sm:$0xff]   ;;  %v3717_v51 = vld [vmem:[#allocation10 + $0x2c] ss:$16 sps:$4 sm:$0xff]  }
 0x69b   :  { %3886 = vpow2.f32 %v3413_v53  ;;  %v3712_v52 = vld [vmem:[#allocation10 + $0x20] ss:$16 sps:$4 sm:$0xff]   ;;  %v3715_v53 = vld [vmem:[#allocation10 + $0x28] ss:$16 sps:$4 sm:$0xff]   ;;  %v3720_v54 = vld [vmem:[#allocation10 + $0x44] ss:$16 sps:$4 sm:$0xff]  }
 0x69c   :  { %3888 = vpow2.f32 %v3414_v38  ;;  %v3723_v57 = vld [vmem:[#allocation10 + $0x4c] ss:$16 sps:$4 sm:$0xff]   ;;  %v3718_v38 = vld [vmem:[#allocation10 + $0x40] ss:$16 sps:$4 sm:$0xff]  }
 0x69d   :  { %3890 = vtanh.f32 %v1418_v13  ;;  %v3714_v13 = vld [vmem:[#allocation10 + $0x24] ss:$16 sps:$4 sm:$0xff]  }
 0x69e   :  { %3892 = vpow2.f32 %v3415_v39  ;;  %v3721_v39 = vld [vmem:[#allocation10 + $0x48] ss:$16 sps:$4 sm:$0xff]  }
 0x6a5   :  { %v3887_v58 = vpop.eup %3886 }
 0x6a6   :  { %v1428_v59 = vadd.f32 1.0, %v3887_v58  ;;  %v3889_v60 = vpop.eup %3888  ;;  %v3726_v58 = vld [vmem:[#allocation10 + $0x64] ss:$16 sps:$4 sm:$0xff]  }
 0x6a7   :  { %v1429_v30 = vadd.f32 1.0, %v3889_v60  ;;  %v3891_v14 = vpop.eup %3890  ;;  %v3724_v60 = vld [vmem:[#allocation10 + $0x60] ss:$16 sps:$4 sm:$0xff]  }
 0x6a8   :  { %3894 = vrcp.f32 %v1428_v59  ;;  %v3893_v17 = vpop.eup %3892  ;;  %v3729_v59 = vld [vmem:[#allocation10 + $0x6c] ss:$16 sps:$4 sm:$0xff]  }
 0x6a9   :  { %3896 = vrcp.f32 %v1429_v30  ;;  %v1430_v25 = vadd.f32 1.0, %v3893_v17  ;;  %v3727_v30 = vld [vmem:[#allocation10 + $0x68] ss:$16 sps:$4 sm:$0xff]   ;;  %v3735_v17 = vld [vmem:[#allocation10 + $0x8c] ss:$16 sps:$4 sm:$0xff]  }
 0x6ab   :  { %3898 = vrcp.f32 %v1430_v25  ;;  %v3741_v25 = vld [vmem:[#allocation10 + $0xac] ss:$16 sps:$4 sm:$0xff]  }
 0x6b2   :  { %v3895_v3 = vpop.eup %3894 }
 0x6b3   :  { %v1439_v22 = vmul.f32 %v3895_v3, %v3891_v14  ;;  %v3897_v21 = vpop.eup %3896  ;;  %v3732_v14 = vld [vmem:[#allocation10 + $0x84] ss:$16 sps:$4 sm:$0xff]   ;;  %v3730_v3 = vld [vmem:[#allocation10 + $0x80] ss:$16 sps:$4 sm:$0xff]  }
 0x6b4   :  { %v1438_v24 = vmul.f32 %v3897_v21, %v4896_v23  ;;  %v3738_v21 = vld [vmem:[#allocation10 + $0xa4] ss:$16 sps:$4 sm:$0xff]  }
 0x6b5   :  { %v3899_v20 = vpop.eup %3898 }
 0x6b6   :  { %v4962_v15 = vadd.f32 %v1439_v22, %v1438_v24  ;;  %v3733_v22 = vld [vmem:[#allocation10 + $0x88] ss:$16 sps:$4 sm:$0xff]   ;;  %v3736_v24 = vld [vmem:[#allocation10 + $0xa0] ss:$16 sps:$4 sm:$0xff]  }
 0x6b8   :  { %3900 = vtanh.f32 %v4962_v15 }
 0x6c2   :  { %v3901_v5 = vpop.eup %3900 }
 0x6c3   :  { %v1442_v6 = vmul.f32 %v3901_v5, %v3899_v20  ;;  %v3744_v20 = vld [vmem:[#allocation10 + $0xc4] ss:$16 sps:$4 sm:$0xff]   ;;  %v3747_v5 = vld [vmem:[#allocation10 + $0xcc] ss:$16 sps:$4 sm:$0xff]  }
 0x6c5   :  { %v1443_v7 = vpack.c.bf16 %v1442_v6, %v1442_v6  ;;  %v3742_v6 = vld [vmem:[#allocation10 + $0xc0] ss:$16 sps:$4 sm:$0xff]  }
 0x6c7   :  { %1445 = vst [vmem:[#allocation3 + $0x14] sm:$0xf] %v1443_v7  ;;  %1484 = vmatmul.mubr.bf16.vlgmr.msra.gmra.mrb[40].mxu0 %v1443_v7  ;;  %1525 = vmatmul.mubr.bf16.vlgmr.msra.gmra.mrb[40].mxu1 %v1443_v7  ;;  %v3745_v7 = vld [vmem:[#allocation10 + $0xc8] ss:$16 sps:$4 sm:$0xff]  }
 0x6c8   :  { %1570 = vmatpush1.bf16.msra.mxu0 %v4821_v55  ;;  %1611 = vmatpush1.bf16.msra.mxu1 %v4824_v61  ;;  %v3708_v55 = vld [vmem:[#allocation10 + $0x4] ss:$16 sps:$4 sm:$0xff]   ;;  %v3711_v61 = vld [vmem:[#allocation10 + $0xc] ss:$16 sps:$4 sm:$0xff]  }
 0x6c9   :  { %1571 = vmatprep.subr.bf16.mxu0 %v4827_v4  ;;  %1612 = vmatprep.subr.bf16.mxu1 %v4830_v37 }
 0x6ca   :  { %1601 = vmatprep.mubr.bf16.mxu0 %v5644_v16  ;;  %1642 = vmatprep.mubr.bf16.mxu1 %v5644_v16 }
 0x6cc   :  { %1572 = vmatpush1.bf16.msra.mxu0 %v4835_v29  ;;  %1613 = vmatpush1.bf16.msra.mxu1 %v4838_v44  ;;  %v5658_v29 = vld [vmem:[#allocation35_spill] sm:$0xff] }
 0x6cd   :  { %1573 = vmatprep.subr.bf16.mxu0 %v4841_v56  ;;  %1614 = vmatprep.subr.bf16.mxu1 %v4844_v32  ;;  %v5659_v56 = vld [vmem:[#allocation36_spill] sm:$0xff] }
 0x6d0   :  { %1574 = vmatpush1.bf16.msra.mxu0 %v4847_v48  ;;  %1615 = vmatpush1.bf16.msra.mxu1 %v4850_v9 }
 0x6d1   :  { %1575 = vmatprep.subr.bf16.mxu0 %v4853_v45  ;;  %1616 = vmatprep.subr.bf16.mxu1 %v4856_v0  ;;  %v5660_v45 = vld [vmem:[#allocation37_spill] sm:$0xff] }
 0x6d4   :  { %1576 = vmatpush1.bf16.msra.mxu0 %v4859_v19  ;;  %1617 = vmatpush1.bf16.msra.mxu1 %v4862_v34  ;;  %v5661_v19 = vld [vmem:[#allocation38_spill] sm:$0xff] }
 0x6d5   :  { %1577 = vmatprep.subr.bf16.mxu0 %v4865_v40  ;;  %1618 = vmatprep.subr.bf16.mxu1 %v4868_v41 }
 0x6d8   :  { %1578 = vmatpush1.bf16.msra.mxu0 %v4871_v42  ;;  %1619 = vmatpush1.bf16.msra.mxu1 %v4874_v43 }
 0x6d9   :  { %1579 = vmatprep.subr.bf16.mxu0 %v4919_v26  ;;  %1620 = vmatprep.subr.bf16.mxu1 %v4922_v27 }
 0x6dc   :  { %1580 = vmatpush1.bf16.msra.mxu0 %v4925_v18  ;;  %1621 = vmatpush1.bf16.msra.mxu1 %v4928_v28 }
 0x6dd   :  { %1581 = vmatprep.subr.bf16.mxu0 %v4931_v35  ;;  %1622 = vmatprep.subr.bf16.mxu1 %v4934_v36 }
 0x6e0   :  { %1582 = vmatpush1.bf16.msra.mxu0 %v4937_v31  ;;  %1623 = vmatpush1.bf16.msra.mxu1 %v4940_v33 }
 0x6e1   :  { %1583 = vmatprep.subr.bf16.mxu0 %v4943_v62  ;;  %1624 = vmatprep.subr.bf16.mxu1 %v4946_v63 }
 0x6e4   :  { %1584 = vmatpush1.bf16.msra.mxu0 %v4949_v1  ;;  %1625 = vmatpush1.bf16.msra.mxu1 %v4952_v2 }
 0x6e5   :  { %1960 = vmatprep.subr.bf16.mxu0 %v3708_v55  ;;  %2033 = vmatprep.subr.bf16.mxu1 %v3711_v61  ;;  %v3750_v55 = vld [vmem:[#allocation10 + $0xe4] ss:$16 sps:$4 sm:$0xff]   ;;  %v3753_v61 = vld [vmem:[#allocation10 + $0xec] ss:$16 sps:$4 sm:$0xff]  }
 0x79a   :  { %v1485_v4 = vpop.f32.mrb[40].mxu0  ;;  %v1526_v37 = vpop.f32.mrb[40].mxu1 }
 0x79b   :  { %v1533_v44 = vadd.f32 %v1485_v4, %v5658_v29  ;;  %v1535_v32 = vadd.f32 %v1526_v37, %v5659_v56  ;;  %v1487_v48 = vpop.f32.mrb[41].mxu0  ;;  %v1528_v9 = vpop.f32.mrb[41].mxu1  ;;  %v3748_v4 = vld [vmem:[#allocation10 + $0xe0] ss:$16 sps:$4 sm:$0xff]   ;;  %v3751_v37 = vld [vmem:[#allocation10 + $0xe8] ss:$16 sps:$4 sm:$0xff]  }
 0x79c   :  { %v1534_v0 = vadd.f32 %v1487_v48, %v5660_v45  ;;  %v1536_v34 = vadd.f32 %v1528_v9, %v5661_v19  ;;  %v1489_v40 = vpop.f32.mrb[42].mxu0  ;;  %v1530_v41 = vpop.f32.mrb[42].mxu1  ;;  %v3754_v29 = vld [vmem:[#allocation3] sm:$0xff]   ;;  %v3756_v56 = vld [vmem:[#allocation3 + $0x10] sm:$0xff]   ;;  %v5015_v48 = vld [vmem:[#allocation12 + $0xc] ss:$16 sps:$4 sm:$0xff]  }
 0x79d   :  { %v3416_v42 = vmul.f32 -1.442695, %v1533_v44  ;;  %v1490_v43 = vpop.f32.mrb[43].mxu0  ;;  %v1531_v23 = vpop.f32.mrb[43].mxu1  ;;  %v3418_v27 = vmul.f32 -1.442695, %v1535_v32 }
 0x79e   :  { %v3417_v26 = vmul.f32 -1.442695, %v1534_v0  ;;  %v3755_v44 = vld [vmem:[#allocation3 + $0x8] sm:$0xff]   ;;  %v5013_v32 = vld [vmem:[#allocation12 + $0x4] ss:$16 sps:$4 sm:$0xff]  }
 0x79f   :  { %3902 = vpow2.f32 %v3416_v42  ;;  %v5017_v9 = vld [vmem:[#allocation12] ss:$16 sps:$4 sm:$0xff]   ;;  %v5019_v45 = vld [vmem:[#allocation12 + $0x8] ss:$16 sps:$4 sm:$0xff]   ;;  %v5025_v0 = vld [vmem:[#allocation12 + $0x24] ss:$16 sps:$4 sm:$0xff]  }
 0x7a0   :  { %3904 = vpow2.f32 %v3417_v26  ;;  %v5027_v19 = vld [vmem:[#allocation12 + $0x2c] ss:$16 sps:$4 sm:$0xff]   ;;  %v5031_v40 = vld [vmem:[#allocation12 + $0x28] ss:$16 sps:$4 sm:$0xff]   ;;  %v5037_v41 = vld [vmem:[#allocation12 + $0x44] ss:$16 sps:$4 sm:$0xff]  }
 0x7a1   :  { %3906 = vtanh.f32 %v1536_v34  ;;  %v5029_v34 = vld [vmem:[#allocation12 + $0x20] ss:$16 sps:$4 sm:$0xff]   ;;  %v5039_v42 = vld [vmem:[#allocation12 + $0x4c] ss:$16 sps:$4 sm:$0xff]   ;;  %v5043_v23 = vld [vmem:[#allocation12 + $0x48] ss:$16 sps:$4 sm:$0xff]  }
 0x7a2   :  { %3908 = vpow2.f32 %v3418_v27  ;;  %v5041_v43 = vld [vmem:[#allocation12 + $0x40] ss:$16 sps:$4 sm:$0xff]   ;;  %v5049_v26 = vld [vmem:[#allocation12 + $0x64] ss:$16 sps:$4 sm:$0xff]   ;;  %v5051_v27 = vld [vmem:[#allocation12 + $0x6c] ss:$16 sps:$4 sm:$0xff]  }
 0x7a9   :  { %v3903_v18 = vpop.eup %3902 }
 0x7aa   :  { %v1546_v28 = vadd.f32 1.0, %v3903_v18  ;;  %v3905_v35 = vpop.eup %3904  ;;  %v5053_v18 = vld [vmem:[#allocation12 + $0x60] ss:$16 sps:$4 sm:$0xff]  }
 0x7ab   :  { %v1547_v36 = vadd.f32 1.0, %v3905_v35  ;;  %v3907_v31 = vpop.eup %3906  ;;  %v5061_v35 = vld [vmem:[#allocation12 + $0x84] ss:$16 sps:$4 sm:$0xff]  }
 0x7ac   :  { %3910 = vrcp.f32 %v1546_v28  ;;  %v3909_v33 = vpop.eup %3908  ;;  %v5055_v28 = vld [vmem:[#allocation12 + $0x68] ss:$16 sps:$4 sm:$0xff]  }
 0x7ad   :  { %3912 = vrcp.f32 %v1547_v36  ;;  %v1548_v2 = vadd.f32 1.0, %v3909_v33  ;;  %v5063_v36 = vld [vmem:[#allocation12 + $0x8c] ss:$16 sps:$4 sm:$0xff]   ;;  %v5067_v33 = vld [vmem:[#allocation12 + $0x88] ss:$16 sps:$4 sm:$0xff]  }
 0x7af   :  { %3914 = vrcp.f32 %v1548_v2  ;;  %v5079_v2 = vld [vmem:[#allocation12 + $0xa8] ss:$16 sps:$4 sm:$0xff]  }
 0x7b6   :  { %v3911_v62 = vpop.eup %3910 }
 0x7b7   :  { %v1557_v63 = vmul.f32 %v3911_v62, %v3907_v31  ;;  %v3913_v1 = vpop.eup %3912  ;;  %v5065_v31 = vld [vmem:[#allocation12 + $0x80] ss:$16 sps:$4 sm:$0xff]   ;;  %v5073_v62 = vld [vmem:[#allocation12 + $0xa4] ss:$16 sps:$4 sm:$0xff]  }
 0x7b8   :  { %v1556_v8 = vmul.f32 %v3913_v1, %v4962_v15  ;;  %v3739_v15 = vld [vmem:[#allocation10 + $0xa8] ss:$16 sps:$4 sm:$0xff]   ;;  %v5077_v1 = vld [vmem:[#allocation12 + $0xa0] ss:$16 sps:$4 sm:$0xff]  }
 0x7b9   :  { %v3915_v10 = vpop.eup %3914 }
 0x7ba   :  { %v5002_v46 = vadd.f32 %v1557_v63, %v1556_v8  ;;  %v5075_v63 = vld [vmem:[#allocation12 + $0xac] ss:$16 sps:$4 sm:$0xff]   ;;  %v5085_v8 = vld [vmem:[#allocation12 + $0xc4] ss:$16 sps:$4 sm:$0xff]  }
 0x7bc   :  { %3916 = vtanh.f32 %v5002_v46 }
 0x7c6   :  { %v3917_v47 = vpop.eup %3916 }
 0x7c7   :  { %v1560_v11 = vmul.f32 %v3917_v47, %v3915_v10  ;;  %v5087_v10 = vld [vmem:[#allocation12 + $0xcc] ss:$16 sps:$4 sm:$0xff]   ;;  %v5089_v47 = vld [vmem:[#allocation12 + $0xc0] ss:$16 sps:$4 sm:$0xff]  }
 0x7c9   :  { %v1561_v50 = vpack.c.bf16 %v1560_v11, %v1560_v11  ;;  %v5091_v11 = vld [vmem:[#allocation12 + $0xc8] ss:$16 sps:$4 sm:$0xff]  }
 0x7cb   :  { %1563 = vst [vmem:[#allocation3 + $0x18] sm:$0xf] %v1561_v50  ;;  %1602 = vmatmul.mubr.bf16.vlgmr.msra.gmra.mrb[44].mxu0 %v1561_v50  ;;  %1643 = vmatmul.mubr.bf16.vlgmr.msra.gmra.mrb[44].mxu1 %v1561_v50  ;;  %v5101_v50 = vld [vmem:[#allocation12 + $0xe0] ss:$16 sps:$4 sm:$0xff]  }
 0x7cc   :  { %1961 = vmatpush1.bf16.msra.mxu0 %v3706_v49  ;;  %2034 = vmatpush1.bf16.msra.mxu1 %v3709_v12  ;;  %v5095_v49 = vld [vmem:[#allocation12 + $0xe4] ss:$16 sps:$4 sm:$0xff]   ;;  %v5097_v12 = vld [vmem:[#allocation12 + $0xec] ss:$16 sps:$4 sm:$0xff]  }
 0x7cd   :  { %1962 = vmatprep.subr.bf16.mxu0 %v3714_v13  ;;  %2035 = vmatprep.subr.bf16.mxu1 %v3717_v51  ;;  %v5103_v13 = vld [vmem:[#allocation12 + $0xe8] ss:$16 sps:$4 sm:$0xff]  }
 0x7ce   :  { %1992 = vmatprep.mubr.bf16.mxu0 %v5644_v16  ;;  %2065 = vmatprep.mubr.bf16.mxu1 %v5644_v16 }
 0x7d0   :  { %1963 = vmatpush1.bf16.msra.mxu0 %v3712_v52  ;;  %2036 = vmatpush1.bf16.msra.mxu1 %v3715_v53  ;;  %v5662_v53 = vld [vmem:[#allocation39_spill] sm:$0xff] }
 0x7d1   :  { %1964 = vmatprep.subr.bf16.mxu0 %v3720_v54  ;;  %2037 = vmatprep.subr.bf16.mxu1 %v3723_v57  ;;  %v5663_v57 = vld [vmem:[#allocation40_spill] sm:$0xff] }
 0x7d4   :  { %1965 = vmatpush1.bf16.msra.mxu0 %v3718_v38  ;;  %2038 = vmatpush1.bf16.msra.mxu1 %v3721_v39 }
 0x7d5   :  { %1966 = vmatprep.subr.bf16.mxu0 %v3726_v58  ;;  %2039 = vmatprep.subr.bf16.mxu1 %v3729_v59  ;;  %v5664_v59 = vld [vmem:[#allocation41_spill] sm:$0xff] }
 0x7d8   :  { %1967 = vmatpush1.bf16.msra.mxu0 %v3724_v60  ;;  %2040 = vmatpush1.bf16.msra.mxu1 %v3727_v30  ;;  %v5665_v30 = vld [vmem:[#allocation42_spill] sm:$0xff] }
 0x7d9   :  { %1968 = vmatprep.subr.bf16.mxu0 %v3732_v14  ;;  %2041 = vmatprep.subr.bf16.mxu1 %v3735_v17 }
 0x7dc   :  { %1969 = vmatpush1.bf16.msra.mxu0 %v3730_v3  ;;  %2042 = vmatpush1.bf16.msra.mxu1 %v3733_v22 }
 0x7dd   :  { %1970 = vmatprep.subr.bf16.mxu0 %v3738_v21  ;;  %2043 = vmatprep.subr.bf16.mxu1 %v3741_v25 }
 0x7e0   :  { %1971 = vmatpush1.bf16.msra.mxu0 %v3736_v24  ;;  %2044 = vmatpush1.bf16.msra.mxu1 %v3739_v15 }
 0x7e1   :  { %1972 = vmatprep.subr.bf16.mxu0 %v3744_v20  ;;  %2045 = vmatprep.subr.bf16.mxu1 %v3747_v5 }
 0x7e4   :  { %1973 = vmatpush1.bf16.msra.mxu0 %v3742_v6  ;;  %2046 = vmatpush1.bf16.msra.mxu1 %v3745_v7 }
 0x7e5   :  { %1974 = vmatprep.subr.bf16.mxu0 %v3750_v55  ;;  %2047 = vmatprep.subr.bf16.mxu1 %v3753_v61 }
 0x7e8   :  { %1975 = vmatpush1.bf16.msra.mxu0 %v3748_v4  ;;  %2048 = vmatpush1.bf16.msra.mxu1 %v3751_v37 }
 0x7e9   :  { %2302 = vmatprep.subr.bf16.mxu0 %v5013_v32  ;;  %2343 = vmatprep.subr.bf16.mxu1 %v5015_v48 }
 0x7eb   :  { %1993 = vmatmul.mubr.bf16.vlgmr.msra.gmra.mrb[48].mxu0 %v3754_v29  ;;  %2066 = vmatmul.mubr.bf16.vlgmr.msra.gmra.mrb[48].mxu1 %v3754_v29 }
 0x7ec   :  { %2002 = vmatprep.mubr.bf16.mxu0 %v5644_v16  ;;  %2075 = vmatprep.mubr.bf16.mxu1 %v5644_v16 }
 0x7ed   :  { %2303 = vmatpush1.bf16.msra.mxu0 %v5017_v9  ;;  %2344 = vmatpush1.bf16.msra.mxu1 %v5019_v45 }
 0x7ee   :  { %2304 = vmatprep.subr.bf16.mxu0 %v5025_v0  ;;  %2345 = vmatprep.subr.bf16.mxu1 %v5027_v19 }
 0x7f1   :  { %2305 = vmatpush1.bf16.msra.mxu0 %v5029_v34  ;;  %2346 = vmatpush1.bf16.msra.mxu1 %v5031_v40 }
 0x7f2   :  { %2306 = vmatprep.subr.bf16.mxu0 %v5037_v41  ;;  %2347 = vmatprep.subr.bf16.mxu1 %v5039_v42 }
 0x7f3   :  { %2003 = vmatmul.mubr.bf16.gmra.mrb[52].mxu0 %v3755_v44  ;;  %2076 = vmatmul.mubr.bf16.gmra.mrb[52].mxu1 %v3755_v44 }
 0x7f4   :  { %2012 = vmatprep.mubr.bf16.mxu0 %v5644_v16  ;;  %2085 = vmatprep.mubr.bf16.mxu1 %v5644_v16 }
 0x7f5   :  { %2307 = vmatpush1.bf16.msra.mxu0 %v5041_v43  ;;  %2348 = vmatpush1.bf16.msra.mxu1 %v5043_v23 }
 0x7f6   :  { %2308 = vmatprep.subr.bf16.mxu0 %v5049_v26  ;;  %2349 = vmatprep.subr.bf16.mxu1 %v5051_v27 }
 0x7f9   :  { %2309 = vmatpush1.bf16.msra.mxu0 %v5053_v18  ;;  %2350 = vmatpush1.bf16.msra.mxu1 %v5055_v28 }
 0x7fa   :  { %2310 = vmatprep.subr.bf16.mxu0 %v5061_v35  ;;  %2351 = vmatprep.subr.bf16.mxu1 %v5063_v36 }
 0x7fb   :  { %2013 = vmatmul.mubr.bf16.gmra.mrb[56].mxu0 %v3756_v56  ;;  %2086 = vmatmul.mubr.bf16.gmra.mrb[56].mxu1 %v3756_v56 }
 0x7fc   :  { %2022 = vmatprep.mubr.bf16.mxu0 %v5644_v16  ;;  %2095 = vmatprep.mubr.bf16.mxu1 %v5644_v16 }
 0x7fd   :  { %2311 = vmatpush1.bf16.msra.mxu0 %v5065_v31  ;;  %2352 = vmatpush1.bf16.msra.mxu1 %v5067_v33 }
 0x7fe   :  { %2312 = vmatprep.subr.bf16.mxu0 %v5073_v62  ;;  %2353 = vmatprep.subr.bf16.mxu1 %v5075_v63 }
 0x801   :  { %2313 = vmatpush1.bf16.msra.mxu0 %v5077_v1  ;;  %2354 = vmatpush1.bf16.msra.mxu1 %v5079_v2 }
 0x802   :  { %2314 = vmatprep.subr.bf16.mxu0 %v5085_v8  ;;  %2355 = vmatprep.subr.bf16.mxu1 %v5087_v10 }
 0x805   :  { %2315 = vmatpush1.bf16.msra.mxu0 %v5089_v47  ;;  %2356 = vmatpush1.bf16.msra.mxu1 %v5091_v11 }
 0x806   :  { %2316 = vmatprep.subr.bf16.mxu0 %v5095_v49  ;;  %2357 = vmatprep.subr.bf16.mxu1 %v5097_v12 }
 0x809   :  { %2317 = vmatpush1.bf16.msra.mxu0 %v5101_v50  ;;  %2358 = vmatpush1.bf16.msra.mxu1 %v5103_v13 }
 0x80a   :  { %2417 = vmatprep.subr.bf16.mxu0 %v5013_v32  ;;  %2458 = vmatprep.subr.bf16.mxu1 %v5015_v48 }
 0x89e   :  { %v1603_v51 = vpop.f32.mrb[44].mxu0  ;;  %v1644_v52 = vpop.f32.mrb[44].mxu1 }
 0x89f   :  { %v1651_v54 = vadd.f32 %v1603_v51, %v5662_v53  ;;  %v1653_v38 = vadd.f32 %v1644_v52, %v5663_v57  ;;  %v1605_v39 = vpop.f32.mrb[45].mxu0  ;;  %v1646_v58 = vpop.f32.mrb[45].mxu1 }
 0x8a0   :  { %v1652_v60 = vadd.f32 %v1605_v39, %v5664_v59  ;;  %v1654_v14 = vadd.f32 %v1646_v58, %v5665_v30  ;;  %v1607_v17 = vpop.f32.mrb[46].mxu0  ;;  %v1648_v3 = vpop.f32.mrb[46].mxu1 }
 0x8a1   :  { %v3419_v22 = vmul.f32 -1.442695, %v1651_v54  ;;  %v1608_v21 = vpop.f32.mrb[47].mxu0  ;;  %v1649_v25 = vpop.f32.mrb[47].mxu1  ;;  %v3421_v15 = vmul.f32 -1.442695, %v1653_v38 }
 0x8a2   :  { %v3420_v24 = vmul.f32 -1.442695, %v1652_v60 }
 0x8a3   :  { %3918 = vpow2.f32 %v3419_v22 }
 0x8a4   :  { %3920 = vpow2.f32 %v3420_v24 }
 0x8a5   :  { %3922 = vtanh.f32 %v1654_v14 }
 0x8a6   :  { %3924 = vpow2.f32 %v3421_v15 }
 0x8ad   :  { %v3919_v20 = vpop.eup %3918 }
 0x8ae   :  { %v1664_v5 = vadd.f32 1.0, %v3919_v20  ;;  %v3921_v6 = vpop.eup %3920 }
 0x8af   :  { %v1665_v7 = vadd.f32 1.0, %v3921_v6  ;;  %v3923_v55 = vpop.eup %3922 }
 0x8b0   :  { %3926 = vrcp.f32 %v1664_v5  ;;  %v3925_v61 = vpop.eup %3924 }
 0x8b1   :  { %3928 = vrcp.f32 %v1665_v7  ;;  %v1666_v44 = vadd.f32 1.0, %v3925_v61 }
 0x8b3   :  { %3930 = vrcp.f32 %v1666_v44 }
 0x8ba   :  { %v3927_v4 = vpop.eup %3926 }
 0x8bb   :  { %v1675_v37 = vmul.f32 %v3927_v4, %v3923_v55  ;;  %v3929_v29 = vpop.eup %3928 }
 0x8bc   :  { %v1674_v56 = vmul.f32 %v3929_v29, %v5002_v46 }
 0x8bd   :  { %v3931_v25 = vpop.eup %3930 }
 0x8be   :  { %v5116_v51 = vpop.f32.mrb[48].mxu0  ;;  %v5118_v52 = vpop.f32.mrb[48].mxu1  ;;  %v1676_v53 = vadd.f32 %v1675_v37, %v1674_v56  ;;  %v1746_v56 = vld [vmem:[%s5610_s6] sm:$0xf] }
 0x8bf   :  { %v5120_v54 = vpop.f32.mrb[49].mxu0  ;;  %v5122_v57 = vpop.f32.mrb[49].mxu1 }
 0x8c0   :  { %v5124_v38 = vpop.f32.mrb[50].mxu0  ;;  %v5126_v39 = vpop.f32.mrb[50].mxu1  ;;  %3932 = vtanh.f32 %v1676_v53 }
 0x8c1   :  { %v5128_v58 = vpop.f32.mrb[51].mxu0  ;;  %v5130_v59 = vpop.f32.mrb[51].mxu1 }
 0x8c6   :  { %v5132_v46 = vpop.f32.mrb[52].mxu0  ;;  %v5134_v60 = vpop.f32.mrb[52].mxu1 }
 0x8c7   :  { %5666 = vst [vmem:[#allocation22_spill] sm:$0xff] %v5134_v60  ;;  %v5136_v30 = vpop.f32.mrb[53].mxu0  ;;  %v5138_v14 = vpop.f32.mrb[53].mxu1 }
 0x8c8   :  { %5667 = vst [vmem:[#allocation23_spill] sm:$0xff] %v5136_v30  ;;  %5668 = vst [vmem:[#allocation24_spill] sm:$0xff] %v5138_v14  ;;  %v5140_v17 = vpop.f32.mrb[54].mxu0  ;;  %v5142_v3 = vpop.f32.mrb[54].mxu1 }
 0x8c9   :  { %5669 = vst [vmem:[#allocation25_spill] sm:$0xff] %v5140_v17  ;;  %5670 = vst [vmem:[#allocation26_spill] sm:$0xff] %v5142_v3  ;;  %v5144_v22 = vpop.f32.mrb[55].mxu0  ;;  %v5146_v21 = vpop.f32.mrb[55].mxu1 }
 0x8ca   :  { %5671 = vst [vmem:[#allocation27_spill] sm:$0xff] %v5144_v22  ;;  %5672 = vst [vmem:[#allocation28_spill] sm:$0xff] %v5146_v21  ;;  %v3933_v24 = vpop.eup %3932 }
 0x8cb   :  { %v1678_v15 = vmul.f32 %v3933_v24, %v3931_v25 }
 0x8cd   :  { %v1679_v20 = vpack.c.bf16 %v1678_v15, %v1678_v15 }
 0x8ce   :  { %v5148_v5 = vpop.f32.mrb[56].mxu0  ;;  %v5150_v6 = vpop.f32.mrb[56].mxu1 }
 0x8cf   :  { %5673 = vst [vmem:[#allocation29_spill] sm:$0xff] %v5148_v5  ;;  %5674 = vst [vmem:[#allocation30_spill] sm:$0xff] %v5150_v6  ;;  %v5152_v7 = vpop.f32.mrb[57].mxu0  ;;  %v5154_v55 = vpop.f32.mrb[57].mxu1 }
 0x8d0   :  { %5675 = vst [vmem:[#allocation31_spill] sm:$0xff] %v5152_v7  ;;  %5676 = vst [vmem:[#allocation32_spill] sm:$0xff] %v5154_v55  ;;  %v5156_v61 = vpop.f32.mrb[58].mxu0  ;;  %v5158_v4 = vpop.f32.mrb[58].mxu1 }
 0x8d1   :  { %1681 = vst [vmem:[#allocation3 + $0x1c] sm:$0xf] %v1679_v20  ;;  %5677 = vst [vmem:[#allocation33_spill] sm:$0xff] %v5156_v61  ;;  %v5160_v37 = vpop.f32.mrb[59].mxu0  ;;  %v5162_v29 = vpop.f32.mrb[59].mxu1 }
 0x8d2   :  { %5678 = vst [vmem:[#allocation34_spill] sm:$0xff] %v5158_v4  ;;  %5679 = vst [vmem:[#allocation35_spill] sm:$0xff] %v5160_v37 }
 0x8d3   :  { %5680 = vst [vmem:[#allocation36_spill] sm:$0xff] %v5162_v29  ;;  %v5687_v29 = vld [vmem:[#allocation21_spill] sm:$0xff] }
 0x8d4   :  { %v5688_v37 = vsub.s32 0, %v5687_v29  ;;  %v5689_v61 = vsub.s32 2, %v5687_v29 }
 0x8d6   :  { %v5219_v4 = vrot.slane %v1746_v56, %v5688_v37  ;;  %v5223_v55 = vrot.slane %v1746_v56, %v5689_v61 }
 0x8d8   :  { %v3793_v44 = vld [vmem:[#allocation3 + $0x18] sm:$0xff]   ;;  %v1995_v37 = vadd.f32 %v5116_v51, %v5219_v4 }
 0x8d9   :  { %2023 = vmatmul.mubr.bf16.gmra.mrb[60].mxu0 %v3793_v44  ;;  %2096 = vmatmul.mubr.bf16.gmra.mrb[60].mxu1 %v3793_v44 }
 0x8da   :  { %2334 = vmatprep.mubr.bf16.mxu0 %v5644_v16  ;;  %2375 = vmatprep.mubr.bf16.mxu1 %v5644_v16 }
 0x8e1   :  { %2335 = vmatmul.mubr.bf16.vlgmr.msra.gmra.mrb[64].mxu0 %v5644_v16  ;;  %2376 = vmatmul.mubr.bf16.vlgmr.msra.gmra.mrb[64].mxu1 %v5644_v16 }
 0x8e2   :  { %2418 = vmatpush1.bf16.msra.mxu0 %v5017_v9  ;;  %2459 = vmatpush1.bf16.msra.mxu1 %v5019_v45 }
 0x8e3   :  { %2419 = vmatprep.subr.bf16.mxu0 %v5025_v0  ;;  %2460 = vmatprep.subr.bf16.mxu1 %v5027_v19 }
 0x8e4   :  { %2449 = vmatprep.mubr.bf16.mxu0 %v5644_v16  ;;  %2490 = vmatprep.mubr.bf16.mxu1 %v5644_v16 }
 0x8e6   :  { %2420 = vmatpush1.bf16.msra.mxu0 %v5029_v34  ;;  %2461 = vmatpush1.bf16.msra.mxu1 %v5031_v40 }
 0x8e7   :  { %2421 = vmatprep.subr.bf16.mxu0 %v5037_v41  ;;  %2462 = vmatprep.subr.bf16.mxu1 %v5039_v42 }
 0x8ea   :  { %2422 = vmatpush1.bf16.msra.mxu0 %v5041_v43  ;;  %2463 = vmatpush1.bf16.msra.mxu1 %v5043_v23 }
 0x8eb   :  { %2423 = vmatprep.subr.bf16.mxu0 %v5049_v26  ;;  %2464 = vmatprep.subr.bf16.mxu1 %v5051_v27 }
 0x8ee   :  { %2424 = vmatpush1.bf16.msra.mxu0 %v5053_v18  ;;  %2465 = vmatpush1.bf16.msra.mxu1 %v5055_v28 }
 0x8ef   :  { %2425 = vmatprep.subr.bf16.mxu0 %v5061_v35  ;;  %2466 = vmatprep.subr.bf16.mxu1 %v5063_v36 }
 0x8f2   :  { %2426 = vmatpush1.bf16.msra.mxu0 %v5065_v31  ;;  %2467 = vmatpush1.bf16.msra.mxu1 %v5067_v33 }
 0x8f3   :  { %2427 = vmatprep.subr.bf16.mxu0 %v5073_v62  ;;  %2468 = vmatprep.subr.bf16.mxu1 %v5075_v63 }
 0x8f6   :  { %2428 = vmatpush1.bf16.msra.mxu0 %v5077_v1  ;;  %2469 = vmatpush1.bf16.msra.mxu1 %v5079_v2 }
 0x8f7   :  { %2429 = vmatprep.subr.bf16.mxu0 %v5085_v8  ;;  %2470 = vmatprep.subr.bf16.mxu1 %v5087_v10 }
 0x8fa   :  { %2430 = vmatpush1.bf16.msra.mxu0 %v5089_v47  ;;  %2471 = vmatpush1.bf16.msra.mxu1 %v5091_v11 }
 0x8fb   :  { %2431 = vmatprep.subr.bf16.mxu0 %v5095_v49  ;;  %2472 = vmatprep.subr.bf16.mxu1 %v5097_v12 }
 0x8fe   :  { %2432 = vmatpush1.bf16.msra.mxu0 %v5101_v50  ;;  %2473 = vmatpush1.bf16.msra.mxu1 %v5103_v13 }
 0x8ff   :  { %2532 = vmatprep.subr.bf16.mxu0 %v5013_v32  ;;  %2573 = vmatprep.subr.bf16.mxu1 %v5015_v48 }
 0x9ac   :  { %v5205_v53 = vpop.f32.mrb[60].mxu0  ;;  %v5207_v25 = vpop.f32.mrb[60].mxu1 }
 0x9ad   :  { %5681 = vst [vmem:[#allocation37_spill] sm:$0xff] %v5205_v53  ;;  %5682 = vst [vmem:[#allocation38_spill] sm:$0xff] %v5207_v25  ;;  %v5209_v24 = vpop.f32.mrb[61].mxu0  ;;  %v5211_v15 = vpop.f32.mrb[61].mxu1 }
 0x9ae   :  { %5683 = vst [vmem:[#allocation39_spill] sm:$0xff] %v5209_v24  ;;  %5684 = vst [vmem:[#allocation40_spill] sm:$0xff] %v5211_v15  ;;  %v5213_v20 = vpop.f32.mrb[62].mxu0  ;;  %v5215_v44 = vpop.f32.mrb[62].mxu1  ;;  %v5692_v24 = vsub.s32 1, %v5687_v29 }
 0x9af   :  { %5685 = vst [vmem:[#allocation41_spill] sm:$0xff] %v5213_v20  ;;  %5686 = vst [vmem:[#allocation42_spill] sm:$0xff] %v5215_v44  ;;  %v5225_v7 = vpop.f32.mrb[63].mxu0  ;;  %v5227_v53 = vpop.f32.mrb[63].mxu1  ;;  %v5693_v20 = vsub.s32 3, %v5687_v29  ;;  %v2068_v44 = vadd.f32 %v5118_v52, %v5223_v55 }
 0x9b0   :  { %5690 = vst [vmem:[#allocation21_spill] sm:$0xff] %v5225_v7  ;;  %5691 = vst [vmem:[#allocation43_spill] sm:$0xff] %v5227_v53  ;;  %v5231_v25 = vrot.slane %v1746_v56, %v5692_v24 }
 0x9b1   :  { %v5235_v15 = vrot.slane %v1746_v56, %v5693_v20 }
 0x9b2   :  { %v1997_v61 = vadd.f32 %v5120_v54, %v5231_v25 }
 0x9b3   :  { %v2070_v53 = vadd.f32 %v5122_v57, %v5235_v15 }
 0x9b4   :  { %v2336_v7 = vpop.f32.mrb[64].mxu0  ;;  %v2377_v6 = vpop.f32.mrb[64].mxu1 }
 0x9b5   :  { %v2384_v24 = vadd.f32 %v2336_v7, %v1995_v37  ;;  %v2386_v5 = vadd.f32 %v2377_v6, %v2068_v44  ;;  %v2338_v21 = vpop.f32.mrb[65].mxu0  ;;  %v2379_v29 = vpop.f32.mrb[65].mxu1 }
 0x9b6   :  { %v2385_v56 = vadd.f32 %v2338_v21, %v1997_v61  ;;  %v2387_v20 = vadd.f32 %v2379_v29, %v2070_v53  ;;  %v2340_v22 = vpop.f32.mrb[66].mxu0  ;;  %v2381_v3 = vpop.f32.mrb[66].mxu1  ;;  %v2001_v29 = vadd.f32 %v5128_v58, %v5231_v25 }
 0x9b7   :  { %v3490_v51 = vmul.f32 -1.442695, %v2384_v24  ;;  %v2341_v17 = vpop.f32.mrb[67].mxu0  ;;  %v2382_v14 = vpop.f32.mrb[67].mxu1  ;;  %v3492_v54 = vmul.f32 -1.442695, %v2386_v5  ;;  %v2072_v24 = vadd.f32 %v5126_v39, %v5223_v55 }
 0x9b8   :  { %v3491_v52 = vmul.f32 -1.442695, %v2385_v56  ;;  %v2074_v56 = vadd.f32 %v5130_v59, %v5235_v15 }
 0x9b9   :  { %3934 = vpow2.f32 %v3490_v51 }
 0x9ba   :  { %3936 = vpow2.f32 %v3491_v52 }
 0x9bb   :  { %3938 = vtanh.f32 %v2387_v20 }
 0x9bc   :  { %3940 = vpow2.f32 %v3492_v54 }
 0x9c3   :  { %v3935_v30 = vpop.eup %3934 }
 0x9c4   :  { %v2397_v60 = vadd.f32 1.0, %v3935_v30  ;;  %v3937_v57 = vpop.eup %3936 }
 0x9c5   :  { %v2398_v6 = vadd.f32 1.0, %v3937_v57  ;;  %v3939_v7 = vpop.eup %3938 }
 0x9c6   :  { %3942 = vrcp.f32 %v2397_v60  ;;  %v3941_v21 = vpop.eup %3940  ;;  %v1999_v60 = vadd.f32 %v5124_v38, %v5219_v4 }
 0x9c7   :  { %3944 = vrcp.f32 %v2398_v6  ;;  %v2399_v44 = vadd.f32 1.0, %v3941_v21 }
 0x9c9   :  { %3946 = vrcp.f32 %v2399_v44 }
 0x9d0   :  { %v3943_v53 = vpop.eup %3942 }
 0x9d1   :  { %v2408_v22 = vmul.f32 %v3943_v53, %v3939_v7  ;;  %v3945_v3 = vpop.eup %3944 }
 0x9d2   :  { %v2407_v17 = vmul.f32 0.0, %v3945_v3 }
 0x9d3   :  { %v3947_v5 = vpop.eup %3946 }
 0x9d4   :  { %v5245_v14 = vadd.f32 %v2408_v22, %v2407_v17 }
 0x9d6   :  { %3948 = vtanh.f32 %v5245_v14 }
 0x9e0   :  { %v3949_v30 = vpop.eup %3948 }
 0x9e1   :  { %v2411_v37 = vmul.f32 %v3949_v30, %v3947_v5 }
 0x9e3   :  { %v2416_v61 = vpack.c.bf16 %v2411_v37, %v2411_v37 }
 0x9e5   :  { %2450 = vmatmul.mubr.bf16.vlgmr.msra.gmra.mrb[68].mxu0 %v2416_v61  ;;  %2491 = vmatmul.mubr.bf16.vlgmr.msra.gmra.mrb[68].mxu1 %v2416_v61 }
 0x9e6   :  { %2533 = vmatpush1.bf16.msra.mxu0 %v5017_v9  ;;  %2574 = vmatpush1.bf16.msra.mxu1 %v5019_v45 }
 0x9e7   :  { %2534 = vmatprep.subr.bf16.mxu0 %v5025_v0  ;;  %2575 = vmatprep.subr.bf16.mxu1 %v5027_v19 }
 0x9e8   :  { %2564 = vmatprep.mubr.bf16.mxu0 %v5644_v16  ;;  %2605 = vmatprep.mubr.bf16.mxu1 %v5644_v16 }
 0x9ea   :  { %2535 = vmatpush1.bf16.msra.mxu0 %v5029_v34  ;;  %2576 = vmatpush1.bf16.msra.mxu1 %v5031_v40 }
 0x9eb   :  { %2536 = vmatprep.subr.bf16.mxu0 %v5037_v41  ;;  %2577 = vmatprep.subr.bf16.mxu1 %v5039_v42 }
 0x9ee   :  { %2537 = vmatpush1.bf16.msra.mxu0 %v5041_v43  ;;  %2578 = vmatpush1.bf16.msra.mxu1 %v5043_v23 }
 0x9ef   :  { %2538 = vmatprep.subr.bf16.mxu0 %v5049_v26  ;;  %2579 = vmatprep.subr.bf16.mxu1 %v5051_v27 }
 0x9f2   :  { %2539 = vmatpush1.bf16.msra.mxu0 %v5053_v18  ;;  %2580 = vmatpush1.bf16.msra.mxu1 %v5055_v28 }
 0x9f3   :  { %2540 = vmatprep.subr.bf16.mxu0 %v5061_v35  ;;  %2581 = vmatprep.subr.bf16.mxu1 %v5063_v36 }
 0x9f6   :  { %2541 = vmatpush1.bf16.msra.mxu0 %v5065_v31  ;;  %2582 = vmatpush1.bf16.msra.mxu1 %v5067_v33 }
 0x9f7   :  { %2542 = vmatprep.subr.bf16.mxu0 %v5073_v62  ;;  %2583 = vmatprep.subr.bf16.mxu1 %v5075_v63 }
 0x9fa   :  { %2543 = vmatpush1.bf16.msra.mxu0 %v5077_v1  ;;  %2584 = vmatpush1.bf16.msra.mxu1 %v5079_v2 }
 0x9fb   :  { %2544 = vmatprep.subr.bf16.mxu0 %v5085_v8  ;;  %2585 = vmatprep.subr.bf16.mxu1 %v5087_v10 }
 0x9fe   :  { %2545 = vmatpush1.bf16.msra.mxu0 %v5089_v47  ;;  %2586 = vmatpush1.bf16.msra.mxu1 %v5091_v11 }
 0x9ff   :  { %2546 = vmatprep.subr.bf16.mxu0 %v5095_v49  ;;  %2587 = vmatprep.subr.bf16.mxu1 %v5097_v12 }
 0xa02   :  { %2547 = vmatpush1.bf16.msra.mxu0 %v5101_v50  ;;  %2588 = vmatpush1.bf16.msra.mxu1 %v5103_v13 }
 0xa03   :  { %2647 = vmatprep.subr.bf16.mxu0 %v5013_v32  ;;  %2688 = vmatprep.subr.bf16.mxu1 %v5015_v48 }
 0xab8   :  { %v2451_v20 = vpop.f32.mrb[68].mxu0  ;;  %v2492_v51 = vpop.f32.mrb[68].mxu1 }
 0xab9   :  { %v2499_v52 = vadd.f32 %v2451_v20, %v1999_v60  ;;  %v2501_v54 = vadd.f32 %v2492_v51, %v2072_v24  ;;  %v2453_v57 = vpop.f32.mrb[69].mxu0  ;;  %v2494_v6 = vpop.f32.mrb[69].mxu1 }
 0xaba   :  { %v2500_v7 = vadd.f32 %v2453_v57, %v2001_v29  ;;  %v2502_v21 = vadd.f32 %v2494_v6, %v2074_v56  ;;  %v2455_v53 = vpop.f32.mrb[70].mxu0  ;;  %v2496_v22 = vpop.f32.mrb[70].mxu1 }
 0xabb   :  { %v3493_v38 = vmul.f32 -1.442695, %v2499_v52  ;;  %v2456_v3 = vpop.f32.mrb[71].mxu0  ;;  %v2497_v44 = vpop.f32.mrb[71].mxu1  ;;  %v3495_v58 = vmul.f32 -1.442695, %v2501_v54 }
 0xabc   :  { %v3494_v39 = vmul.f32 -1.442695, %v2500_v7  ;;  %v5694_v7 = vld [vmem:[#allocation22_spill] sm:$0xff]  ;;  %v5695_v53 = vld [vmem:[#allocation23_spill] sm:$0xff] }
 0xabd   :  { %3950 = vpow2.f32 %v3493_v38  ;;  %v2007_v22 = vadd.f32 %v5695_v53, %v5231_v25  ;;  %v5696_v38 = vld [vmem:[#allocation24_spill] sm:$0xff] }
 0xabe   :  { %3952 = vpow2.f32 %v3494_v39  ;;  %v2080_v3 = vadd.f32 %v5696_v38, %v5235_v15 }
 0xabf   :  { %3954 = vtanh.f32 %v2502_v21  ;;  %v2078_v21 = vadd.f32 %v5694_v7, %v5223_v55 }
 0xac0   :  { %3956 = vpow2.f32 %v3495_v58 }
 0xac7   :  { %v3951_v17 = vpop.eup %3950 }
 0xac8   :  { %v2512_v5 = vadd.f32 1.0, %v3951_v17  ;;  %v3953_v59 = vpop.eup %3952 }
 0xac9   :  { %v2513_v30 = vadd.f32 1.0, %v3953_v59  ;;  %v3955_v37 = vpop.eup %3954 }
 0xaca   :  { %3958 = vrcp.f32 %v2512_v5  ;;  %v3957_v61 = vpop.eup %3956 }
 0xacb   :  { %3960 = vrcp.f32 %v2513_v30  ;;  %v2514_v56 = vadd.f32 1.0, %v3957_v61 }
 0xacd   :  { %3962 = vrcp.f32 %v2514_v56 }
 0xad4   :  { %v3959_v60 = vpop.eup %3958 }
 0xad5   :  { %v2523_v24 = vmul.f32 %v3959_v60, %v3955_v37  ;;  %v3961_v29 = vpop.eup %3960 }
 0xad6   :  { %v2522_v20 = vmul.f32 %v3961_v29, %v5245_v14  ;;  %v2005_v14 = vadd.f32 %v5132_v46, %v5219_v4 }
 0xad7   :  { %v3963_v52 = vpop.eup %3962 }
 0xad8   :  { %v5291_v51 = vadd.f32 %v2523_v24, %v2522_v20 }
 0xada   :  { %3964 = vtanh.f32 %v5291_v51 }
 0xae4   :  { %v3965_v54 = vpop.eup %3964 }
 0xae5   :  { %v2526_v57 = vmul.f32 %v3965_v54, %v3963_v52 }
 0xae7   :  { %v2531_v6 = vpack.c.bf16 %v2526_v57, %v2526_v57 }
 0xae9   :  { %2565 = vmatmul.mubr.bf16.vlgmr.msra.gmra.mrb[72].mxu0 %v2531_v6  ;;  %2606 = vmatmul.mubr.bf16.vlgmr.msra.gmra.mrb[72].mxu1 %v2531_v6 }
 0xaea   :  { %2648 = vmatpush1.bf16.msra.mxu0 %v5017_v9  ;;  %2689 = vmatpush1.bf16.msra.mxu1 %v5019_v45 }
 0xaeb   :  { %2649 = vmatprep.subr.bf16.mxu0 %v5025_v0  ;;  %2690 = vmatprep.subr.bf16.mxu1 %v5027_v19 }
 0xaec   :  { %2679 = vmatprep.mubr.bf16.mxu0 %v5644_v16  ;;  %2720 = vmatprep.mubr.bf16.mxu1 %v5644_v16 }
 0xaee   :  { %2650 = vmatpush1.bf16.msra.mxu0 %v5029_v34  ;;  %2691 = vmatpush1.bf16.msra.mxu1 %v5031_v40 }
 0xaef   :  { %2651 = vmatprep.subr.bf16.mxu0 %v5037_v41  ;;  %2692 = vmatprep.subr.bf16.mxu1 %v5039_v42 }
 0xaf2   :  { %2652 = vmatpush1.bf16.msra.mxu0 %v5041_v43  ;;  %2693 = vmatpush1.bf16.msra.mxu1 %v5043_v23 }
 0xaf3   :  { %2653 = vmatprep.subr.bf16.mxu0 %v5049_v26  ;;  %2694 = vmatprep.subr.bf16.mxu1 %v5051_v27 }
 0xaf6   :  { %2654 = vmatpush1.bf16.msra.mxu0 %v5053_v18  ;;  %2695 = vmatpush1.bf16.msra.mxu1 %v5055_v28 }
 0xaf7   :  { %2655 = vmatprep.subr.bf16.mxu0 %v5061_v35  ;;  %2696 = vmatprep.subr.bf16.mxu1 %v5063_v36 }
 0xafa   :  { %2656 = vmatpush1.bf16.msra.mxu0 %v5065_v31  ;;  %2697 = vmatpush1.bf16.msra.mxu1 %v5067_v33 }
 0xafb   :  { %2657 = vmatprep.subr.bf16.mxu0 %v5073_v62  ;;  %2698 = vmatprep.subr.bf16.mxu1 %v5075_v63 }
 0xafe   :  { %2658 = vmatpush1.bf16.msra.mxu0 %v5077_v1  ;;  %2699 = vmatpush1.bf16.msra.mxu1 %v5079_v2 }
 0xaff   :  { %2659 = vmatprep.subr.bf16.mxu0 %v5085_v8  ;;  %2700 = vmatprep.subr.bf16.mxu1 %v5087_v10 }
 0xb02   :  { %2660 = vmatpush1.bf16.msra.mxu0 %v5089_v47  ;;  %2701 = vmatpush1.bf16.msra.mxu1 %v5091_v11 }
 0xb03   :  { %2661 = vmatprep.subr.bf16.mxu0 %v5095_v49  ;;  %2702 = vmatprep.subr.bf16.mxu1 %v5097_v12 }
 0xb06   :  { %2662 = vmatpush1.bf16.msra.mxu0 %v5101_v50  ;;  %2703 = vmatpush1.bf16.msra.mxu1 %v5103_v13 }
 0xb07   :  { %2762 = vmatprep.subr.bf16.mxu0 %v5013_v32  ;;  %2803 = vmatprep.subr.bf16.mxu1 %v5015_v48 }
 0xbbc   :  { %v2566_v44 = vpop.f32.mrb[72].mxu0  ;;  %v2607_v39 = vpop.f32.mrb[72].mxu1 }
 0xbbd   :  { %v2614_v58 = vadd.f32 %v2566_v44, %v2005_v14  ;;  %v2616_v17 = vadd.f32 %v2607_v39, %v2078_v21  ;;  %v2568_v5 = vpop.f32.mrb[73].mxu0  ;;  %v2609_v59 = vpop.f32.mrb[73].mxu1 }
 0xbbe   :  { %v2615_v30 = vadd.f32 %v2568_v5, %v2007_v22  ;;  %v2617_v37 = vadd.f32 %v2609_v59, %v2080_v3  ;;  %v2570_v61 = vpop.f32.mrb[74].mxu0  ;;  %v2611_v60 = vpop.f32.mrb[74].mxu1 }
 0xbbf   :  { %v3496_v46 = vmul.f32 -1.442695, %v2614_v58  ;;  %v2571_v24 = vpop.f32.mrb[75].mxu0  ;;  %v2612_v29 = vpop.f32.mrb[75].mxu1  ;;  %v3498_v20 = vmul.f32 -1.442695, %v2616_v17 }
 0xbc0   :  { %v3497_v56 = vmul.f32 -1.442695, %v2615_v30  ;;  %v5698_v30 = vld [vmem:[#allocation26_spill] sm:$0xff]  ;;  %v5699_v61 = vld [vmem:[#allocation27_spill] sm:$0xff] }
 0xbc1   :  { %3966 = vpow2.f32 %v3496_v46  ;;  %v2011_v60 = vadd.f32 %v5699_v61, %v5231_v25  ;;  %v5700_v46 = vld [vmem:[#allocation28_spill] sm:$0xff] }
 0xbc2   :  { %3968 = vpow2.f32 %v3497_v56  ;;  %v2084_v24 = vadd.f32 %v5700_v46, %v5235_v15 }
 0xbc3   :  { %3970 = vtanh.f32 %v2617_v37  ;;  %v2082_v37 = vadd.f32 %v5698_v30, %v5223_v55 }
 0xbc4   :  { %3972 = vpow2.f32 %v3498_v20 }
 0xbcb   :  { %v3967_v52 = vpop.eup %3966 }
 0xbcc   :  { %v2627_v54 = vadd.f32 1.0, %v3967_v52  ;;  %v3969_v57 = vpop.eup %3968 }
 0xbcd   :  { %v2628_v6 = vadd.f32 1.0, %v3969_v57  ;;  %v3971_v14 = vpop.eup %3970 }
 0xbce   :  { %3974 = vrcp.f32 %v2627_v54  ;;  %v3973_v7 = vpop.eup %3972 }
 0xbcf   :  { %3976 = vrcp.f32 %v2628_v6  ;;  %v2629_v38 = vadd.f32 1.0, %v3973_v7 }
 0xbd1   :  { %3978 = vrcp.f32 %v2629_v38 }
 0xbd8   :  { %v3975_v21 = vpop.eup %3974 }
 0xbd9   :  { %v2638_v53 = vmul.f32 %v3975_v21, %v3971_v14  ;;  %v3977_v22 = vpop.eup %3976 }
 0xbda   :  { %v2637_v3 = vmul.f32 %v3977_v22, %v5291_v51  ;;  %v5697_v51 = vld [vmem:[#allocation25_spill] sm:$0xff] }
 0xbdb   :  { %v3979_v39 = vpop.eup %3978  ;;  %v2009_v59 = vadd.f32 %v5697_v51, %v5219_v4 }
 0xbdc   :  { %v5337_v44 = vadd.f32 %v2638_v53, %v2637_v3 }
 0xbde   :  { %3980 = vtanh.f32 %v5337_v44 }
 0xbe8   :  { %v3981_v58 = vpop.eup %3980 }
 0xbe9   :  { %v2641_v17 = vmul.f32 %v3981_v58, %v3979_v39 }
 0xbeb   :  { %v2646_v5 = vpack.c.bf16 %v2641_v17, %v2641_v17 }
 0xbed   :  { %2680 = vmatmul.mubr.bf16.vlgmr.msra.gmra.mrb[76].mxu0 %v2646_v5  ;;  %2721 = vmatmul.mubr.bf16.vlgmr.msra.gmra.mrb[76].mxu1 %v2646_v5 }
 0xbee   :  { %2763 = vmatpush1.bf16.msra.mxu0 %v5017_v9  ;;  %2804 = vmatpush1.bf16.msra.mxu1 %v5019_v45 }
 0xbef   :  { %2764 = vmatprep.subr.bf16.mxu0 %v5025_v0  ;;  %2805 = vmatprep.subr.bf16.mxu1 %v5027_v19 }
 0xbf0   :  { %2794 = vmatprep.mubr.bf16.mxu0 %v5644_v16  ;;  %2835 = vmatprep.mubr.bf16.mxu1 %v5644_v16 }
 0xbf2   :  { %2765 = vmatpush1.bf16.msra.mxu0 %v5029_v34  ;;  %2806 = vmatpush1.bf16.msra.mxu1 %v5031_v40 }
 0xbf3   :  { %2766 = vmatprep.subr.bf16.mxu0 %v5037_v41  ;;  %2807 = vmatprep.subr.bf16.mxu1 %v5039_v42 }
 0xbf6   :  { %2767 = vmatpush1.bf16.msra.mxu0 %v5041_v43  ;;  %2808 = vmatpush1.bf16.msra.mxu1 %v5043_v23 }
 0xbf7   :  { %2768 = vmatprep.subr.bf16.mxu0 %v5049_v26  ;;  %2809 = vmatprep.subr.bf16.mxu1 %v5051_v27 }
 0xbfa   :  { %2769 = vmatpush1.bf16.msra.mxu0 %v5053_v18  ;;  %2810 = vmatpush1.bf16.msra.mxu1 %v5055_v28 }
 0xbfb   :  { %2770 = vmatprep.subr.bf16.mxu0 %v5061_v35  ;;  %2811 = vmatprep.subr.bf16.mxu1 %v5063_v36 }
 0xbfe   :  { %2771 = vmatpush1.bf16.msra.mxu0 %v5065_v31  ;;  %2812 = vmatpush1.bf16.msra.mxu1 %v5067_v33 }
 0xbff   :  { %2772 = vmatprep.subr.bf16.mxu0 %v5073_v62  ;;  %2813 = vmatprep.subr.bf16.mxu1 %v5075_v63 }
 0xc02   :  { %2773 = vmatpush1.bf16.msra.mxu0 %v5077_v1  ;;  %2814 = vmatpush1.bf16.msra.mxu1 %v5079_v2 }
 0xc03   :  { %2774 = vmatprep.subr.bf16.mxu0 %v5085_v8  ;;  %2815 = vmatprep.subr.bf16.mxu1 %v5087_v10 }
 0xc06   :  { %2775 = vmatpush1.bf16.msra.mxu0 %v5089_v47  ;;  %2816 = vmatpush1.bf16.msra.mxu1 %v5091_v11 }
 0xc07   :  { %2776 = vmatprep.subr.bf16.mxu0 %v5095_v49  ;;  %2817 = vmatprep.subr.bf16.mxu1 %v5097_v12 }
 0xc0a   :  { %2777 = vmatpush1.bf16.msra.mxu0 %v5101_v50  ;;  %2818 = vmatpush1.bf16.msra.mxu1 %v5103_v13 }
 0xc0b   :  { %2877 = vmatprep.subr.bf16.mxu0 %v5013_v32  ;;  %2918 = vmatprep.subr.bf16.mxu1 %v5015_v48 }
 0xcc0   :  { %v2681_v29 = vpop.f32.mrb[76].mxu0  ;;  %v2722_v56 = vpop.f32.mrb[76].mxu1 }
 0xcc1   :  { %v2729_v20 = vadd.f32 %v2681_v29, %v2009_v59  ;;  %v2731_v52 = vadd.f32 %v2722_v56, %v2082_v37  ;;  %v2683_v54 = vpop.f32.mrb[77].mxu0  ;;  %v2724_v57 = vpop.f32.mrb[77].mxu1 }
 0xcc2   :  { %v2730_v6 = vadd.f32 %v2683_v54, %v2011_v60  ;;  %v2732_v14 = vadd.f32 %v2724_v57, %v2084_v24  ;;  %v2685_v7 = vpop.f32.mrb[78].mxu0  ;;  %v2726_v21 = vpop.f32.mrb[78].mxu1 }
 0xcc3   :  { %v3499_v53 = vmul.f32 -1.442695, %v2729_v20  ;;  %v2686_v22 = vpop.f32.mrb[79].mxu0  ;;  %v2727_v38 = vpop.f32.mrb[79].mxu1  ;;  %v3501_v39 = vmul.f32 -1.442695, %v2731_v52 }
 0xcc4   :  { %v3500_v3 = vmul.f32 -1.442695, %v2730_v6  ;;  %v5432_v22 = vld [vmem:[#allocation12] ss:$16 sps:$4 sm:$0xff]   ;;  %v5435_v38 = vld [vmem:[#allocation12 + $0x8] ss:$16 sps:$4 sm:$0xff]  }
 0xcc5   :  { %3982 = vpow2.f32 %v3499_v53 }
 0xcc6   :  { %3984 = vpow2.f32 %v3500_v3  ;;  %v5438_v3 = vld [vmem:[#allocation12 + $0x24] ss:$16 sps:$4 sm:$0xff]  }
 0xcc7   :  { %3986 = vtanh.f32 %v2732_v14 }
 0xcc8   :  { %3988 = vpow2.f32 %v3501_v39  ;;  %v5441_v39 = vld [vmem:[#allocation12 + $0x2c] ss:$16 sps:$4 sm:$0xff]  }
 0xccf   :  { %v3983_v58 = vpop.eup %3982 }
 0xcd0   :  { %v2742_v17 = vadd.f32 1.0, %v3983_v58  ;;  %v3985_v5 = vpop.eup %3984  ;;  %v5446_v58 = vld [vmem:[#allocation12 + $0x20] ss:$16 sps:$4 sm:$0xff]  }
 0xcd1   :  { %v2743_v51 = vadd.f32 1.0, %v3985_v5  ;;  %v3987_v59 = vpop.eup %3986  ;;  %v5452_v5 = vld [vmem:[#allocation12 + $0x44] ss:$16 sps:$4 sm:$0xff]  }
 0xcd2   :  { %3990 = vrcp.f32 %v2742_v17  ;;  %v3989_v30 = vpop.eup %3988  ;;  %v5449_v17 = vld [vmem:[#allocation12 + $0x28] ss:$16 sps:$4 sm:$0xff]  }
 0xcd3   :  { %3992 = vrcp.f32 %v2743_v51  ;;  %v2744_v46 = vadd.f32 1.0, %v3989_v30  ;;  %v5455_v51 = vld [vmem:[#allocation12 + $0x4c] ss:$16 sps:$4 sm:$0xff]   ;;  %v5461_v30 = vld [vmem:[#allocation12 + $0x48] ss:$16 sps:$4 sm:$0xff]  }
 0xcd5   :  { %3994 = vrcp.f32 %v2744_v46  ;;  %v5473_v46 = vld [vmem:[#allocation12 + $0x68] ss:$16 sps:$4 sm:$0xff]  }
 0xcdc   :  { %v3991_v37 = vpop.eup %3990 }
 0xcdd   :  { %v2753_v61 = vmul.f32 %v3991_v37, %v3987_v59  ;;  %v3993_v60 = vpop.eup %3992  ;;  %v5458_v59 = vld [vmem:[#allocation12 + $0x40] ss:$16 sps:$4 sm:$0xff]   ;;  %v5464_v37 = vld [vmem:[#allocation12 + $0x64] ss:$16 sps:$4 sm:$0xff]  }
 0xcde   :  { %v2752_v24 = vmul.f32 %v3993_v60, %v5337_v44  ;;  %v5470_v60 = vld [vmem:[#allocation12 + $0x60] ss:$16 sps:$4 sm:$0xff]  }
 0xcdf   :  { %v3995_v56 = vpop.eup %3994 }
 0xce0   :  { %v5383_v29 = vadd.f32 %v2753_v61, %v2752_v24  ;;  %v5467_v61 = vld [vmem:[#allocation12 + $0x6c] ss:$16 sps:$4 sm:$0xff]   ;;  %v5476_v24 = vld [vmem:[#allocation12 + $0x84] ss:$16 sps:$4 sm:$0xff]  }
 0xce2   :  { %3996 = vtanh.f32 %v5383_v29 }
 0xcec   :  { %v3997_v20 = vpop.eup %3996 }
 0xced   :  { %v2756_v52 = vmul.f32 %v3997_v20, %v3995_v56  ;;  %v5482_v56 = vld [vmem:[#allocation12 + $0x80] ss:$16 sps:$4 sm:$0xff]   ;;  %v5485_v20 = vld [vmem:[#allocation12 + $0x88] ss:$16 sps:$4 sm:$0xff]  }
 0xcef   :  { %v2761_v54 = vpack.c.bf16 %v2756_v52, %v2756_v52  ;;  %v5488_v52 = vld [vmem:[#allocation12 + $0xa4] ss:$16 sps:$4 sm:$0xff]  }
 0xcf1   :  { %2795 = vmatmul.mubr.bf16.vlgmr.msra.gmra.mrb[80].mxu0 %v2761_v54  ;;  %2836 = vmatmul.mubr.bf16.vlgmr.msra.gmra.mrb[80].mxu1 %v2761_v54  ;;  %v5491_v54 = vld [vmem:[#allocation12 + $0xac] ss:$16 sps:$4 sm:$0xff]  }
 0xcf2   :  { %2878 = vmatpush1.bf16.msra.mxu0 %v5017_v9  ;;  %2919 = vmatpush1.bf16.msra.mxu1 %v5019_v45  ;;  %v5701_v9 = vld [vmem:[#allocation29_spill] sm:$0xff] }
 0xcf3   :  { %2879 = vmatprep.subr.bf16.mxu0 %v5025_v0  ;;  %2920 = vmatprep.subr.bf16.mxu1 %v5027_v19  ;;  %v2015_v45 = vadd.f32 %v5701_v9, %v5219_v4  ;;  %v5702_v0 = vld [vmem:[#allocation30_spill] sm:$0xff] }
 0xcf4   :  { %2909 = vmatprep.mubr.bf16.mxu0 %v5644_v16  ;;  %2950 = vmatprep.mubr.bf16.mxu1 %v5644_v16  ;;  %v2088_v19 = vadd.f32 %v5702_v0, %v5223_v55  ;;  %v5494_v9 = vld [vmem:[#allocation12 + $0xa0] ss:$16 sps:$4 sm:$0xff]   ;;  %v5500_v0 = vld [vmem:[#allocation12 + $0xc4] ss:$16 sps:$4 sm:$0xff]  }
 0xcf6   :  { %2880 = vmatpush1.bf16.msra.mxu0 %v5029_v34  ;;  %2921 = vmatpush1.bf16.msra.mxu1 %v5031_v40  ;;  %v5703_v34 = vld [vmem:[#allocation31_spill] sm:$0xff] }
 0xcf7   :  { %2881 = vmatprep.subr.bf16.mxu0 %v5037_v41  ;;  %2922 = vmatprep.subr.bf16.mxu1 %v5039_v42  ;;  %v2017_v40 = vadd.f32 %v5703_v34, %v5231_v25  ;;  %v5704_v41 = vld [vmem:[#allocation32_spill] sm:$0xff] }
 0xcf8   :  { %v2090_v42 = vadd.f32 %v5704_v41, %v5235_v15  ;;  %v5506_v34 = vld [vmem:[#allocation12 + $0xc0] ss:$16 sps:$4 sm:$0xff]   ;;  %v5512_v41 = vld [vmem:[#allocation12 + $0xe4] ss:$16 sps:$4 sm:$0xff]  }
 0xcfa   :  { %2882 = vmatpush1.bf16.msra.mxu0 %v5041_v43  ;;  %2923 = vmatpush1.bf16.msra.mxu1 %v5043_v23 }
 0xcfb   :  { %2883 = vmatprep.subr.bf16.mxu0 %v5049_v26  ;;  %2924 = vmatprep.subr.bf16.mxu1 %v5051_v27 }
 0xcfe   :  { %2884 = vmatpush1.bf16.msra.mxu0 %v5053_v18  ;;  %2925 = vmatpush1.bf16.msra.mxu1 %v5055_v28 }
 0xcff   :  { %2885 = vmatprep.subr.bf16.mxu0 %v5061_v35  ;;  %2926 = vmatprep.subr.bf16.mxu1 %v5063_v36 }
 0xd02   :  { %2886 = vmatpush1.bf16.msra.mxu0 %v5065_v31  ;;  %2927 = vmatpush1.bf16.msra.mxu1 %v5067_v33 }
 0xd03   :  { %2887 = vmatprep.subr.bf16.mxu0 %v5073_v62  ;;  %2928 = vmatprep.subr.bf16.mxu1 %v5075_v63 }
 0xd06   :  { %2888 = vmatpush1.bf16.msra.mxu0 %v5077_v1  ;;  %2929 = vmatpush1.bf16.msra.mxu1 %v5079_v2 }
 0xd07   :  { %2889 = vmatprep.subr.bf16.mxu0 %v5085_v8  ;;  %2930 = vmatprep.subr.bf16.mxu1 %v5087_v10 }
 0xd0a   :  { %2890 = vmatpush1.bf16.msra.mxu0 %v5089_v47  ;;  %2931 = vmatpush1.bf16.msra.mxu1 %v5091_v11 }
 0xd0b   :  { %2891 = vmatprep.subr.bf16.mxu0 %v5095_v49  ;;  %2932 = vmatprep.subr.bf16.mxu1 %v5097_v12 }
 0xd0e   :  { %2892 = vmatpush1.bf16.msra.mxu0 %v5101_v50  ;;  %2933 = vmatpush1.bf16.msra.mxu1 %v5103_v13 }
 0xd0f   :  { %2992 = vmatprep.subr.bf16.mxu0 %v5013_v32  ;;  %3033 = vmatprep.subr.bf16.mxu1 %v5015_v48 }
 0xdc4   :  { %v2796_v43 = vpop.f32.mrb[80].mxu0  ;;  %v2837_v23 = vpop.f32.mrb[80].mxu1 }
 0xdc5   :  { %v2844_v26 = vadd.f32 %v2796_v43, %v2015_v45  ;;  %v2846_v27 = vadd.f32 %v2837_v23, %v2088_v19  ;;  %v2798_v18 = vpop.f32.mrb[81].mxu0  ;;  %v2839_v32 = vpop.f32.mrb[81].mxu1  ;;  %v5497_v45 = vld [vmem:[#allocation12 + $0xa8] ss:$16 sps:$4 sm:$0xff]   ;;  %v5503_v19 = vld [vmem:[#allocation12 + $0xcc] ss:$16 sps:$4 sm:$0xff]  }
 0xdc6   :  { %v2845_v28 = vadd.f32 %v2798_v18, %v2017_v40  ;;  %v2847_v48 = vadd.f32 %v2839_v32, %v2090_v42  ;;  %v2800_v35 = vpop.f32.mrb[82].mxu0  ;;  %v2841_v36 = vpop.f32.mrb[82].mxu1  ;;  %v5509_v40 = vld [vmem:[#allocation12 + $0xc8] ss:$16 sps:$4 sm:$0xff]   ;;  %v5515_v42 = vld [vmem:[#allocation12 + $0xec] ss:$16 sps:$4 sm:$0xff]  }
 0xdc7   :  { %v3502_v31 = vmul.f32 -1.442695, %v2844_v26  ;;  %v2801_v33 = vpop.f32.mrb[83].mxu0  ;;  %v2842_v62 = vpop.f32.mrb[83].mxu1  ;;  %v3504_v1 = vmul.f32 -1.442695, %v2846_v27 }
 0xdc8   :  { %v3503_v63 = vmul.f32 -1.442695, %v2845_v28  ;;  %v5518_v43 = vld [vmem:[#allocation12 + $0xe0] ss:$16 sps:$4 sm:$0xff]   ;;  %v5521_v23 = vld [vmem:[#allocation12 + $0xe8] ss:$16 sps:$4 sm:$0xff]  }
 0xdc9   :  { %3998 = vpow2.f32 %v3502_v31  ;;  %v4124_v26 = vld [vmem:[#allocation12 + $0x4] ss:$16 sps:$4 sm:$0xff]   ;;  %v4125_v27 = vld [vmem:[#allocation12 + $0xc] ss:$16 sps:$4 sm:$0xff]  }
 0xdca   :  { %4000 = vpow2.f32 %v3503_v63  ;;  %v5705_v18 = vld [vmem:[#allocation33_spill] sm:$0xff]  ;;  %v5706_v28 = vld [vmem:[#allocation34_spill] sm:$0xff]  ;;  %v5707_v35 = vld [vmem:[#allocation35_spill] sm:$0xff] }
 0xdcb   :  { %4002 = vtanh.f32 %v2847_v48  ;;  %v2019_v32 = vadd.f32 %v5705_v18, %v5219_v4  ;;  %v2092_v48 = vadd.f32 %v5706_v28, %v5223_v55  ;;  %v2021_v36 = vadd.f32 %v5707_v35, %v5231_v25  ;;  %v5708_v31 = vld [vmem:[#allocation36_spill] sm:$0xff] }
 0xdcc   :  { %4004 = vpow2.f32 %v3504_v1  ;;  %v2094_v33 = vadd.f32 %v5708_v31, %v5235_v15 }
 0xdd3   :  { %v3999_v2 = vpop.eup %3998 }
 0xdd4   :  { %v2857_v8 = vadd.f32 1.0, %v3999_v2  ;;  %v4001_v10 = vpop.eup %4000 }
 0xdd5   :  { %v2858_v47 = vadd.f32 1.0, %v4001_v10  ;;  %v4003_v11 = vpop.eup %4002 }
 0xdd6   :  { %4006 = vrcp.f32 %v2857_v8  ;;  %v4005_v49 = vpop.eup %4004 }
 0xdd7   :  { %4008 = vrcp.f32 %v2858_v47  ;;  %v2859_v44 = vadd.f32 1.0, %v4005_v49 }
 0xdd9   :  { %4010 = vrcp.f32 %v2859_v44 }
 0xde0   :  { %v4007_v12 = vpop.eup %4006 }
 0xde1   :  { %v2868_v50 = vmul.f32 %v4007_v12, %v4003_v11  ;;  %v4009_v13 = vpop.eup %4008 }
 0xde2   :  { %v2867_v57 = vmul.f32 %v4009_v13, %v5383_v29  ;;  %v5479_v29 = vld [vmem:[#allocation12 + $0x8c] ss:$16 sps:$4 sm:$0xff]  }
 0xde3   :  { %v4011_v14 = vpop.eup %4010 }
 0xde4   :  { %v5429_v6 = vadd.f32 %v2868_v50, %v2867_v57 }
 0xde6   :  { %4012 = vtanh.f32 %v5429_v6 }
 0xdf0   :  { %v4013_v7 = vpop.eup %4012 }
 0xdf1   :  { %v2871_v21 = vmul.f32 %v4013_v7, %v4011_v14 }
 0xdf3   :  { %v2876_v53 = vpack.c.bf16 %v2871_v21, %v2871_v21 }
 0xdf5   :  { %2910 = vmatmul.mubr.bf16.vlgmr.msra.gmra.mrb[84].mxu0 %v2876_v53  ;;  %2951 = vmatmul.mubr.bf16.vlgmr.msra.gmra.mrb[84].mxu1 %v2876_v53 }
 0xdf6   :  { %2993 = vmatpush1.bf16.msra.mxu0 %v5432_v22  ;;  %3034 = vmatpush1.bf16.msra.mxu1 %v5435_v38 }
 0xdf7   :  { %2994 = vmatprep.subr.bf16.mxu0 %v5438_v3  ;;  %3035 = vmatprep.subr.bf16.mxu1 %v5441_v39 }
 0xdf8   :  { %3024 = vmatprep.mubr.bf16.mxu0 %v5644_v16  ;;  %3065 = vmatprep.mubr.bf16.mxu1 %v5644_v16 }
 0xdfa   :  { %2995 = vmatpush1.bf16.msra.mxu0 %v5446_v58  ;;  %3036 = vmatpush1.bf16.msra.mxu1 %v5449_v17 }
 0xdfb   :  { %2996 = vmatprep.subr.bf16.mxu0 %v5452_v5  ;;  %3037 = vmatprep.subr.bf16.mxu1 %v5455_v51 }
 0xdfe   :  { %2997 = vmatpush1.bf16.msra.mxu0 %v5458_v59  ;;  %3038 = vmatpush1.bf16.msra.mxu1 %v5461_v30 }
 0xdff   :  { %2998 = vmatprep.subr.bf16.mxu0 %v5464_v37  ;;  %3039 = vmatprep.subr.bf16.mxu1 %v5467_v61 }
 0xe02   :  { %2999 = vmatpush1.bf16.msra.mxu0 %v5470_v60  ;;  %3040 = vmatpush1.bf16.msra.mxu1 %v5473_v46 }
 0xe03   :  { %3000 = vmatprep.subr.bf16.mxu0 %v5476_v24  ;;  %3041 = vmatprep.subr.bf16.mxu1 %v5479_v29 }
 0xe06   :  { %3001 = vmatpush1.bf16.msra.mxu0 %v5482_v56  ;;  %3042 = vmatpush1.bf16.msra.mxu1 %v5485_v20 }
 0xe07   :  { %3002 = vmatprep.subr.bf16.mxu0 %v5488_v52  ;;  %3043 = vmatprep.subr.bf16.mxu1 %v5491_v54 }
 0xe0a   :  { %3003 = vmatpush1.bf16.msra.mxu0 %v5494_v9  ;;  %3044 = vmatpush1.bf16.msra.mxu1 %v5497_v45 }
 0xe0b   :  { %3004 = vmatprep.subr.bf16.mxu0 %v5500_v0  ;;  %3045 = vmatprep.subr.bf16.mxu1 %v5503_v19 }
 0xe0e   :  { %3005 = vmatpush1.bf16.msra.mxu0 %v5506_v34  ;;  %3046 = vmatpush1.bf16.msra.mxu1 %v5509_v40 }
 0xe0f   :  { %3006 = vmatprep.subr.bf16.mxu0 %v5512_v41  ;;  %3047 = vmatprep.subr.bf16.mxu1 %v5515_v42 }
 0xe12   :  { %3007 = vmatpush1.bf16.msra.mxu0 %v5518_v43  ;;  %3048 = vmatpush1.bf16.msra.mxu1 %v5521_v23 }
 0xe13   :  { %3107 = vmatprep.subr.bf16.mxu0 %v4124_v26  ;;  %3148 = vmatprep.subr.bf16.mxu1 %v4125_v27 }
 0xec8   :  { %v2911_v62 = vpop.f32.mrb[84].mxu0  ;;  %v2952_v63 = vpop.f32.mrb[84].mxu1 }
 0xec9   :  { %v2959_v1 = vadd.f32 %v2911_v62, %v2019_v32  ;;  %v2961_v2 = vadd.f32 %v2952_v63, %v2092_v48  ;;  %v2913_v8 = vpop.f32.mrb[85].mxu0  ;;  %v2954_v10 = vpop.f32.mrb[85].mxu1 }
 0xeca   :  { %v2960_v47 = vadd.f32 %v2913_v8, %v2021_v36  ;;  %v2962_v11 = vadd.f32 %v2954_v10, %v2094_v33  ;;  %v2915_v49 = vpop.f32.mrb[86].mxu0  ;;  %v2956_v12 = vpop.f32.mrb[86].mxu1 }
 0xecb   :  { %v3505_v50 = vmul.f32 -1.442695, %v2959_v1  ;;  %v2916_v13 = vpop.f32.mrb[87].mxu0  ;;  %v2957_v44 = vpop.f32.mrb[87].mxu1  ;;  %v3507_v14 = vmul.f32 -1.442695, %v2961_v2 }
 0xecc   :  { %v3506_v57 = vmul.f32 -1.442695, %v2960_v47  ;;  %v3218_v13 = vld [vmem:[#allocation13 + $0x8] sm:$0xff] }
 0xecd   :  { %4014 = vpow2.f32 %v3505_v50  ;;  %v3217_v50 = vld [vmem:[#allocation13] sm:$0xff] }
 0xece   :  { %4016 = vpow2.f32 %v3506_v57  ;;  %v3572_v44 = vpack.c.bf16 %v3218_v13, %v3217_v50  ;;  %v4301_v57 = vmov 0.0|0.0   ;;  %v3514_v13 = vld [vmem:[%s5612_s8] ss:$0 sm:$0xff] }
 0xecf   :  { %4018 = vtanh.f32 %v2962_v11 }
 0xed0   :  { %4020 = vpow2.f32 %v3507_v14  ;;  %v3219_v14 = vld [vmem:[#allocation13 + $0x10] sm:$0xff] }
 0xed7   :  { %v4015_v7 = vpop.eup %4014 }
 0xed8   :  { %v2972_v21 = vadd.f32 1.0, %v4015_v7  ;;  %v4017_v53 = vpop.eup %4016  ;;  %v3220_v7 = vld [vmem:[#allocation13 + $0x18] sm:$0xff] }
 0xed9   :  { %v2973_v26 = vadd.f32 1.0, %v4017_v53  ;;  %v4019_v27 = vpop.eup %4018  ;;  %v3221_v53 = vld [vmem:[#allocation13 + $0x20] sm:$0xff] }
 0xeda   :  { %4022 = vrcp.f32 %v2972_v21  ;;  %v4021_v18 = vpop.eup %4020  ;;  %v3575_v21 = vpack.c.bf16 %v3220_v7, %v3219_v14 }
 0xedb   :  { %4024 = vrcp.f32 %v2973_v26  ;;  %v2974_v35 = vadd.f32 1.0, %v4021_v18  ;;  %v3222_v26 = vld [vmem:[#allocation13 + $0x28] sm:$0xff]  ;;  %v3223_v18 = vld [vmem:[#allocation13 + $0x30] sm:$0xff] }
 0xedd   :  { %4026 = vrcp.f32 %v2974_v35  ;;  %v3226_v35 = vld [vmem:[#allocation13 + $0x48] sm:$0xff] }
 0xee4   :  { %v4023_v32 = vpop.eup %4022 }
 0xee5   :  { %v2983_v28 = vmul.f32 %v4023_v32, %v4019_v27  ;;  %v4025_v48 = vpop.eup %4024  ;;  %v3578_v27 = vpack.c.bf16 %v3222_v26, %v3221_v53  ;;  %v3224_v32 = vld [vmem:[#allocation13 + $0x38] sm:$0xff] }
 0xee6   :  { %v2982_v36 = vmul.f32 %v4025_v48, %v5429_v6  ;;  %v3225_v48 = vld [vmem:[#allocation13 + $0x40] sm:$0xff] }
 0xee7   :  { %v4027_v33 = vpop.eup %4026 }
 0xee8   :  { %v5533_v31 = vadd.f32 %v2983_v28, %v2982_v36  ;;  %v3581_v28 = vpack.c.bf16 %v3224_v32, %v3223_v18  ;;  %v3584_v36 = vpack.c.bf16 %v3226_v35, %v3225_v48 }
 0xeea   :  { %4028 = vtanh.f32 %v5533_v31 }
 0xef4   :  { %v4029_v62 = vpop.eup %4028 }
 0xef5   :  { %v2986_v63 = vmul.f32 %v4029_v62, %v4027_v33  ;;  %v3228_v33 = vld [vmem:[#allocation13 + $0x58] sm:$0xff] }
 0xef7   :  { %v2991_v1 = vpack.c.bf16 %v2986_v63, %v2986_v63  ;;  %v3229_v63 = vld [vmem:[#allocation13 + $0x60] sm:$0xff] }
 0xef9   :  { %3025 = vmatmul.mubr.bf16.vlgmr.msra.gmra.mrb[88].mxu0 %v2991_v1  ;;  %3066 = vmatmul.mubr.bf16.vlgmr.msra.gmra.mrb[88].mxu1 %v2991_v1  ;;  %v3230_v1 = vld [vmem:[#allocation13 + $0x68] sm:$0xff] }
 0xefa   :  { %3108 = vmatpush1.bf16.msra.mxu0 %v5432_v22  ;;  %3149 = vmatpush1.bf16.msra.mxu1 %v5435_v38  ;;  %v5710_v22 = vld [vmem:[#allocation38_spill] sm:$0xff] }
 0xefb   :  { %3109 = vmatprep.subr.bf16.mxu0 %v5438_v3  ;;  %3150 = vmatprep.subr.bf16.mxu1 %v5441_v39  ;;  %v2098_v38 = vadd.f32 %v5710_v22, %v5223_v55  ;;  %v5711_v3 = vld [vmem:[#allocation39_spill] sm:$0xff]  ;;  %v3231_v22 = vld [vmem:[#allocation13 + $0x70] sm:$0xff] }
 0xefc   :  { %3139 = vmatprep.mubr.bf16.mxu0 %v5644_v16  ;;  %3180 = vmatprep.mubr.bf16.mxu1 %v5644_v16  ;;  %v5709_v16 = vld [vmem:[#allocation37_spill] sm:$0xff]  ;;  %v2027_v39 = vadd.f32 %v5711_v3, %v5231_v25 }
 0xefd   :  { %v2025_v6 = vadd.f32 %v5709_v16, %v5219_v4  ;;  %v4303_v16 = vmov 0.0  }
 0xefe   :  { %3110 = vmatpush1.bf16.msra.mxu0 %v5446_v58  ;;  %3151 = vmatpush1.bf16.msra.mxu1 %v5449_v17  ;;  %v5712_v58 = vld [vmem:[#allocation40_spill] sm:$0xff] }
 0xeff   :  { %3111 = vmatprep.subr.bf16.mxu0 %v5452_v5  ;;  %3152 = vmatprep.subr.bf16.mxu1 %v5455_v51  ;;  %v2100_v17 = vadd.f32 %v5712_v58, %v5235_v15 }
 0xf02   :  { %3112 = vmatpush1.bf16.msra.mxu0 %v5458_v59  ;;  %3153 = vmatpush1.bf16.msra.mxu1 %v5461_v30 }
 0xf03   :  { %3113 = vmatprep.subr.bf16.mxu0 %v5464_v37  ;;  %3154 = vmatprep.subr.bf16.mxu1 %v5467_v61 }
 0xf06   :  { %3114 = vmatpush1.bf16.msra.mxu0 %v5470_v60  ;;  %3155 = vmatpush1.bf16.msra.mxu1 %v5473_v46 }
 0xf07   :  { %3115 = vmatprep.subr.bf16.mxu0 %v5476_v24  ;;  %3156 = vmatprep.subr.bf16.mxu1 %v5479_v29 }
 0xf0a   :  { %3116 = vmatpush1.bf16.msra.mxu0 %v5482_v56  ;;  %3157 = vmatpush1.bf16.msra.mxu1 %v5485_v20 }
 0xf0b   :  { %3117 = vmatprep.subr.bf16.mxu0 %v5488_v52  ;;  %3158 = vmatprep.subr.bf16.mxu1 %v5491_v54 }
 0xf0e   :  { %3118 = vmatpush1.bf16.msra.mxu0 %v5494_v9  ;;  %3159 = vmatpush1.bf16.msra.mxu1 %v5497_v45 }
 0xf0f   :  { %3119 = vmatprep.subr.bf16.mxu0 %v5500_v0  ;;  %3160 = vmatprep.subr.bf16.mxu1 %v5503_v19 }
 0xf12   :  { %3120 = vmatpush1.bf16.msra.mxu0 %v5506_v34  ;;  %3161 = vmatpush1.bf16.msra.mxu1 %v5509_v40 }
 0xf13   :  { %3121 = vmatprep.subr.bf16.mxu0 %v5512_v41  ;;  %3162 = vmatprep.subr.bf16.mxu1 %v5515_v42 }
 0xf16   :  { %3122 = vmatpush1.bf16.msra.mxu0 %v5518_v43  ;;  %3163 = vmatpush1.bf16.msra.mxu1 %v5521_v23 }
 0xf17   :  { %3571 = vmatprep.subr.bf16.mxu0 %v4301_v57 }
 0xfcc   :  { %v3026_v5 = vpop.f32.mrb[88].mxu0  ;;  %v3067_v51 = vpop.f32.mrb[88].mxu1 }
 0xfcd   :  { %v3074_v59 = vadd.f32 %v3026_v5, %v2025_v6  ;;  %v3076_v30 = vadd.f32 %v3067_v51, %v2098_v38  ;;  %v3028_v37 = vpop.f32.mrb[89].mxu0  ;;  %v3069_v61 = vpop.f32.mrb[89].mxu1  ;;  %v3590_v6 = vpack.c.bf16 %v3230_v1, %v3229_v63  ;;  %v3232_v38 = vld [vmem:[#allocation13 + $0x78] sm:$0xff]  ;;  %v5715_v51 = vld [vmem:[#allocation21_spill] sm:$0xff] }
 0xfce   :  { %v3075_v60 = vadd.f32 %v3028_v37, %v2027_v39  ;;  %v3077_v46 = vadd.f32 %v3069_v61, %v2100_v17  ;;  %v3030_v24 = vpop.f32.mrb[90].mxu0  ;;  %v3071_v29 = vpop.f32.mrb[90].mxu1  ;;  %v3593_v3 = vpack.c.bf16 %v3232_v38, %v3231_v22  ;;  %v5713_v39 = vld [vmem:[#allocation41_spill] sm:$0xff]  ;;  %v5714_v17 = vld [vmem:[#allocation42_spill] sm:$0xff] }
 0xfcf   :  { %v3508_v56 = vmul.f32 -1.442695, %v3074_v59  ;;  %v3031_v20 = vpop.f32.mrb[91].mxu0  ;;  %v3072_v52 = vpop.f32.mrb[91].mxu1  ;;  %v3510_v9 = vmul.f32 -1.442695, %v3076_v30  ;;  %v2029_v58 = vadd.f32 %v5713_v39, %v5219_v4  ;;  %v2102_v5 = vadd.f32 %v5714_v17, %v5223_v55 }
 0xfd0   :  { %v3509_v54 = vmul.f32 -1.442695, %v3075_v60  ;;  %v2031_v59 = vadd.f32 %v5715_v51, %v5231_v25  ;;  %v5716_v30 = vld [vmem:[#allocation43_spill] sm:$0xff] }
 0xfd1   :  { %4030 = vpow2.f32 %v3508_v56  ;;  %v2104_v37 = vadd.f32 %v5716_v30, %v5235_v15 }
 0xfd2   :  { %4032 = vpow2.f32 %v3509_v54 }
 0xfd3   :  { %4034 = vtanh.f32 %v3077_v46 }
 0xfd4   :  { %4036 = vpow2.f32 %v3510_v9 }
 0xfdb   :  { %v4031_v45 = vpop.eup %4030 }
 0xfdc   :  { %v3087_v0 = vadd.f32 1.0, %v4031_v45  ;;  %v4033_v19 = vpop.eup %4032 }
 0xfdd   :  { %v3088_v34 = vadd.f32 1.0, %v4033_v19  ;;  %v4035_v40 = vpop.eup %4034 }
 0xfde   :  { %4038 = vrcp.f32 %v3087_v0  ;;  %v4037_v41 = vpop.eup %4036 }
 0xfdf   :  { %4040 = vrcp.f32 %v3088_v34  ;;  %v3089_v2 = vadd.f32 1.0, %v4037_v41 }
 0xfe1   :  { %4042 = vrcp.f32 %v3089_v2 }
 0xfe8   :  { %v4039_v42 = vpop.eup %4038 }
 0xfe9   :  { %v3098_v43 = vmul.f32 %v4039_v42, %v4035_v40  ;;  %v4041_v23 = vpop.eup %4040 }
 0xfea   :  { %v3097_v8 = vmul.f32 %v4041_v23, %v5533_v31  ;;  %v3227_v31 = vld [vmem:[#allocation13 + $0x50] sm:$0xff] }
 0xfeb   :  { %v4043_v47 = vpop.eup %4042  ;;  %v3587_v62 = vpack.c.bf16 %v3228_v33, %v3227_v31 }
 0xfec   :  { %v5577_v10 = vadd.f32 %v3098_v43, %v3097_v8 }
 0xfee   :  { %4044 = vtanh.f32 %v5577_v10 }
 0xff8   :  { %v4045_v11 = vpop.eup %4044 }
 0xff9   :  { %v3101_v49 = vmul.f32 %v4045_v11, %v4043_v47 }
 0xffb   :  { %v3106_v12 = vpack.c.bf16 %v3101_v49, %v3101_v49 }
 0xffd   :  { %3140 = vmatmul.mubr.bf16.vlgmr.msra.gmra.mrb[92].mxu0 %v3106_v12  ;;  %3181 = vmatmul.mubr.bf16.vlgmr.msra.gmra.mrb[92].mxu1 %v3106_v12 }
 0xffe   :  { %3573 = vmatpush3.bf16.msra.mxu0 %v3572_v44  ;;  %3568 = vmatprep.mubr.msk.f32.mxu0 %vm4302_vm0, %v4303_v16 }
 0xfff   :  { %3574 = vmatprep.subr.bf16.mxu0 %v4301_v57 }
0x1002   :  { %3576 = vmatpush3.bf16.msra.mxu0 %v3575_v21 }
0x1003   :  { %3577 = vmatprep.subr.bf16.mxu0 %v4301_v57 }
0x1006   :  { %3579 = vmatpush3.bf16.msra.mxu0 %v3578_v27 }
0x1007   :  { %3580 = vmatprep.subr.bf16.mxu0 %v4301_v57 }
0x100a   :  { %3582 = vmatpush3.bf16.msra.mxu0 %v3581_v28 }
0x100b   :  { %3583 = vmatprep.subr.bf16.mxu0 %v4301_v57 }
0x100e   :  { %3585 = vmatpush3.bf16.msra.mxu0 %v3584_v36 }
0x100f   :  { %3586 = vmatprep.subr.bf16.mxu0 %v4301_v57 }
0x1012   :  { %3588 = vmatpush3.bf16.msra.mxu0 %v3587_v62 }
0x1013   :  { %3589 = vmatprep.subr.bf16.mxu0 %v4301_v57 }
0x1016   :  { %3591 = vmatpush3.bf16.msra.mxu0 %v3590_v6 }
0x1017   :  { %3592 = vmatprep.subr.bf16.mxu0 %v4301_v57 }
0x101a   :  { %3594 = vmatpush3.bf16.msra.mxu0 %v3593_v3 }
0x10d0   :  { %v3141_v61 = vpop.f32.mrb[92].mxu0  ;;  %v3182_v60 = vpop.f32.mrb[92].mxu1 }
0x10d1   :  { %v3189_v46 = vadd.f32 %v3141_v61, %v2029_v58  ;;  %v3191_v24 = vadd.f32 %v3182_v60, %v2102_v5  ;;  %v3143_v29 = vpop.f32.mrb[93].mxu0  ;;  %v3184_v56 = vpop.f32.mrb[93].mxu1 }
0x10d2   :  { %v3190_v20 = vadd.f32 %v3143_v29, %v2031_v59  ;;  %v3192_v52 = vadd.f32 %v3184_v56, %v2104_v37  ;;  %v3145_v54 = vpop.f32.mrb[94].mxu0  ;;  %v3186_v9 = vpop.f32.mrb[94].mxu1 }
0x10d3   :  { %v3511_v4 = vmul.f32 -1.442695, %v3189_v46  ;;  %v3146_v45 = vpop.f32.mrb[95].mxu0  ;;  %v3187_v0 = vpop.f32.mrb[95].mxu1  ;;  %v3513_v25 = vmul.f32 -1.442695, %v3191_v24 }
0x10d4   :  { %v3512_v55 = vmul.f32 -1.442695, %v3190_v20 }
0x10d5   :  { %4046 = vpow2.f32 %v3511_v4 }
0x10d6   :  { %4048 = vpow2.f32 %v3512_v55 }
0x10d7   :  { %4050 = vtanh.f32 %v3192_v52 }
0x10d8   :  { %4052 = vpow2.f32 %v3513_v25 }
0x10df   :  { %v4047_v19 = vpop.eup %4046 }
0x10e0   :  { %v3202_v34 = vadd.f32 1.0, %v4047_v19  ;;  %v4049_v15 = vpop.eup %4048 }
0x10e1   :  { %v3203_v40 = vadd.f32 1.0, %v4049_v15  ;;  %v4051_v41 = vpop.eup %4050 }
0x10e2   :  { %4054 = vrcp.f32 %v3202_v34  ;;  %v4053_v42 = vpop.eup %4052 }
0x10e3   :  { %4056 = vrcp.f32 %v3203_v40  ;;  %v3204_v8 = vadd.f32 1.0, %v4053_v42 }
0x10e5   :  { %4058 = vrcp.f32 %v3204_v8 }
0x10ec   :  { %v4055_v43 = vpop.eup %4054 }
0x10ed   :  { %v3213_v23 = vmul.f32 %v4055_v43, %v4051_v41  ;;  %v4057_v2 = vpop.eup %4056 }
0x10ee   :  { %v3212_v47 = vmul.f32 %v4057_v2, %v5577_v10 }
0x10ef   :  { %v4059_v49 = vpop.eup %4058 }
0x10f0   :  { %v3214_v11 = vadd.f32 %v3213_v23, %v3212_v47 }
0x10f2   :  { %4060 = vtanh.f32 %v3214_v11 }
0x10fc   :  { %v4061_v12 = vpop.eup %4060 }
0x10fd   :  { %v3216_v50 = vmul.f32 %v4061_v12, %v4059_v49 }
0x10ff   :  { %3569 = vmatmul.mubr.f32.vlgmr.msra.gmra.mrb[96].mxu0 %v3216_v50 }
0x11d2   :  { %v3306_v44 = vpop.f32.mrb[96].mxu0 }
0x11d3   :  { %v3307_v57 = vadd.f32 %v3514_v13, %v3306_v44  ;;  %v3570_v14 = vpop.f32.mrb[97].mxu0 }
0x11d5   :  { %v3310_v7 = vmax.f32 %v3307_v57, 0.0 }
0x11d7   :  { %3311 = vst [vmem:[#allocation15] sm:$0xff] %v3310_v7 }
0x11d8   :  { %4269 = shalt.err (!%p4266_p10)
}
0x11d9   :  { %s4270_s27 = scalar_lea.hbm %s5613_s9, 128 }
0x11da   :  { %p4271_p11 = scmp.ne.s32.totalorder %s5613_s9, %s4270_s27  ;;  %p4274_p12 = scmp.lt.u32.totalorder %s4270_s27, %s5613_s9 }
0x11dc   :  { %p4276_p13 = pnand %p4274_p12, %p4271_p11 }
0x11de   :  { %4279 = shalt.err (!%p4276_p13)
}
0x11df   :  { %3321 = dma.vmem_to_hbm [thread:$0]  %s3319_s21, 128, %s5613_s9, [#allocation6]  }
0x11e0   :  { %4288 = dma.done.wait [#allocation6], 128  }
0x11e1   :  { %4289 = vsyncadd [#allocation6], 4294967168 }
0x11e2   :  { %3325 = vsyncpa [#allocation5], 1 }
0x11e3   :  { %3326 = vsyncpa [#allocation8], 1 }
0x11e4   :  { %3327 = vsyncpa [#allocation11], 1 }
0x11e5   :  { %3328 = vsyncpa [#allocation14], 1 }
0x11e6   :  { %3329 = vsyncpa [#allocation6], 1 }

</bundles_post_ra>
